<compile_context>
chip_gen: v6e
topology: v6e:2x2x1
jax: 0.10.0
libtpu: 0.0.40
codegen_flags: <defaults>
</compile_context>

<pallas_src>
import functools

import jax
import jax.numpy as jnp
import numpy as np
from jax.experimental import pallas as pl
from jax.experimental.pallas import tpu as pltpu


def _round_up(x, m):
    return (x + m - 1) // m * m


def _layer_norm_1pass(a, gamma, beta, eps=1e-5):
    # Single-pass statistics: var = E[a^2] - E[a]^2 (independent XLU reductions instead
    # of two serialized jnp.mean passes).  Matches torch.nn.LayerNorm (biased var, eps=1e-5).
    inv_n = 1.0 / a.shape[-1]
    mean = jnp.sum(a, axis=-1, keepdims=True) * inv_n
    meansq = jnp.sum(a * a, axis=-1, keepdims=True) * inv_n
    var = meansq - mean * mean
    return (a - mean) * jax.lax.rsqrt(var + eps) * gamma + beta


def _gru_rec_kernel(gir_ref, gii_ref, gin_ref, h0_ref, whh_ref, bhh_ref,
                    lng_ref, lnb_ref, out_ref, h_scr, *,
                    time_block, use_layernorm):
    # Re-initialize the recurrent state at the first time block of each batch block.
    @pl.when(pl.program_id(1) == 0)
    def _():
        h_scr[...] = h0_ref[...].astype(jnp.float32)

    # Loop-invariant (1, H) vectors (loaded once per grid step).
    b_r, b_i, b_n = bhh_ref[0], bhh_ref[1], bhh_ref[2]
    if use_layernorm:
        g_r, g_i, g_n = lng_ref[0], lng_ref[1], lng_ref[2]
        c_r, c_i, c_n = lnb_ref[0], lnb_ref[1], lnb_ref[2]

    def step(tt, carry):
        h = h_scr[...]                                            # (Bb, H) f32
        # Recurrent projection: three lane-aligned (Bb,H)x(H,H) MXU matmuls,
        # default (bf16) precision with f32 accumulation.
        h_r = jnp.dot(h, whh_ref[0], preferred_element_type=jnp.float32) + b_r
        h_i = jnp.dot(h, whh_ref[1], preferred_element_type=jnp.float32) + b_i
        h_n = jnp.dot(h, whh_ref[2], preferred_element_type=jnp.float32) + b_n

        a_r = gir_ref[tt] + h_r
        a_i = gii_ref[tt] + h_i
        if use_layernorm:
            a_r = _layer_norm_1pass(a_r, g_r, c_r)
            a_i = _layer_norm_1pass(a_i, g_i, c_i)
        resetgate = jax.nn.sigmoid(a_r)
        inputgate = jax.nn.sigmoid(a_i)

        a_n = gin_ref[tt] + resetgate * h_n
        if use_layernorm:
            a_n = _layer_norm_1pass(a_n, g_n, c_n)
        newgate = jnp.tanh(a_n)

        hy = newgate + inputgate * (h - newgate)
        h_scr[...] = hy
        out_ref[tt] = hy.astype(out_ref.dtype)
        return carry

    jax.lax.fori_loop(0, time_block, step, 0, unroll=True)


def gru_layer(x, h0, p, use_layernorm=True, time_block=8, batch_block=128):
    """One GRU layer over the full sequence.  x: (T, B, D), h0: (B, H)."""
    T, B, _ = x.shape
    H = h0.shape[-1]
    out_dtype = x.dtype

    # ---- hoisted input projection for the whole sequence (one big MXU matmul in XLA) ----
    gi = jnp.einsum("tbd,gdh->gtbh", x.astype(jnp.float32), p["w_ih"])
    gi = gi + p["b_ih"][:, None, None, :]                         # (3, T, B, H)

    # ---- pad batch to a sublane multiple (>=8) and time to a multiple of the chunk ----
    b8 = max(8, _round_up(B, 8))
    if b8 <= batch_block:
        Bb, B_pad = b8, b8
    else:
        Bb = _round_up(batch_block, 8)
        B_pad = _round_up(B, Bb)
    Tb = min(time_block, T)
    T_pad = _round_up(T, Tb)

    gi = jnp.pad(gi, ((0, 0), (0, T_pad - T), (0, B_pad - B), (0, 0)))
    h0p = jnp.pad(h0.astype(jnp.float32), ((0, B_pad - B), (0, 0)))
    nb, nt = B_pad // Bb, T_pad // Tb

    # Rough VMEM budget: double-buffered gi/out/h0 tiles + resident weights + scratch.
    vmem_bytes = 4 * (2 * 4 * Tb * Bb * H
                      + 2 * Bb * H
                      + 2 * (3 * H * H + 9 * H)
                      + Bb * H)
    cp_kwargs = dict(dimension_semantics=("parallel", "arbitrary"))
    if vmem_bytes > 24 * 1024 * 1024:
        # keep headroom under v7x's 64 MiB physical VMEM (v5e/v6e have 128 MiB)
        cp_kwargs["vmem_limit_bytes"] = min(int(vmem_bytes * 1.25), 60 * 1024 * 1024)

    kernel = functools.partial(_gru_rec_kernel, time_block=Tb,
                               use_layernorm=use_layernorm)
    gate_spec = lambda: pl.BlockSpec((Tb, Bb, H), lambda bi, ti: (ti, bi, 0))
    const3 = lambda bi, ti: (0, 0, 0)

    out = pl.pallas_call(
        kernel,
        grid=(nb, nt),
        in_specs=[
            gate_spec(), gate_spec(), gate_spec(),                # gi_r, gi_i, gi_n
            pl.BlockSpec((Bb, H), lambda bi, ti: (bi, 0)),        # h0
            pl.BlockSpec((3, H, H), const3),                      # W_hh gate slabs
            pl.BlockSpec((3, 1, H), const3),                      # b_hh
            pl.BlockSpec((3, 1, H), const3),                      # LN gamma (r, i, n)
            pl.BlockSpec((3, 1, H), const3),                      # LN beta  (r, i, n)
        ],
        out_specs=pl.BlockSpec((Tb, Bb, H), lambda bi, ti: (ti, bi, 0)),
        out_shape=jax.ShapeDtypeStruct((T_pad, B_pad, H), out_dtype),
        scratch_shapes=[pltpu.VMEM((Bb, H), jnp.float32)],
        compiler_params=pltpu.CompilerParams(**cp_kwargs),
    )(gi[0], gi[1], gi[2], h0p, p["w_hh"], p["b_hh"], p["ln_g"], p["ln_b"])

    out = out[:T, :B]
    return out, out[-1]


def layernorm_gru_forward(x, params, hidden=None, use_layernorm=True,
                          time_block=8, batch_block=128):
    """Matches LayerNormGRU.forward (unidirectional, batch_first=False,
    return_all_hidden=False): returns (output (T,B,H), hidden (L,B,H))."""
    T, B, _ = x.shape
    num_layers = len(params)
    H = params[0]["w_hh"].shape[-1]
    if hidden is None:
        hidden = jnp.zeros((num_layers, B, H), x.dtype)
    last_hiddens = []
    layer_in = x
    for l in range(num_layers):
        layer_in, h_last = gru_layer(layer_in, hidden[l], params[l],
                                     use_layernorm=use_layernorm,
                                     time_block=time_block,
                                     batch_block=batch_block)
        last_hiddens.append(h_last)
    return layer_in, jnp.stack(last_hiddens)


def init_params(key, input_size, hidden_size, num_layers):
    """PyTorch-style init, stored in gate-slab layout:
       w_ih: (3, D, H)  [g] = W_ih_g^T     b_ih: (3, H)
       w_hh: (3, H, H)  [g] = W_hh_g^T     b_hh: (3, 1, H)
       ln_g / ln_b: (3, 1, H)  LayerNorm gamma/beta for gates (r, i, n)."""
    params = []
    D, H = input_size, hidden_size
    for _ in range(num_layers):
        key, k1, k2, k3, k4, k5, k6 = jax.random.split(key, 7)
        s_ih = 1.0 / float(np.sqrt(D))
        s_hh = 1.0 / float(np.sqrt(H))
        w_ih = jax.random.uniform(k1, (3 * H, D), jnp.float32, -s_ih, s_ih)
        b_ih = jax.random.uniform(k2, (3 * H,), jnp.float32, -s_ih, s_ih)
        w_hh = jax.random.uniform(k3, (3 * H, H), jnp.float32, -s_hh, s_hh)
        b_hh = jax.random.uniform(k4, (3 * H,), jnp.float32, -s_hh, s_hh)
        params.append({
            "w_ih": jnp.transpose(w_ih.reshape(3, H, D), (0, 2, 1)),
            "b_ih": b_ih.reshape(3, H),
            "w_hh": jnp.transpose(w_hh.reshape(3, H, H), (0, 2, 1)),
            "b_hh": b_hh.reshape(3, 1, H),
            "ln_g": 1.0 + 0.05 * jax.random.normal(k5, (3, 1, H), jnp.float32),
            "ln_b": 0.05 * jax.random.normal(k6, (3, 1, H), jnp.float32),
        })
        D = H
    return params


# ---------------- pure-JAX reference (mirrors GRUCell / StackedGRU semantics) ----------------
def _ref_layer_norm(a, gamma, beta, eps=1e-5):
    mean = jnp.mean(a, axis=-1, keepdims=True)
    var = jnp.mean((a - mean) ** 2, axis=-1, keepdims=True)
    return (a - mean) * jax.lax.rsqrt(var + eps) * gamma + beta


def _ref_cell(x, h, p, use_layernorm=True):
    gi = [x @ p["w_ih"][g] + p["b_ih"][g] for g in range(3)]
    gh = [h @ p["w_hh"][g] + p["b_hh"][g, 0] for g in range(3)]
    a_r = gi[0] + gh[0]
    a_i = gi[1] + gh[1]
    if use_layernorm:
        a_r = _ref_layer_norm(a_r, p["ln_g"][0], p["ln_b"][0])
        a_i = _ref_layer_norm(a_i, p["ln_g"][1], p["ln_b"][1])
    r = jax.nn.sigmoid(a_r)
    z = jax.nn.sigmoid(a_i)
    a_n = gi[2] + r * gh[2]
    if use_layernorm:
        a_n = _ref_layer_norm(a_n, p["ln_g"][2], p["ln_b"][2])
    n = jnp.tanh(a_n)
    return n + z * (h - n)


def _ref_forward(x, params, use_layernorm=True):
    T, B, _ = x.shape
    H = params[0]["w_hh"].shape[-1]
    last_h = []
    layer_in = x
    for p in params:
        h = jnp.zeros((B, H), x.dtype)
        outs = []
        for t in range(T):
            h = _ref_cell(layer_in[t], h, p, use_layernorm)
            outs.append(h)
        layer_in = jnp.stack(outs)
        last_h.append(h)
    return layer_in, jnp.stack(last_h)


# TODO(synk): bidirectional=True and PackedSequence (ragged batch_sizes) paths of the
# original module are not implemented; defaults (unidirectional, non-packed) are covered.

if __name__ == "__main__":
    T, B, D, H, L = 8, 4, 16, 32, 2

    key = jax.random.PRNGKey(0)
    key, kx = jax.random.split(key)
    x = jax.random.normal(kx, (T, B, D), jnp.float32)   # (seq_len, batch, input_size)
    params = init_params(key, D, H, L)

    fwd_ln = jax.jit(functools.partial(layernorm_gru_forward, use_layernorm=True))
    out, hid = fwd_ln(x, params)
    out = jax.block_until_ready(out)
    hid = jax.block_until_ready(hid)
    assert out.shape == (T, B, H) and hid.shape == (L, B, H)

    ref_out, ref_hid = _ref_forward(x, params, use_layernorm=True)
    np.testing.assert_allclose(np.asarray(out), np.asarray(ref_out), atol=3e-3, rtol=3e-3)
    np.testing.assert_allclose(np.asarray(hid), np.asarray(ref_hid), atol=3e-3, rtol=3e-3)

    # also exercise the layernorm=False GRUCell path
    fwd_plain = jax.jit(functools.partial(layernorm_gru_forward, use_layernorm=False))
    out2, hid2 = fwd_plain(x, params)
    out2 = jax.block_until_ready(out2)
    hid2 = jax.block_until_ready(hid2)
    ref_out2, ref_hid2 = _ref_forward(x, params, use_layernorm=False)
    np.testing.assert_allclose(np.asarray(out2), np.asarray(ref_out2), atol=3e-3, rtol=3e-3)
    np.testing.assert_allclose(np.asarray(hid2), np.asarray(ref_hid2), atol=3e-3, rtol=3e-3)

    print("KERNEL_OK")
</pallas_src>

<mosaic_0001>
module attributes {stable_mosaic.version = 11 : i64} {
  func.func @_gru_rec_kernel(%arg0: i32, %arg1: i32, %arg2: memref<8x8x32xf32, #tpu.memory_space<vmem>>, %arg3: memref<8x8x32xf32, #tpu.memory_space<vmem>>, %arg4: memref<8x8x32xf32, #tpu.memory_space<vmem>>, %arg5: memref<8x32xf32, #tpu.memory_space<vmem>>, %arg6: memref<3x32x32xf32, #tpu.memory_space<vmem>>, %arg7: memref<3x1x32xf32, #tpu.memory_space<vmem>>, %arg8: memref<3x1x32xf32, #tpu.memory_space<vmem>>, %arg9: memref<3x1x32xf32, #tpu.memory_space<vmem>>, %arg10: memref<8x8x32xf32, #tpu.memory_space<vmem>>, %arg11: memref<8x32xf32, #tpu.memory_space<vmem>>) attributes {dimension_semantics = [#tpu.dimension_semantics<parallel>, #tpu.dimension_semantics<arbitrary>], iteration_bounds = array<i64: 1, 1>, scalar_prefetch = 0 : i64, scratch_operands = 1 : i64, tpu.core_type = #tpu.core_type<tc>, window_params = [{transform_indices = @transform_0, window_bounds = array<i64: 8, 8, 32>}, {transform_indices = @transform_1, window_bounds = array<i64: 8, 8, 32>}, {transform_indices = @transform_2, window_bounds = array<i64: 8, 8, 32>}, {transform_indices = @transform_3, window_bounds = array<i64: 8, 32>}, {pipeline_mode = #tpu.pipeline_mode<synchronous>, transform_indices = @transform_4, window_bounds = array<i64: 3, 32, 32>}, {pipeline_mode = #tpu.pipeline_mode<synchronous>, transform_indices = @transform_5, window_bounds = array<i64: 3, 1, 32>}, {pipeline_mode = #tpu.pipeline_mode<synchronous>, transform_indices = @transform_6, window_bounds = array<i64: 3, 1, 32>}, {pipeline_mode = #tpu.pipeline_mode<synchronous>, transform_indices = @transform_7, window_bounds = array<i64: 3, 1, 32>}, {transform_indices = @transform_8, window_bounds = array<i64: 8, 8, 32>}]} {
    %c0_i32 = arith.constant 0 : i32
    %0 = arith.cmpi eq, %arg1, %c0_i32 : i32
    %1 = arith.extui %0 : i1 to i32
    %c0_i32_0 = arith.constant 0 : i32
    %2 = arith.cmpi ne, %1, %c0_i32_0 : i32
    scf.if %2 {
      %c0_353 = arith.constant 0 : index
      %c0_354 = arith.constant 0 : index
      %933 = vector.load %arg5[%c0_353, %c0_354] : memref<8x32xf32, #tpu.memory_space<vmem>>, vector<8x32xf32>
      %c0_355 = arith.constant 0 : index
      %c0_356 = arith.constant 0 : index
      %934 = vector.load %arg11[%c0_355, %c0_356] : memref<8x32xf32, #tpu.memory_space<vmem>>, vector<8x32xf32>
      tpu.vector_store %arg11[%c0_355, %c0_356], %933 {strides = array<i32>} : memref<8x32xf32, #tpu.memory_space<vmem>>, vector<8x32xf32>,
    } else {
    }
    %c0 = arith.constant 0 : index
    %c0_1 = arith.constant 0 : index
    %c0_2 = arith.constant 0 : index
    %3 = vector.load %arg7[%c0, %c0_1, %c0_2] : memref<3x1x32xf32, #tpu.memory_space<vmem>>, vector<1x1x32xf32>
    %4 = vector.shape_cast %3 : vector<1x1x32xf32> to vector<1x32xf32>
    %c1 = arith.constant 1 : index
    %c0_3 = arith.constant 0 : index
    %c0_4 = arith.constant 0 : index
    %5 = vector.load %arg7[%c1, %c0_3, %c0_4] : memref<3x1x32xf32, #tpu.memory_space<vmem>>, vector<1x1x32xf32>
    %6 = vector.shape_cast %5 : vector<1x1x32xf32> to vector<1x32xf32>
    %c2 = arith.constant 2 : index
    %c0_5 = arith.constant 0 : index
    %c0_6 = arith.constant 0 : index
    %7 = vector.load %arg7[%c2, %c0_5, %c0_6] : memref<3x1x32xf32, #tpu.memory_space<vmem>>, vector<1x1x32xf32>
    %8 = vector.shape_cast %7 : vector<1x1x32xf32> to vector<1x32xf32>
    %c0_7 = arith.constant 0 : index
    %c0_8 = arith.constant 0 : index
    %c0_9 = arith.constant 0 : index
    %9 = vector.load %arg8[%c0_7, %c0_8, %c0_9] : memref<3x1x32xf32, #tpu.memory_space<vmem>>, vector<1x1x32xf32>
    %10 = vector.shape_cast %9 : vector<1x1x32xf32> to vector<1x32xf32>
    %c1_10 = arith.constant 1 : index
    %c0_11 = arith.constant 0 : index
    %c0_12 = arith.constant 0 : index
    %11 = vector.load %arg8[%c1_10, %c0_11, %c0_12] : memref<3x1x32xf32, #tpu.memory_space<vmem>>, vector<1x1x32xf32>
    %12 = vector.shape_cast %11 : vector<1x1x32xf32> to vector<1x32xf32>
    %c2_13 = arith.constant 2 : index
    %c0_14 = arith.constant 0 : index
    %c0_15 = arith.constant 0 : index
    %13 = vector.load %arg8[%c2_13, %c0_14, %c0_15] : memref<3x1x32xf32, #tpu.memory_space<vmem>>, vector<1x1x32xf32>
    %14 = vector.shape_cast %13 : vector<1x1x32xf32> to vector<1x32xf32>
    %c0_16 = arith.constant 0 : index
    %c0_17 = arith.constant 0 : index
    %c0_18 = arith.constant 0 : index
    %15 = vector.load %arg9[%c0_16, %c0_17, %c0_18] : memref<3x1x32xf32, #tpu.memory_space<vmem>>, vector<1x1x32xf32>
    %16 = vector.shape_cast %15 : vector<1x1x32xf32> to vector<1x32xf32>
    %c1_19 = arith.constant 1 : index
    %c0_20 = arith.constant 0 : index
    %c0_21 = arith.constant 0 : index
    %17 = vector.load %arg9[%c1_19, %c0_20, %c0_21] : memref<3x1x32xf32, #tpu.memory_space<vmem>>, vector<1x1x32xf32>
    %18 = vector.shape_cast %17 : vector<1x1x32xf32> to vector<1x32xf32>
    %c2_22 = arith.constant 2 : index
    %c0_23 = arith.constant 0 : index
    %c0_24 = arith.constant 0 : index
    %19 = vector.load %arg9[%c2_22, %c0_23, %c0_24] : memref<3x1x32xf32, #tpu.memory_space<vmem>>, vector<1x1x32xf32>
    %20 = vector.shape_cast %19 : vector<1x1x32xf32> to vector<1x32xf32>
    %c0_i32_25 = arith.constant 0 : i32
    %c0_26 = arith.constant 0 : index
    %c0_27 = arith.constant 0 : index
    %21 = vector.load %arg11[%c0_26, %c0_27] : memref<8x32xf32, #tpu.memory_space<vmem>>, vector<8x32xf32>
    %c0_28 = arith.constant 0 : index
    %c0_29 = arith.constant 0 : index
    %c0_30 = arith.constant 0 : index
    %22 = vector.load %arg6[%c0_28, %c0_29, %c0_30] : memref<3x32x32xf32, #tpu.memory_space<vmem>>, vector<1x32x32xf32>
    %23 = vector.shape_cast %22 : vector<1x32x32xf32> to vector<32x32xf32>
    %cst = arith.constant dense<0.000000e+00> : vector<8x32xf32>
    %24 = tpu.matmul %21, %23, %cst {dimension_numbers = #tpu.dot_dimension_numbers<[1], [0], [0], [1], [0, 0, 1, 1], [], []>} : vector<8x32xf32>, vector<32x32xf32>, vector<8x32xf32> -> vector<8x32xf32>
    %25 = vector.broadcast %4 : vector<1x32xf32> to vector<8x32xf32>
    %26 = arith.addf %24, %25 : vector<8x32xf32>
    %c1_31 = arith.constant 1 : index
    %c0_32 = arith.constant 0 : index
    %c0_33 = arith.constant 0 : index
    %27 = vector.load %arg6[%c1_31, %c0_32, %c0_33] : memref<3x32x32xf32, #tpu.memory_space<vmem>>, vector<1x32x32xf32>
    %28 = vector.shape_cast %27 : vector<1x32x32xf32> to vector<32x32xf32>
    %cst_34 = arith.constant dense<0.000000e+00> : vector<8x32xf32>
    %29 = tpu.matmul %21, %28, %cst_34 {dimension_numbers = #tpu.dot_dimension_numbers<[1], [0], [0], [1], [0, 0, 1, 1], [], []>} : vector<8x32xf32>, vector<32x32xf32>, vector<8x32xf32> -> vector<8x32xf32>
    %30 = vector.broadcast %6 : vector<1x32xf32> to vector<8x32xf32>
    %31 = arith.addf %29, %30 : vector<8x32xf32>
    %c2_35 = arith.constant 2 : index
    %c0_36 = arith.constant 0 : index
    %c0_37 = arith.constant 0 : index
    %32 = vector.load %arg6[%c2_35, %c0_36, %c0_37] : memref<3x32x32xf32, #tpu.memory_space<vmem>>, vector<1x32x32xf32>
    %33 = vector.shape_cast %32 : vector<1x32x32xf32> to vector<32x32xf32>
    %cst_38 = arith.constant dense<0.000000e+00> : vector<8x32xf32>
    %34 = tpu.matmul %21, %33, %cst_38 {dimension_numbers = #tpu.dot_dimension_numbers<[1], [0], [0], [1], [0, 0, 1, 1], [], []>} : vector<8x32xf32>, vector<32x32xf32>, vector<8x32xf32> -> vector<8x32xf32>
    %35 = vector.broadcast %8 : vector<1x32xf32> to vector<8x32xf32>
    %36 = arith.addf %34, %35 : vector<8x32xf32>
    %37 = arith.index_cast %c0_i32_25 : i32 to index
    %c0_39 = arith.constant 0 : index
    %c0_40 = arith.constant 0 : index
    %38 = vector.load %arg2[%37, %c0_39, %c0_40] : memref<8x8x32xf32, #tpu.memory_space<vmem>>, vector<1x8x32xf32>
    %39 = vector.shape_cast %38 : vector<1x8x32xf32> to vector<8x32xf32>
    %40 = arith.addf %39, %26 : vector<8x32xf32>
    %41 = arith.index_cast %c0_i32_25 : i32 to index
    %c0_41 = arith.constant 0 : index
    %c0_42 = arith.constant 0 : index
    %42 = vector.load %arg3[%41, %c0_41, %c0_42] : memref<8x8x32xf32, #tpu.memory_space<vmem>>, vector<1x8x32xf32>
    %43 = vector.shape_cast %42 : vector<1x8x32xf32> to vector<8x32xf32>
    %44 = arith.addf %43, %31 : vector<8x32xf32>
    %cst_43 = arith.constant dense<0.000000e+00> : vector<8xf32>
    %45 = vector.multi_reduction <add>, %40, %cst_43 [1] : vector<8x32xf32> to vector<8xf32>
    %46 = vector.shape_cast %45 : vector<8xf32> to vector<8x1xf32>
    %cst_44 = arith.constant 3.125000e-02 : f32
    %47 = vector.broadcast %cst_44 : f32 to vector<8x1xf32>
    %48 = arith.mulf %46, %47 : vector<8x1xf32>
    %49 = arith.mulf %40, %40 : vector<8x32xf32>
    %cst_45 = arith.constant dense<0.000000e+00> : vector<8xf32>
    %50 = vector.multi_reduction <add>, %49, %cst_45 [1] : vector<8x32xf32> to vector<8xf32>
    %51 = vector.shape_cast %50 : vector<8xf32> to vector<8x1xf32>
    %cst_46 = arith.constant 3.125000e-02 : f32
    %52 = vector.broadcast %cst_46 : f32 to vector<8x1xf32>
    %53 = arith.mulf %51, %52 : vector<8x1xf32>
    %54 = arith.mulf %48, %48 : vector<8x1xf32>
    %55 = arith.subf %53, %54 : vector<8x1xf32>
    %56 = vector.broadcast %48 : vector<8x1xf32> to vector<8x32xf32>
    %57 = arith.subf %40, %56 : vector<8x32xf32>
    %cst_47 = arith.constant 9.99999974E-6 : f32
    %58 = vector.broadcast %cst_47 : f32 to vector<8x1xf32>
    %59 = arith.addf %55, %58 : vector<8x1xf32>
    %60 = math.rsqrt %59 : vector<8x1xf32>
    %61 = vector.broadcast %60 : vector<8x1xf32> to vector<8x32xf32>
    %62 = arith.mulf %57, %61 : vector<8x32xf32>
    %63 = vector.broadcast %10 : vector<1x32xf32> to vector<8x32xf32>
    %64 = arith.mulf %62, %63 : vector<8x32xf32>
    %65 = vector.broadcast %16 : vector<1x32xf32> to vector<8x32xf32>
    %66 = arith.addf %64, %65 : vector<8x32xf32>
    %cst_48 = arith.constant dense<0.000000e+00> : vector<8xf32>
    %67 = vector.multi_reduction <add>, %44, %cst_48 [1] : vector<8x32xf32> to vector<8xf32>
    %68 = vector.shape_cast %67 : vector<8xf32> to vector<8x1xf32>
    %cst_49 = arith.constant 3.125000e-02 : f32
    %69 = vector.broadcast %cst_49 : f32 to vector<8x1xf32>
    %70 = arith.mulf %68, %69 : vector<8x1xf32>
    %71 = arith.mulf %44, %44 : vector<8x32xf32>
    %cst_50 = arith.constant dense<0.000000e+00> : vector<8xf32>
    %72 = vector.multi_reduction <add>, %71, %cst_50 [1] : vector<8x32xf32> to vector<8xf32>
    %73 = vector.shape_cast %72 : vector<8xf32> to vector<8x1xf32>
    %cst_51 = arith.constant 3.125000e-02 : f32
    %74 = vector.broadcast %cst_51 : f32 to vector<8x1xf32>
    %75 = arith.mulf %73, %74 : vector<8x1xf32>
    %76 = arith.mulf %70, %70 : vector<8x1xf32>
    %77 = arith.subf %75, %76 : vector<8x1xf32>
    %78 = vector.broadcast %70 : vector<8x1xf32> to vector<8x32xf32>
    %79 = arith.subf %44, %78 : vector<8x32xf32>
    %cst_52 = arith.constant 9.99999974E-6 : f32
    %80 = vector.broadcast %cst_52 : f32 to vector<8x1xf32>
    %81 = arith.addf %77, %80 : vector<8x1xf32>
    %82 = math.rsqrt %81 : vector<8x1xf32>
    %83 = vector.broadcast %82 : vector<8x1xf32> to vector<8x32xf32>
    %84 = arith.mulf %79, %83 : vector<8x32xf32>
    %85 = vector.broadcast %12 : vector<1x32xf32> to vector<8x32xf32>
    %86 = arith.mulf %84, %85 : vector<8x32xf32>
    %87 = vector.broadcast %18 : vector<1x32xf32> to vector<8x32xf32>
    %88 = arith.addf %86, %87 : vector<8x32xf32>
    %89 = arith.negf %66 : vector<8x32xf32>
    %90 = math.exp %89 : vector<8x32xf32>
    %cst_53 = arith.constant 1.000000e+00 : f32
    %91 = vector.broadcast %cst_53 : f32 to vector<8x32xf32>
    %92 = arith.addf %91, %90 : vector<8x32xf32>
    %93 = arith.divf %91, %92 : vector<8x32xf32>
    %94 = arith.negf %88 : vector<8x32xf32>
    %95 = math.exp %94 : vector<8x32xf32>
    %cst_54 = arith.constant 1.000000e+00 : f32
    %96 = vector.broadcast %cst_54 : f32 to vector<8x32xf32>
    %97 = arith.addf %96, %95 : vector<8x32xf32>
    %98 = arith.divf %96, %97 : vector<8x32xf32>
    %99 = arith.index_cast %c0_i32_25 : i32 to index
    %c0_55 = arith.constant 0 : index
    %c0_56 = arith.constant 0 : index
    %100 = vector.load %arg4[%99, %c0_55, %c0_56] : memref<8x8x32xf32, #tpu.memory_space<vmem>>, vector<1x8x32xf32>
    %101 = vector.shape_cast %100 : vector<1x8x32xf32> to vector<8x32xf32>
    %102 = arith.mulf %93, %36 : vector<8x32xf32>
    %103 = arith.addf %101, %102 : vector<8x32xf32>
    %cst_57 = arith.constant dense<0.000000e+00> : vector<8xf32>
    %104 = vector.multi_reduction <add>, %103, %cst_57 [1] : vector<8x32xf32> to vector<8xf32>
    %105 = vector.shape_cast %104 : vector<8xf32> to vector<8x1xf32>
    %cst_58 = arith.constant 3.125000e-02 : f32
    %106 = vector.broadcast %cst_58 : f32 to vector<8x1xf32>
    %107 = arith.mulf %105, %106 : vector<8x1xf32>
    %108 = arith.mulf %103, %103 : vector<8x32xf32>
    %cst_59 = arith.constant dense<0.000000e+00> : vector<8xf32>
    %109 = vector.multi_reduction <add>, %108, %cst_59 [1] : vector<8x32xf32> to vector<8xf32>
    %110 = vector.shape_cast %109 : vector<8xf32> to vector<8x1xf32>
    %cst_60 = arith.constant 3.125000e-02 : f32
    %111 = vector.broadcast %cst_60 : f32 to vector<8x1xf32>
    %112 = arith.mulf %110, %111 : vector<8x1xf32>
    %113 = arith.mulf %107, %107 : vector<8x1xf32>
    %114 = arith.subf %112, %113 : vector<8x1xf32>
    %115 = vector.broadcast %107 : vector<8x1xf32> to vector<8x32xf32>
    %116 = arith.subf %103, %115 : vector<8x32xf32>
    %cst_61 = arith.constant 9.99999974E-6 : f32
    %117 = vector.broadcast %cst_61 : f32 to vector<8x1xf32>
    %118 = arith.addf %114, %117 : vector<8x1xf32>
    %119 = math.rsqrt %118 : vector<8x1xf32>
    %120 = vector.broadcast %119 : vector<8x1xf32> to vector<8x32xf32>
    %121 = arith.mulf %116, %120 : vector<8x32xf32>
    %122 = vector.broadcast %14 : vector<1x32xf32> to vector<8x32xf32>
    %123 = arith.mulf %121, %122 : vector<8x32xf32>
    %124 = vector.broadcast %20 : vector<1x32xf32> to vector<8x32xf32>
    %125 = arith.addf %123, %124 : vector<8x32xf32>
    %126 = math.tanh %125 : vector<8x32xf32>
    %127 = arith.subf %21, %126 : vector<8x32xf32>
    %128 = arith.mulf %98, %127 : vector<8x32xf32>
    %129 = arith.addf %126, %128 : vector<8x32xf32>
    %c0_62 = arith.constant 0 : index
    %c0_63 = arith.constant 0 : index
    %130 = vector.load %arg11[%c0_62, %c0_63] : memref<8x32xf32, #tpu.memory_space<vmem>>, vector<8x32xf32>
    tpu.vector_store %arg11[%c0_62, %c0_63], %129 {strides = array<i32>} : memref<8x32xf32, #tpu.memory_space<vmem>>, vector<8x32xf32>,
    %131 = arith.index_cast %c0_i32_25 : i32 to index
    %c0_64 = arith.constant 0 : index
    %c0_65 = arith.constant 0 : index
    %132 = vector.load %arg10[%131, %c0_64, %c0_65] : memref<8x8x32xf32, #tpu.memory_space<vmem>>, vector<1x8x32xf32>
    %133 = vector.shape_cast %132 : vector<1x8x32xf32> to vector<8x32xf32>
    %134 = vector.shape_cast %129 : vector<8x32xf32> to vector<1x8x32xf32>
    tpu.vector_store %arg10[%131, %c0_64, %c0_65], %134 {strides = array<i32>} : memref<8x8x32xf32, #tpu.memory_space<vmem>>, vector<1x8x32xf32>,
    %c1_i32 = arith.constant 1 : i32
    %c0_66 = arith.constant 0 : index
    %c0_67 = arith.constant 0 : index
    %135 = vector.load %arg11[%c0_66, %c0_67] : memref<8x32xf32, #tpu.memory_space<vmem>>, vector<8x32xf32>
    %c0_68 = arith.constant 0 : index
    %c0_69 = arith.constant 0 : index
    %c0_70 = arith.constant 0 : index
    %136 = vector.load %arg6[%c0_68, %c0_69, %c0_70] : memref<3x32x32xf32, #tpu.memory_space<vmem>>, vector<1x32x32xf32>
    %137 = vector.shape_cast %136 : vector<1x32x32xf32> to vector<32x32xf32>
    %cst_71 = arith.constant dense<0.000000e+00> : vector<8x32xf32>
    %138 = tpu.matmul %135, %137, %cst_71 {dimension_numbers = #tpu.dot_dimension_numbers<[1], [0], [0], [1], [0, 0, 1, 1], [], []>} : vector<8x32xf32>, vector<32x32xf32>, vector<8x32xf32> -> vector<8x32xf32>
    %139 = vector.broadcast %4 : vector<1x32xf32> to vector<8x32xf32>
    %140 = arith.addf %138, %139 : vector<8x32xf32>
    %c1_72 = arith.constant 1 : index
    %c0_73 = arith.constant 0 : index
    %c0_74 = arith.constant 0 : index
    %141 = vector.load %arg6[%c1_72, %c0_73, %c0_74] : memref<3x32x32xf32, #tpu.memory_space<vmem>>, vector<1x32x32xf32>
    %142 = vector.shape_cast %141 : vector<1x32x32xf32> to vector<32x32xf32>
    %cst_75 = arith.constant dense<0.000000e+00> : vector<8x32xf32>
    %143 = tpu.matmul %135, %142, %cst_75 {dimension_numbers = #tpu.dot_dimension_numbers<[1], [0], [0], [1], [0, 0, 1, 1], [], []>} : vector<8x32xf32>, vector<32x32xf32>, vector<8x32xf32> -> vector<8x32xf32>
    %144 = vector.broadcast %6 : vector<1x32xf32> to vector<8x32xf32>
    %145 = arith.addf %143, %144 : vector<8x32xf32>
    %c2_76 = arith.constant 2 : index
    %c0_77 = arith.constant 0 : index
    %c0_78 = arith.constant 0 : index
    %146 = vector.load %arg6[%c2_76, %c0_77, %c0_78] : memref<3x32x32xf32, #tpu.memory_space<vmem>>, vector<1x32x32xf32>
    %147 = vector.shape_cast %146 : vector<1x32x32xf32> to vector<32x32xf32>
    %cst_79 = arith.constant dense<0.000000e+00> : vector<8x32xf32>
    %148 = tpu.matmul %135, %147, %cst_79 {dimension_numbers = #tpu.dot_dimension_numbers<[1], [0], [0], [1], [0, 0, 1, 1], [], []>} : vector<8x32xf32>, vector<32x32xf32>, vector<8x32xf32> -> vector<8x32xf32>
    %149 = vector.broadcast %8 : vector<1x32xf32> to vector<8x32xf32>
    %150 = arith.addf %148, %149 : vector<8x32xf32>
    %151 = arith.index_cast %c1_i32 : i32 to index
    %c0_80 = arith.constant 0 : index
    %c0_81 = arith.constant 0 : index
    %152 = vector.load %arg2[%151, %c0_80, %c0_81] : memref<8x8x32xf32, #tpu.memory_space<vmem>>, vector<1x8x32xf32>
    %153 = vector.shape_cast %152 : vector<1x8x32xf32> to vector<8x32xf32>
    %154 = arith.addf %153, %140 : vector<8x32xf32>
    %155 = arith.index_cast %c1_i32 : i32 to index
    %c0_82 = arith.constant 0 : index
    %c0_83 = arith.constant 0 : index
    %156 = vector.load %arg3[%155, %c0_82, %c0_83] : memref<8x8x32xf32, #tpu.memory_space<vmem>>, vector<1x8x32xf32>
    %157 = vector.shape_cast %156 : vector<1x8x32xf32> to vector<8x32xf32>
    %158 = arith.addf %157, %145 : vector<8x32xf32>
    %cst_84 = arith.constant dense<0.000000e+00> : vector<8xf32>
    %159 = vector.multi_reduction <add>, %154, %cst_84 [1] : vector<8x32xf32> to vector<8xf32>
    %160 = vector.shape_cast %159 : vector<8xf32> to vector<8x1xf32>
    %cst_85 = arith.constant 3.125000e-02 : f32
    %161 = vector.broadcast %cst_85 : f32 to vector<8x1xf32>
    %162 = arith.mulf %160, %161 : vector<8x1xf32>
    %163 = arith.mulf %154, %154 : vector<8x32xf32>
    %cst_86 = arith.constant dense<0.000000e+00> : vector<8xf32>
    %164 = vector.multi_reduction <add>, %163, %cst_86 [1] : vector<8x32xf32> to vector<8xf32>
    %165 = vector.shape_cast %164 : vector<8xf32> to vector<8x1xf32>
    %cst_87 = arith.constant 3.125000e-02 : f32
    %166 = vector.broadcast %cst_87 : f32 to vector<8x1xf32>
    %167 = arith.mulf %165, %166 : vector<8x1xf32>
    %168 = arith.mulf %162, %162 : vector<8x1xf32>
    %169 = arith.subf %167, %168 : vector<8x1xf32>
    %170 = vector.broadcast %162 : vector<8x1xf32> to vector<8x32xf32>
    %171 = arith.subf %154, %170 : vector<8x32xf32>
    %cst_88 = arith.constant 9.99999974E-6 : f32
    %172 = vector.broadcast %cst_88 : f32 to vector<8x1xf32>
    %173 = arith.addf %169, %172 : vector<8x1xf32>
    %174 = math.rsqrt %173 : vector<8x1xf32>
    %175 = vector.broadcast %174 : vector<8x1xf32> to vector<8x32xf32>
    %176 = arith.mulf %171, %175 : vector<8x32xf32>
    %177 = vector.broadcast %10 : vector<1x32xf32> to vector<8x32xf32>
    %178 = arith.mulf %176, %177 : vector<8x32xf32>
    %179 = vector.broadcast %16 : vector<1x32xf32> to vector<8x32xf32>
    %180 = arith.addf %178, %179 : vector<8x32xf32>
    %cst_89 = arith.constant dense<0.000000e+00> : vector<8xf32>
    %181 = vector.multi_reduction <add>, %158, %cst_89 [1] : vector<8x32xf32> to vector<8xf32>
    %182 = vector.shape_cast %181 : vector<8xf32> to vector<8x1xf32>
    %cst_90 = arith.constant 3.125000e-02 : f32
    %183 = vector.broadcast %cst_90 : f32 to vector<8x1xf32>
    %184 = arith.mulf %182, %183 : vector<8x1xf32>
    %185 = arith.mulf %158, %158 : vector<8x32xf32>
    %cst_91 = arith.constant dense<0.000000e+00> : vector<8xf32>
    %186 = vector.multi_reduction <add>, %185, %cst_91 [1] : vector<8x32xf32> to vector<8xf32>
    %187 = vector.shape_cast %186 : vector<8xf32> to vector<8x1xf32>
    %cst_92 = arith.constant 3.125000e-02 : f32
    %188 = vector.broadcast %cst_92 : f32 to vector<8x1xf32>
    %189 = arith.mulf %187, %188 : vector<8x1xf32>
    %190 = arith.mulf %184, %184 : vector<8x1xf32>
    %191 = arith.subf %189, %190 : vector<8x1xf32>
    %192 = vector.broadcast %184 : vector<8x1xf32> to vector<8x32xf32>
    %193 = arith.subf %158, %192 : vector<8x32xf32>
    %cst_93 = arith.constant 9.99999974E-6 : f32
    %194 = vector.broadcast %cst_93 : f32 to vector<8x1xf32>
    %195 = arith.addf %191, %194 : vector<8x1xf32>
    %196 = math.rsqrt %195 : vector<8x1xf32>
    %197 = vector.broadcast %196 : vector<8x1xf32> to vector<8x32xf32>
    %198 = arith.mulf %193, %197 : vector<8x32xf32>
    %199 = vector.broadcast %12 : vector<1x32xf32> to vector<8x32xf32>
    %200 = arith.mulf %198, %199 : vector<8x32xf32>
    %201 = vector.broadcast %18 : vector<1x32xf32> to vector<8x32xf32>
    %202 = arith.addf %200, %201 : vector<8x32xf32>
    %203 = arith.negf %180 : vector<8x32xf32>
    %204 = math.exp %203 : vector<8x32xf32>
    %cst_94 = arith.constant 1.000000e+00 : f32
    %205 = vector.broadcast %cst_94 : f32 to vector<8x32xf32>
    %206 = arith.addf %205, %204 : vector<8x32xf32>
    %207 = arith.divf %205, %206 : vector<8x32xf32>
    %208 = arith.negf %202 : vector<8x32xf32>
    %209 = math.exp %208 : vector<8x32xf32>
    %cst_95 = arith.constant 1.000000e+00 : f32
    %210 = vector.broadcast %cst_95 : f32 to vector<8x32xf32>
    %211 = arith.addf %210, %209 : vector<8x32xf32>
    %212 = arith.divf %210, %211 : vector<8x32xf32>
    %213 = arith.index_cast %c1_i32 : i32 to index
    %c0_96 = arith.constant 0 : index
    %c0_97 = arith.constant 0 : index
    %214 = vector.load %arg4[%213, %c0_96, %c0_97] : memref<8x8x32xf32, #tpu.memory_space<vmem>>, vector<1x8x32xf32>
    %215 = vector.shape_cast %214 : vector<1x8x32xf32> to vector<8x32xf32>
    %216 = arith.mulf %207, %150 : vector<8x32xf32>
    %217 = arith.addf %215, %216 : vector<8x32xf32>
    %cst_98 = arith.constant dense<0.000000e+00> : vector<8xf32>
    %218 = vector.multi_reduction <add>, %217, %cst_98 [1] : vector<8x32xf32> to vector<8xf32>
    %219 = vector.shape_cast %218 : vector<8xf32> to vector<8x1xf32>
    %cst_99 = arith.constant 3.125000e-02 : f32
    %220 = vector.broadcast %cst_99 : f32 to vector<8x1xf32>
    %221 = arith.mulf %219, %220 : vector<8x1xf32>
    %222 = arith.mulf %217, %217 : vector<8x32xf32>
    %cst_100 = arith.constant dense<0.000000e+00> : vector<8xf32>
    %223 = vector.multi_reduction <add>, %222, %cst_100 [1] : vector<8x32xf32> to vector<8xf32>
    %224 = vector.shape_cast %223 : vector<8xf32> to vector<8x1xf32>
    %cst_101 = arith.constant 3.125000e-02 : f32
    %225 = vector.broadcast %cst_101 : f32 to vector<8x1xf32>
    %226 = arith.mulf %224, %225 : vector<8x1xf32>
    %227 = arith.mulf %221, %221 : vector<8x1xf32>
    %228 = arith.subf %226, %227 : vector<8x1xf32>
    %229 = vector.broadcast %221 : vector<8x1xf32> to vector<8x32xf32>
    %230 = arith.subf %217, %229 : vector<8x32xf32>
    %cst_102 = arith.constant 9.99999974E-6 : f32
    %231 = vector.broadcast %cst_102 : f32 to vector<8x1xf32>
    %232 = arith.addf %228, %231 : vector<8x1xf32>
    %233 = math.rsqrt %232 : vector<8x1xf32>
    %234 = vector.broadcast %233 : vector<8x1xf32> to vector<8x32xf32>
    %235 = arith.mulf %230, %234 : vector<8x32xf32>
    %236 = vector.broadcast %14 : vector<1x32xf32> to vector<8x32xf32>
    %237 = arith.mulf %235, %236 : vector<8x32xf32>
    %238 = vector.broadcast %20 : vector<1x32xf32> to vector<8x32xf32>
    %239 = arith.addf %237, %238 : vector<8x32xf32>
    %240 = math.tanh %239 : vector<8x32xf32>
    %241 = arith.subf %135, %240 : vector<8x32xf32>
    %242 = arith.mulf %212, %241 : vector<8x32xf32>
    %243 = arith.addf %240, %242 : vector<8x32xf32>
    %c0_103 = arith.constant 0 : index
    %c0_104 = arith.constant 0 : index
    %244 = vector.load %arg11[%c0_103, %c0_104] : memref<8x32xf32, #tpu.memory_space<vmem>>, vector<8x32xf32>
    tpu.vector_store %arg11[%c0_103, %c0_104], %243 {strides = array<i32>} : memref<8x32xf32, #tpu.memory_space<vmem>>, vector<8x32xf32>,
    %245 = arith.index_cast %c1_i32 : i32 to index
    %c0_105 = arith.constant 0 : index
    %c0_106 = arith.constant 0 : index
    %246 = vector.load %arg10[%245, %c0_105, %c0_106] : memref<8x8x32xf32, #tpu.memory_space<vmem>>, vector<1x8x32xf32>
    %247 = vector.shape_cast %246 : vector<1x8x32xf32> to vector<8x32xf32>
    %248 = vector.shape_cast %243 : vector<8x32xf32> to vector<1x8x32xf32>
    tpu.vector_store %arg10[%245, %c0_105, %c0_106], %248 {strides = array<i32>} : memref<8x8x32xf32, #tpu.memory_space<vmem>>, vector<1x8x32xf32>,
    %c2_i32 = arith.constant 2 : i32
    %c0_107 = arith.constant 0 : index
    %c0_108 = arith.constant 0 : index
    %249 = vector.load %arg11[%c0_107, %c0_108] : memref<8x32xf32, #tpu.memory_space<vmem>>, vector<8x32xf32>
    %c0_109 = arith.constant 0 : index
    %c0_110 = arith.constant 0 : index
    %c0_111 = arith.constant 0 : index
    %250 = vector.load %arg6[%c0_109, %c0_110, %c0_111] : memref<3x32x32xf32, #tpu.memory_space<vmem>>, vector<1x32x32xf32>
    %251 = vector.shape_cast %250 : vector<1x32x32xf32> to vector<32x32xf32>
    %cst_112 = arith.constant dense<0.000000e+00> : vector<8x32xf32>
    %252 = tpu.matmul %249, %251, %cst_112 {dimension_numbers = #tpu.dot_dimension_numbers<[1], [0], [0], [1], [0, 0, 1, 1], [], []>} : vector<8x32xf32>, vector<32x32xf32>, vector<8x32xf32> -> vector<8x32xf32>
    %253 = vector.broadcast %4 : vector<1x32xf32> to vector<8x32xf32>
    %254 = arith.addf %252, %253 : vector<8x32xf32>
    %c1_113 = arith.constant 1 : index
    %c0_114 = arith.constant 0 : index
    %c0_115 = arith.constant 0 : index
    %255 = vector.load %arg6[%c1_113, %c0_114, %c0_115] : memref<3x32x32xf32, #tpu.memory_space<vmem>>, vector<1x32x32xf32>
    %256 = vector.shape_cast %255 : vector<1x32x32xf32> to vector<32x32xf32>
    %cst_116 = arith.constant dense<0.000000e+00> : vector<8x32xf32>
    %257 = tpu.matmul %249, %256, %cst_116 {dimension_numbers = #tpu.dot_dimension_numbers<[1], [0], [0], [1], [0, 0, 1, 1], [], []>} : vector<8x32xf32>, vector<32x32xf32>, vector<8x32xf32> -> vector<8x32xf32>
    %258 = vector.broadcast %6 : vector<1x32xf32> to vector<8x32xf32>
    %259 = arith.addf %257, %258 : vector<8x32xf32>
    %c2_117 = arith.constant 2 : index
    %c0_118 = arith.constant 0 : index
    %c0_119 = arith.constant 0 : index
    %260 = vector.load %arg6[%c2_117, %c0_118, %c0_119] : memref<3x32x32xf32, #tpu.memory_space<vmem>>, vector<1x32x32xf32>
    %261 = vector.shape_cast %260 : vector<1x32x32xf32> to vector<32x32xf32>
    %cst_120 = arith.constant dense<0.000000e+00> : vector<8x32xf32>
    %262 = tpu.matmul %249, %261, %cst_120 {dimension_numbers = #tpu.dot_dimension_numbers<[1], [0], [0], [1], [0, 0, 1, 1], [], []>} : vector<8x32xf32>, vector<32x32xf32>, vector<8x32xf32> -> vector<8x32xf32>
    %263 = vector.broadcast %8 : vector<1x32xf32> to vector<8x32xf32>
    %264 = arith.addf %262, %263 : vector<8x32xf32>
    %265 = arith.index_cast %c2_i32 : i32 to index
    %c0_121 = arith.constant 0 : index
    %c0_122 = arith.constant 0 : index
    %266 = vector.load %arg2[%265, %c0_121, %c0_122] : memref<8x8x32xf32, #tpu.memory_space<vmem>>, vector<1x8x32xf32>
    %267 = vector.shape_cast %266 : vector<1x8x32xf32> to vector<8x32xf32>
    %268 = arith.addf %267, %254 : vector<8x32xf32>
    %269 = arith.index_cast %c2_i32 : i32 to index
    %c0_123 = arith.constant 0 : index
    %c0_124 = arith.constant 0 : index
    %270 = vector.load %arg3[%269, %c0_123, %c0_124] : memref<8x8x32xf32, #tpu.memory_space<vmem>>, vector<1x8x32xf32>
    %271 = vector.shape_cast %270 : vector<1x8x32xf32> to vector<8x32xf32>
    %272 = arith.addf %271, %259 : vector<8x32xf32>
    %cst_125 = arith.constant dense<0.000000e+00> : vector<8xf32>
    %273 = vector.multi_reduction <add>, %268, %cst_125 [1] : vector<8x32xf32> to vector<8xf32>
    %274 = vector.shape_cast %273 : vector<8xf32> to vector<8x1xf32>
    %cst_126 = arith.constant 3.125000e-02 : f32
    %275 = vector.broadcast %cst_126 : f32 to vector<8x1xf32>
    %276 = arith.mulf %274, %275 : vector<8x1xf32>
    %277 = arith.mulf %268, %268 : vector<8x32xf32>
    %cst_127 = arith.constant dense<0.000000e+00> : vector<8xf32>
    %278 = vector.multi_reduction <add>, %277, %cst_127 [1] : vector<8x32xf32> to vector<8xf32>
    %279 = vector.shape_cast %278 : vector<8xf32> to vector<8x1xf32>
    %cst_128 = arith.constant 3.125000e-02 : f32
    %280 = vector.broadcast %cst_128 : f32 to vector<8x1xf32>
    %281 = arith.mulf %279, %280 : vector<8x1xf32>
    %282 = arith.mulf %276, %276 : vector<8x1xf32>
    %283 = arith.subf %281, %282 : vector<8x1xf32>
    %284 = vector.broadcast %276 : vector<8x1xf32> to vector<8x32xf32>
    %285 = arith.subf %268, %284 : vector<8x32xf32>
    %cst_129 = arith.constant 9.99999974E-6 : f32
    %286 = vector.broadcast %cst_129 : f32 to vector<8x1xf32>
    %287 = arith.addf %283, %286 : vector<8x1xf32>
    %288 = math.rsqrt %287 : vector<8x1xf32>
    %289 = vector.broadcast %288 : vector<8x1xf32> to vector<8x32xf32>
    %290 = arith.mulf %285, %289 : vector<8x32xf32>
    %291 = vector.broadcast %10 : vector<1x32xf32> to vector<8x32xf32>
    %292 = arith.mulf %290, %291 : vector<8x32xf32>
    %293 = vector.broadcast %16 : vector<1x32xf32> to vector<8x32xf32>
    %294 = arith.addf %292, %293 : vector<8x32xf32>
    %cst_130 = arith.constant dense<0.000000e+00> : vector<8xf32>
    %295 = vector.multi_reduction <add>, %272, %cst_130 [1] : vector<8x32xf32> to vector<8xf32>
    %296 = vector.shape_cast %295 : vector<8xf32> to vector<8x1xf32>
    %cst_131 = arith.constant 3.125000e-02 : f32
    %297 = vector.broadcast %cst_131 : f32 to vector<8x1xf32>
    %298 = arith.mulf %296, %297 : vector<8x1xf32>
    %299 = arith.mulf %272, %272 : vector<8x32xf32>
    %cst_132 = arith.constant dense<0.000000e+00> : vector<8xf32>
    %300 = vector.multi_reduction <add>, %299, %cst_132 [1] : vector<8x32xf32> to vector<8xf32>
    %301 = vector.shape_cast %300 : vector<8xf32> to vector<8x1xf32>
    %cst_133 = arith.constant 3.125000e-02 : f32
    %302 = vector.broadcast %cst_133 : f32 to vector<8x1xf32>
    %303 = arith.mulf %301, %302 : vector<8x1xf32>
    %304 = arith.mulf %298, %298 : vector<8x1xf32>
    %305 = arith.subf %303, %304 : vector<8x1xf32>
    %306 = vector.broadcast %298 : vector<8x1xf32> to vector<8x32xf32>
    %307 = arith.subf %272, %306 : vector<8x32xf32>
    %cst_134 = arith.constant 9.99999974E-6 : f32
    %308 = vector.broadcast %cst_134 : f32 to vector<8x1xf32>
    %309 = arith.addf %305, %308 : vector<8x1xf32>
    %310 = math.rsqrt %309 : vector<8x1xf32>
    %311 = vector.broadcast %310 : vector<8x1xf32> to vector<8x32xf32>
    %312 = arith.mulf %307, %311 : vector<8x32xf32>
    %313 = vector.broadcast %12 : vector<1x32xf32> to vector<8x32xf32>
    %314 = arith.mulf %312, %313 : vector<8x32xf32>
    %315 = vector.broadcast %18 : vector<1x32xf32> to vector<8x32xf32>
    %316 = arith.addf %314, %315 : vector<8x32xf32>
    %317 = arith.negf %294 : vector<8x32xf32>
    %318 = math.exp %317 : vector<8x32xf32>
    %cst_135 = arith.constant 1.000000e+00 : f32
    %319 = vector.broadcast %cst_135 : f32 to vector<8x32xf32>
    %320 = arith.addf %319, %318 : vector<8x32xf32>
    %321 = arith.divf %319, %320 : vector<8x32xf32>
    %322 = arith.negf %316 : vector<8x32xf32>
    %323 = math.exp %322 : vector<8x32xf32>
    %cst_136 = arith.constant 1.000000e+00 : f32
    %324 = vector.broadcast %cst_136 : f32 to vector<8x32xf32>
    %325 = arith.addf %324, %323 : vector<8x32xf32>
    %326 = arith.divf %324, %325 : vector<8x32xf32>
    %327 = arith.index_cast %c2_i32 : i32 to index
    %c0_137 = arith.constant 0 : index
    %c0_138 = arith.constant 0 : index
    %328 = vector.load %arg4[%327, %c0_137, %c0_138] : memref<8x8x32xf32, #tpu.memory_space<vmem>>, vector<1x8x32xf32>
    %329 = vector.shape_cast %328 : vector<1x8x32xf32> to vector<8x32xf32>
    %330 = arith.mulf %321, %264 : vector<8x32xf32>
    %331 = arith.addf %329, %330 : vector<8x32xf32>
    %cst_139 = arith.constant dense<0.000000e+00> : vector<8xf32>
    %332 = vector.multi_reduction <add>, %331, %cst_139 [1] : vector<8x32xf32> to vector<8xf32>
    %333 = vector.shape_cast %332 : vector<8xf32> to vector<8x1xf32>
    %cst_140 = arith.constant 3.125000e-02 : f32
    %334 = vector.broadcast %cst_140 : f32 to vector<8x1xf32>
    %335 = arith.mulf %333, %334 : vector<8x1xf32>
    %336 = arith.mulf %331, %331 : vector<8x32xf32>
    %cst_141 = arith.constant dense<0.000000e+00> : vector<8xf32>
    %337 = vector.multi_reduction <add>, %336, %cst_141 [1] : vector<8x32xf32> to vector<8xf32>
    %338 = vector.shape_cast %337 : vector<8xf32> to vector<8x1xf32>
    %cst_142 = arith.constant 3.125000e-02 : f32
    %339 = vector.broadcast %cst_142 : f32 to vector<8x1xf32>
    %340 = arith.mulf %338, %339 : vector<8x1xf32>
    %341 = arith.mulf %335, %335 : vector<8x1xf32>
    %342 = arith.subf %340, %341 : vector<8x1xf32>
    %343 = vector.broadcast %335 : vector<8x1xf32> to vector<8x32xf32>
    %344 = arith.subf %331, %343 : vector<8x32xf32>
    %cst_143 = arith.constant 9.99999974E-6 : f32
    %345 = vector.broadcast %cst_143 : f32 to vector<8x1xf32>
    %346 = arith.addf %342, %345 : vector<8x1xf32>
    %347 = math.rsqrt %346 : vector<8x1xf32>
    %348 = vector.broadcast %347 : vector<8x1xf32> to vector<8x32xf32>
    %349 = arith.mulf %344, %348 : vector<8x32xf32>
    %350 = vector.broadcast %14 : vector<1x32xf32> to vector<8x32xf32>
    %351 = arith.mulf %349, %350 : vector<8x32xf32>
    %352 = vector.broadcast %20 : vector<1x32xf32> to vector<8x32xf32>
    %353 = arith.addf %351, %352 : vector<8x32xf32>
    %354 = math.tanh %353 : vector<8x32xf32>
    %355 = arith.subf %249, %354 : vector<8x32xf32>
    %356 = arith.mulf %326, %355 : vector<8x32xf32>
    %357 = arith.addf %354, %356 : vector<8x32xf32>
    %c0_144 = arith.constant 0 : index
    %c0_145 = arith.constant 0 : index
    %358 = vector.load %arg11[%c0_144, %c0_145] : memref<8x32xf32, #tpu.memory_space<vmem>>, vector<8x32xf32>
    tpu.vector_store %arg11[%c0_144, %c0_145], %357 {strides = array<i32>} : memref<8x32xf32, #tpu.memory_space<vmem>>, vector<8x32xf32>,
    %359 = arith.index_cast %c2_i32 : i32 to index
    %c0_146 = arith.constant 0 : index
    %c0_147 = arith.constant 0 : index
    %360 = vector.load %arg10[%359, %c0_146, %c0_147] : memref<8x8x32xf32, #tpu.memory_space<vmem>>, vector<1x8x32xf32>
    %361 = vector.shape_cast %360 : vector<1x8x32xf32> to vector<8x32xf32>
    %362 = vector.shape_cast %357 : vector<8x32xf32> to vector<1x8x32xf32>
    tpu.vector_store %arg10[%359, %c0_146, %c0_147], %362 {strides = array<i32>} : memref<8x8x32xf32, #tpu.memory_space<vmem>>, vector<1x8x32xf32>,
    %c3_i32 = arith.constant 3 : i32
    %c0_148 = arith.constant 0 : index
    %c0_149 = arith.constant 0 : index
    %363 = vector.load %arg11[%c0_148, %c0_149] : memref<8x32xf32, #tpu.memory_space<vmem>>, vector<8x32xf32>
    %c0_150 = arith.constant 0 : index
    %c0_151 = arith.constant 0 : index
    %c0_152 = arith.constant 0 : index
    %364 = vector.load %arg6[%c0_150, %c0_151, %c0_152] : memref<3x32x32xf32, #tpu.memory_space<vmem>>, vector<1x32x32xf32>
    %365 = vector.shape_cast %364 : vector<1x32x32xf32> to vector<32x32xf32>
    %cst_153 = arith.constant dense<0.000000e+00> : vector<8x32xf32>
    %366 = tpu.matmul %363, %365, %cst_153 {dimension_numbers = #tpu.dot_dimension_numbers<[1], [0], [0], [1], [0, 0, 1, 1], [], []>} : vector<8x32xf32>, vector<32x32xf32>, vector<8x32xf32> -> vector<8x32xf32>
    %367 = vector.broadcast %4 : vector<1x32xf32> to vector<8x32xf32>
    %368 = arith.addf %366, %367 : vector<8x32xf32>
    %c1_154 = arith.constant 1 : index
    %c0_155 = arith.constant 0 : index
    %c0_156 = arith.constant 0 : index
    %369 = vector.load %arg6[%c1_154, %c0_155, %c0_156] : memref<3x32x32xf32, #tpu.memory_space<vmem>>, vector<1x32x32xf32>
    %370 = vector.shape_cast %369 : vector<1x32x32xf32> to vector<32x32xf32>
    %cst_157 = arith.constant dense<0.000000e+00> : vector<8x32xf32>
    %371 = tpu.matmul %363, %370, %cst_157 {dimension_numbers = #tpu.dot_dimension_numbers<[1], [0], [0], [1], [0, 0, 1, 1], [], []>} : vector<8x32xf32>, vector<32x32xf32>, vector<8x32xf32> -> vector<8x32xf32>
    %372 = vector.broadcast %6 : vector<1x32xf32> to vector<8x32xf32>
    %373 = arith.addf %371, %372 : vector<8x32xf32>
    %c2_158 = arith.constant 2 : index
    %c0_159 = arith.constant 0 : index
    %c0_160 = arith.constant 0 : index
    %374 = vector.load %arg6[%c2_158, %c0_159, %c0_160] : memref<3x32x32xf32, #tpu.memory_space<vmem>>, vector<1x32x32xf32>
    %375 = vector.shape_cast %374 : vector<1x32x32xf32> to vector<32x32xf32>
    %cst_161 = arith.constant dense<0.000000e+00> : vector<8x32xf32>
    %376 = tpu.matmul %363, %375, %cst_161 {dimension_numbers = #tpu.dot_dimension_numbers<[1], [0], [0], [1], [0, 0, 1, 1], [], []>} : vector<8x32xf32>, vector<32x32xf32>, vector<8x32xf32> -> vector<8x32xf32>
    %377 = vector.broadcast %8 : vector<1x32xf32> to vector<8x32xf32>
    %378 = arith.addf %376, %377 : vector<8x32xf32>
    %379 = arith.index_cast %c3_i32 : i32 to index
    %c0_162 = arith.constant 0 : index
    %c0_163 = arith.constant 0 : index
    %380 = vector.load %arg2[%379, %c0_162, %c0_163] : memref<8x8x32xf32, #tpu.memory_space<vmem>>, vector<1x8x32xf32>
    %381 = vector.shape_cast %380 : vector<1x8x32xf32> to vector<8x32xf32>
    %382 = arith.addf %381, %368 : vector<8x32xf32>
    %383 = arith.index_cast %c3_i32 : i32 to index
    %c0_164 = arith.constant 0 : index
    %c0_165 = arith.constant 0 : index
    %384 = vector.load %arg3[%383, %c0_164, %c0_165] : memref<8x8x32xf32, #tpu.memory_space<vmem>>, vector<1x8x32xf32>
    %385 = vector.shape_cast %384 : vector<1x8x32xf32> to vector<8x32xf32>
    %386 = arith.addf %385, %373 : vector<8x32xf32>
    %cst_166 = arith.constant dense<0.000000e+00> : vector<8xf32>
    %387 = vector.multi_reduction <add>, %382, %cst_166 [1] : vector<8x32xf32> to vector<8xf32>
    %388 = vector.shape_cast %387 : vector<8xf32> to vector<8x1xf32>
    %cst_167 = arith.constant 3.125000e-02 : f32
    %389 = vector.broadcast %cst_167 : f32 to vector<8x1xf32>
    %390 = arith.mulf %388, %389 : vector<8x1xf32>
    %391 = arith.mulf %382, %382 : vector<8x32xf32>
    %cst_168 = arith.constant dense<0.000000e+00> : vector<8xf32>
    %392 = vector.multi_reduction <add>, %391, %cst_168 [1] : vector<8x32xf32> to vector<8xf32>
    %393 = vector.shape_cast %392 : vector<8xf32> to vector<8x1xf32>
    %cst_169 = arith.constant 3.125000e-02 : f32
    %394 = vector.broadcast %cst_169 : f32 to vector<8x1xf32>
    %395 = arith.mulf %393, %394 : vector<8x1xf32>
    %396 = arith.mulf %390, %390 : vector<8x1xf32>
    %397 = arith.subf %395, %396 : vector<8x1xf32>
    %398 = vector.broadcast %390 : vector<8x1xf32> to vector<8x32xf32>
    %399 = arith.subf %382, %398 : vector<8x32xf32>
    %cst_170 = arith.constant 9.99999974E-6 : f32
    %400 = vector.broadcast %cst_170 : f32 to vector<8x1xf32>
    %401 = arith.addf %397, %400 : vector<8x1xf32>
    %402 = math.rsqrt %401 : vector<8x1xf32>
    %403 = vector.broadcast %402 : vector<8x1xf32> to vector<8x32xf32>
    %404 = arith.mulf %399, %403 : vector<8x32xf32>
    %405 = vector.broadcast %10 : vector<1x32xf32> to vector<8x32xf32>
    %406 = arith.mulf %404, %405 : vector<8x32xf32>
    %407 = vector.broadcast %16 : vector<1x32xf32> to vector<8x32xf32>
    %408 = arith.addf %406, %407 : vector<8x32xf32>
    %cst_171 = arith.constant dense<0.000000e+00> : vector<8xf32>
    %409 = vector.multi_reduction <add>, %386, %cst_171 [1] : vector<8x32xf32> to vector<8xf32>
    %410 = vector.shape_cast %409 : vector<8xf32> to vector<8x1xf32>
    %cst_172 = arith.constant 3.125000e-02 : f32
    %411 = vector.broadcast %cst_172 : f32 to vector<8x1xf32>
    %412 = arith.mulf %410, %411 : vector<8x1xf32>
    %413 = arith.mulf %386, %386 : vector<8x32xf32>
    %cst_173 = arith.constant dense<0.000000e+00> : vector<8xf32>
    %414 = vector.multi_reduction <add>, %413, %cst_173 [1] : vector<8x32xf32> to vector<8xf32>
    %415 = vector.shape_cast %414 : vector<8xf32> to vector<8x1xf32>
    %cst_174 = arith.constant 3.125000e-02 : f32
    %416 = vector.broadcast %cst_174 : f32 to vector<8x1xf32>
    %417 = arith.mulf %415, %416 : vector<8x1xf32>
    %418 = arith.mulf %412, %412 : vector<8x1xf32>
    %419 = arith.subf %417, %418 : vector<8x1xf32>
    %420 = vector.broadcast %412 : vector<8x1xf32> to vector<8x32xf32>
    %421 = arith.subf %386, %420 : vector<8x32xf32>
    %cst_175 = arith.constant 9.99999974E-6 : f32
    %422 = vector.broadcast %cst_175 : f32 to vector<8x1xf32>
    %423 = arith.addf %419, %422 : vector<8x1xf32>
    %424 = math.rsqrt %423 : vector<8x1xf32>
    %425 = vector.broadcast %424 : vector<8x1xf32> to vector<8x32xf32>
    %426 = arith.mulf %421, %425 : vector<8x32xf32>
    %427 = vector.broadcast %12 : vector<1x32xf32> to vector<8x32xf32>
    %428 = arith.mulf %426, %427 : vector<8x32xf32>
    %429 = vector.broadcast %18 : vector<1x32xf32> to vector<8x32xf32>
    %430 = arith.addf %428, %429 : vector<8x32xf32>
    %431 = arith.negf %408 : vector<8x32xf32>
    %432 = math.exp %431 : vector<8x32xf32>
    %cst_176 = arith.constant 1.000000e+00 : f32
    %433 = vector.broadcast %cst_176 : f32 to vector<8x32xf32>
    %434 = arith.addf %433, %432 : vector<8x32xf32>
    %435 = arith.divf %433, %434 : vector<8x32xf32>
    %436 = arith.negf %430 : vector<8x32xf32>
    %437 = math.exp %436 : vector<8x32xf32>
    %cst_177 = arith.constant 1.000000e+00 : f32
    %438 = vector.broadcast %cst_177 : f32 to vector<8x32xf32>
    %439 = arith.addf %438, %437 : vector<8x32xf32>
    %440 = arith.divf %438, %439 : vector<8x32xf32>
    %441 = arith.index_cast %c3_i32 : i32 to index
    %c0_178 = arith.constant 0 : index
    %c0_179 = arith.constant 0 : index
    %442 = vector.load %arg4[%441, %c0_178, %c0_179] : memref<8x8x32xf32, #tpu.memory_space<vmem>>, vector<1x8x32xf32>
    %443 = vector.shape_cast %442 : vector<1x8x32xf32> to vector<8x32xf32>
    %444 = arith.mulf %435, %378 : vector<8x32xf32>
    %445 = arith.addf %443, %444 : vector<8x32xf32>
    %cst_180 = arith.constant dense<0.000000e+00> : vector<8xf32>
    %446 = vector.multi_reduction <add>, %445, %cst_180 [1] : vector<8x32xf32> to vector<8xf32>
    %447 = vector.shape_cast %446 : vector<8xf32> to vector<8x1xf32>
    %cst_181 = arith.constant 3.125000e-02 : f32
    %448 = vector.broadcast %cst_181 : f32 to vector<8x1xf32>
    %449 = arith.mulf %447, %448 : vector<8x1xf32>
    %450 = arith.mulf %445, %445 : vector<8x32xf32>
    %cst_182 = arith.constant dense<0.000000e+00> : vector<8xf32>
    %451 = vector.multi_reduction <add>, %450, %cst_182 [1] : vector<8x32xf32> to vector<8xf32>
    %452 = vector.shape_cast %451 : vector<8xf32> to vector<8x1xf32>
    %cst_183 = arith.constant 3.125000e-02 : f32
    %453 = vector.broadcast %cst_183 : f32 to vector<8x1xf32>
    %454 = arith.mulf %452, %453 : vector<8x1xf32>
    %455 = arith.mulf %449, %449 : vector<8x1xf32>
    %456 = arith.subf %454, %455 : vector<8x1xf32>
    %457 = vector.broadcast %449 : vector<8x1xf32> to vector<8x32xf32>
    %458 = arith.subf %445, %457 : vector<8x32xf32>
    %cst_184 = arith.constant 9.99999974E-6 : f32
    %459 = vector.broadcast %cst_184 : f32 to vector<8x1xf32>
    %460 = arith.addf %456, %459 : vector<8x1xf32>
    %461 = math.rsqrt %460 : vector<8x1xf32>
    %462 = vector.broadcast %461 : vector<8x1xf32> to vector<8x32xf32>
    %463 = arith.mulf %458, %462 : vector<8x32xf32>
    %464 = vector.broadcast %14 : vector<1x32xf32> to vector<8x32xf32>
    %465 = arith.mulf %463, %464 : vector<8x32xf32>
    %466 = vector.broadcast %20 : vector<1x32xf32> to vector<8x32xf32>
    %467 = arith.addf %465, %466 : vector<8x32xf32>
    %468 = math.tanh %467 : vector<8x32xf32>
    %469 = arith.subf %363, %468 : vector<8x32xf32>
    %470 = arith.mulf %440, %469 : vector<8x32xf32>
    %471 = arith.addf %468, %470 : vector<8x32xf32>
    %c0_185 = arith.constant 0 : index
    %c0_186 = arith.constant 0 : index
    %472 = vector.load %arg11[%c0_185, %c0_186] : memref<8x32xf32, #tpu.memory_space<vmem>>, vector<8x32xf32>
    tpu.vector_store %arg11[%c0_185, %c0_186], %471 {strides = array<i32>} : memref<8x32xf32, #tpu.memory_space<vmem>>, vector<8x32xf32>,
    %473 = arith.index_cast %c3_i32 : i32 to index
    %c0_187 = arith.constant 0 : index
    %c0_188 = arith.constant 0 : index
    %474 = vector.load %arg10[%473, %c0_187, %c0_188] : memref<8x8x32xf32, #tpu.memory_space<vmem>>, vector<1x8x32xf32>
    %475 = vector.shape_cast %474 : vector<1x8x32xf32> to vector<8x32xf32>
    %476 = vector.shape_cast %471 : vector<8x32xf32> to vector<1x8x32xf32>
    tpu.vector_store %arg10[%473, %c0_187, %c0_188], %476 {strides = array<i32>} : memref<8x8x32xf32, #tpu.memory_space<vmem>>, vector<1x8x32xf32>,
    %c4_i32 = arith.constant 4 : i32
    %c0_189 = arith.constant 0 : index
    %c0_190 = arith.constant 0 : index
    %477 = vector.load %arg11[%c0_189, %c0_190] : memref<8x32xf32, #tpu.memory_space<vmem>>, vector<8x32xf32>
    %c0_191 = arith.constant 0 : index
    %c0_192 = arith.constant 0 : index
    %c0_193 = arith.constant 0 : index
    %478 = vector.load %arg6[%c0_191, %c0_192, %c0_193] : memref<3x32x32xf32, #tpu.memory_space<vmem>>, vector<1x32x32xf32>
    %479 = vector.shape_cast %478 : vector<1x32x32xf32> to vector<32x32xf32>
    %cst_194 = arith.constant dense<0.000000e+00> : vector<8x32xf32>
    %480 = tpu.matmul %477, %479, %cst_194 {dimension_numbers = #tpu.dot_dimension_numbers<[1], [0], [0], [1], [0, 0, 1, 1], [], []>} : vector<8x32xf32>, vector<32x32xf32>, vector<8x32xf32> -> vector<8x32xf32>
    %481 = vector.broadcast %4 : vector<1x32xf32> to vector<8x32xf32>
    %482 = arith.addf %480, %481 : vector<8x32xf32>
    %c1_195 = arith.constant 1 : index
    %c0_196 = arith.constant 0 : index
    %c0_197 = arith.constant 0 : index
    %483 = vector.load %arg6[%c1_195, %c0_196, %c0_197] : memref<3x32x32xf32, #tpu.memory_space<vmem>>, vector<1x32x32xf32>
    %484 = vector.shape_cast %483 : vector<1x32x32xf32> to vector<32x32xf32>
    %cst_198 = arith.constant dense<0.000000e+00> : vector<8x32xf32>
    %485 = tpu.matmul %477, %484, %cst_198 {dimension_numbers = #tpu.dot_dimension_numbers<[1], [0], [0], [1], [0, 0, 1, 1], [], []>} : vector<8x32xf32>, vector<32x32xf32>, vector<8x32xf32> -> vector<8x32xf32>
    %486 = vector.broadcast %6 : vector<1x32xf32> to vector<8x32xf32>
    %487 = arith.addf %485, %486 : vector<8x32xf32>
    %c2_199 = arith.constant 2 : index
    %c0_200 = arith.constant 0 : index
    %c0_201 = arith.constant 0 : index
    %488 = vector.load %arg6[%c2_199, %c0_200, %c0_201] : memref<3x32x32xf32, #tpu.memory_space<vmem>>, vector<1x32x32xf32>
    %489 = vector.shape_cast %488 : vector<1x32x32xf32> to vector<32x32xf32>
    %cst_202 = arith.constant dense<0.000000e+00> : vector<8x32xf32>
    %490 = tpu.matmul %477, %489, %cst_202 {dimension_numbers = #tpu.dot_dimension_numbers<[1], [0], [0], [1], [0, 0, 1, 1], [], []>} : vector<8x32xf32>, vector<32x32xf32>, vector<8x32xf32> -> vector<8x32xf32>
    %491 = vector.broadcast %8 : vector<1x32xf32> to vector<8x32xf32>
    %492 = arith.addf %490, %491 : vector<8x32xf32>
    %493 = arith.index_cast %c4_i32 : i32 to index
    %c0_203 = arith.constant 0 : index
    %c0_204 = arith.constant 0 : index
    %494 = vector.load %arg2[%493, %c0_203, %c0_204] : memref<8x8x32xf32, #tpu.memory_space<vmem>>, vector<1x8x32xf32>
    %495 = vector.shape_cast %494 : vector<1x8x32xf32> to vector<8x32xf32>
    %496 = arith.addf %495, %482 : vector<8x32xf32>
    %497 = arith.index_cast %c4_i32 : i32 to index
    %c0_205 = arith.constant 0 : index
    %c0_206 = arith.constant 0 : index
    %498 = vector.load %arg3[%497, %c0_205, %c0_206] : memref<8x8x32xf32, #tpu.memory_space<vmem>>, vector<1x8x32xf32>
    %499 = vector.shape_cast %498 : vector<1x8x32xf32> to vector<8x32xf32>
    %500 = arith.addf %499, %487 : vector<8x32xf32>
    %cst_207 = arith.constant dense<0.000000e+00> : vector<8xf32>
    %501 = vector.multi_reduction <add>, %496, %cst_207 [1] : vector<8x32xf32> to vector<8xf32>
    %502 = vector.shape_cast %501 : vector<8xf32> to vector<8x1xf32>
    %cst_208 = arith.constant 3.125000e-02 : f32
    %503 = vector.broadcast %cst_208 : f32 to vector<8x1xf32>
    %504 = arith.mulf %502, %503 : vector<8x1xf32>
    %505 = arith.mulf %496, %496 : vector<8x32xf32>
    %cst_209 = arith.constant dense<0.000000e+00> : vector<8xf32>
    %506 = vector.multi_reduction <add>, %505, %cst_209 [1] : vector<8x32xf32> to vector<8xf32>
    %507 = vector.shape_cast %506 : vector<8xf32> to vector<8x1xf32>
    %cst_210 = arith.constant 3.125000e-02 : f32
    %508 = vector.broadcast %cst_210 : f32 to vector<8x1xf32>
    %509 = arith.mulf %507, %508 : vector<8x1xf32>
    %510 = arith.mulf %504, %504 : vector<8x1xf32>
    %511 = arith.subf %509, %510 : vector<8x1xf32>
    %512 = vector.broadcast %504 : vector<8x1xf32> to vector<8x32xf32>
    %513 = arith.subf %496, %512 : vector<8x32xf32>
    %cst_211 = arith.constant 9.99999974E-6 : f32
    %514 = vector.broadcast %cst_211 : f32 to vector<8x1xf32>
    %515 = arith.addf %511, %514 : vector<8x1xf32>
    %516 = math.rsqrt %515 : vector<8x1xf32>
    %517 = vector.broadcast %516 : vector<8x1xf32> to vector<8x32xf32>
    %518 = arith.mulf %513, %517 : vector<8x32xf32>
    %519 = vector.broadcast %10 : vector<1x32xf32> to vector<8x32xf32>
    %520 = arith.mulf %518, %519 : vector<8x32xf32>
    %521 = vector.broadcast %16 : vector<1x32xf32> to vector<8x32xf32>
    %522 = arith.addf %520, %521 : vector<8x32xf32>
    %cst_212 = arith.constant dense<0.000000e+00> : vector<8xf32>
    %523 = vector.multi_reduction <add>, %500, %cst_212 [1] : vector<8x32xf32> to vector<8xf32>
    %524 = vector.shape_cast %523 : vector<8xf32> to vector<8x1xf32>
    %cst_213 = arith.constant 3.125000e-02 : f32
    %525 = vector.broadcast %cst_213 : f32 to vector<8x1xf32>
    %526 = arith.mulf %524, %525 : vector<8x1xf32>
    %527 = arith.mulf %500, %500 : vector<8x32xf32>
    %cst_214 = arith.constant dense<0.000000e+00> : vector<8xf32>
    %528 = vector.multi_reduction <add>, %527, %cst_214 [1] : vector<8x32xf32> to vector<8xf32>
    %529 = vector.shape_cast %528 : vector<8xf32> to vector<8x1xf32>
    %cst_215 = arith.constant 3.125000e-02 : f32
    %530 = vector.broadcast %cst_215 : f32 to vector<8x1xf32>
    %531 = arith.mulf %529, %530 : vector<8x1xf32>
    %532 = arith.mulf %526, %526 : vector<8x1xf32>
    %533 = arith.subf %531, %532 : vector<8x1xf32>
    %534 = vector.broadcast %526 : vector<8x1xf32> to vector<8x32xf32>
    %535 = arith.subf %500, %534 : vector<8x32xf32>
    %cst_216 = arith.constant 9.99999974E-6 : f32
    %536 = vector.broadcast %cst_216 : f32 to vector<8x1xf32>
    %537 = arith.addf %533, %536 : vector<8x1xf32>
    %538 = math.rsqrt %537 : vector<8x1xf32>
    %539 = vector.broadcast %538 : vector<8x1xf32> to vector<8x32xf32>
    %540 = arith.mulf %535, %539 : vector<8x32xf32>
    %541 = vector.broadcast %12 : vector<1x32xf32> to vector<8x32xf32>
    %542 = arith.mulf %540, %541 : vector<8x32xf32>
    %543 = vector.broadcast %18 : vector<1x32xf32> to vector<8x32xf32>
    %544 = arith.addf %542, %543 : vector<8x32xf32>
    %545 = arith.negf %522 : vector<8x32xf32>
    %546 = math.exp %545 : vector<8x32xf32>
    %cst_217 = arith.constant 1.000000e+00 : f32
    %547 = vector.broadcast %cst_217 : f32 to vector<8x32xf32>
    %548 = arith.addf %547, %546 : vector<8x32xf32>
    %549 = arith.divf %547, %548 : vector<8x32xf32>
    %550 = arith.negf %544 : vector<8x32xf32>
    %551 = math.exp %550 : vector<8x32xf32>
    %cst_218 = arith.constant 1.000000e+00 : f32
    %552 = vector.broadcast %cst_218 : f32 to vector<8x32xf32>
    %553 = arith.addf %552, %551 : vector<8x32xf32>
    %554 = arith.divf %552, %553 : vector<8x32xf32>
    %555 = arith.index_cast %c4_i32 : i32 to index
    %c0_219 = arith.constant 0 : index
    %c0_220 = arith.constant 0 : index
    %556 = vector.load %arg4[%555, %c0_219, %c0_220] : memref<8x8x32xf32, #tpu.memory_space<vmem>>, vector<1x8x32xf32>
    %557 = vector.shape_cast %556 : vector<1x8x32xf32> to vector<8x32xf32>
    %558 = arith.mulf %549, %492 : vector<8x32xf32>
    %559 = arith.addf %557, %558 : vector<8x32xf32>
    %cst_221 = arith.constant dense<0.000000e+00> : vector<8xf32>
    %560 = vector.multi_reduction <add>, %559, %cst_221 [1] : vector<8x32xf32> to vector<8xf32>
    %561 = vector.shape_cast %560 : vector<8xf32> to vector<8x1xf32>
    %cst_222 = arith.constant 3.125000e-02 : f32
    %562 = vector.broadcast %cst_222 : f32 to vector<8x1xf32>
    %563 = arith.mulf %561, %562 : vector<8x1xf32>
    %564 = arith.mulf %559, %559 : vector<8x32xf32>
    %cst_223 = arith.constant dense<0.000000e+00> : vector<8xf32>
    %565 = vector.multi_reduction <add>, %564, %cst_223 [1] : vector<8x32xf32> to vector<8xf32>
    %566 = vector.shape_cast %565 : vector<8xf32> to vector<8x1xf32>
    %cst_224 = arith.constant 3.125000e-02 : f32
    %567 = vector.broadcast %cst_224 : f32 to vector<8x1xf32>
    %568 = arith.mulf %566, %567 : vector<8x1xf32>
    %569 = arith.mulf %563, %563 : vector<8x1xf32>
    %570 = arith.subf %568, %569 : vector<8x1xf32>
    %571 = vector.broadcast %563 : vector<8x1xf32> to vector<8x32xf32>
    %572 = arith.subf %559, %571 : vector<8x32xf32>
    %cst_225 = arith.constant 9.99999974E-6 : f32
    %573 = vector.broadcast %cst_225 : f32 to vector<8x1xf32>
    %574 = arith.addf %570, %573 : vector<8x1xf32>
    %575 = math.rsqrt %574 : vector<8x1xf32>
    %576 = vector.broadcast %575 : vector<8x1xf32> to vector<8x32xf32>
    %577 = arith.mulf %572, %576 : vector<8x32xf32>
    %578 = vector.broadcast %14 : vector<1x32xf32> to vector<8x32xf32>
    %579 = arith.mulf %577, %578 : vector<8x32xf32>
    %580 = vector.broadcast %20 : vector<1x32xf32> to vector<8x32xf32>
    %581 = arith.addf %579, %580 : vector<8x32xf32>
    %582 = math.tanh %581 : vector<8x32xf32>
    %583 = arith.subf %477, %582 : vector<8x32xf32>
    %584 = arith.mulf %554, %583 : vector<8x32xf32>
    %585 = arith.addf %582, %584 : vector<8x32xf32>
    %c0_226 = arith.constant 0 : index
    %c0_227 = arith.constant 0 : index
    %586 = vector.load %arg11[%c0_226, %c0_227] : memref<8x32xf32, #tpu.memory_space<vmem>>, vector<8x32xf32>
    tpu.vector_store %arg11[%c0_226, %c0_227], %585 {strides = array<i32>} : memref<8x32xf32, #tpu.memory_space<vmem>>, vector<8x32xf32>,
    %587 = arith.index_cast %c4_i32 : i32 to index
    %c0_228 = arith.constant 0 : index
    %c0_229 = arith.constant 0 : index
    %588 = vector.load %arg10[%587, %c0_228, %c0_229] : memref<8x8x32xf32, #tpu.memory_space<vmem>>, vector<1x8x32xf32>
    %589 = vector.shape_cast %588 : vector<1x8x32xf32> to vector<8x32xf32>
    %590 = vector.shape_cast %585 : vector<8x32xf32> to vector<1x8x32xf32>
    tpu.vector_store %arg10[%587, %c0_228, %c0_229], %590 {strides = array<i32>} : memref<8x8x32xf32, #tpu.memory_space<vmem>>, vector<1x8x32xf32>,
    %c5_i32 = arith.constant 5 : i32
    %c0_230 = arith.constant 0 : index
    %c0_231 = arith.constant 0 : index
    %591 = vector.load %arg11[%c0_230, %c0_231] : memref<8x32xf32, #tpu.memory_space<vmem>>, vector<8x32xf32>
    %c0_232 = arith.constant 0 : index
    %c0_233 = arith.constant 0 : index
    %c0_234 = arith.constant 0 : index
    %592 = vector.load %arg6[%c0_232, %c0_233, %c0_234] : memref<3x32x32xf32, #tpu.memory_space<vmem>>, vector<1x32x32xf32>
    %593 = vector.shape_cast %592 : vector<1x32x32xf32> to vector<32x32xf32>
    %cst_235 = arith.constant dense<0.000000e+00> : vector<8x32xf32>
    %594 = tpu.matmul %591, %593, %cst_235 {dimension_numbers = #tpu.dot_dimension_numbers<[1], [0], [0], [1], [0, 0, 1, 1], [], []>} : vector<8x32xf32>, vector<32x32xf32>, vector<8x32xf32> -> vector<8x32xf32>
    %595 = vector.broadcast %4 : vector<1x32xf32> to vector<8x32xf32>
    %596 = arith.addf %594, %595 : vector<8x32xf32>
    %c1_236 = arith.constant 1 : index
    %c0_237 = arith.constant 0 : index
    %c0_238 = arith.constant 0 : index
    %597 = vector.load %arg6[%c1_236, %c0_237, %c0_238] : memref<3x32x32xf32, #tpu.memory_space<vmem>>, vector<1x32x32xf32>
    %598 = vector.shape_cast %597 : vector<1x32x32xf32> to vector<32x32xf32>
    %cst_239 = arith.constant dense<0.000000e+00> : vector<8x32xf32>
    %599 = tpu.matmul %591, %598, %cst_239 {dimension_numbers = #tpu.dot_dimension_numbers<[1], [0], [0], [1], [0, 0, 1, 1], [], []>} : vector<8x32xf32>, vector<32x32xf32>, vector<8x32xf32> -> vector<8x32xf32>
    %600 = vector.broadcast %6 : vector<1x32xf32> to vector<8x32xf32>
    %601 = arith.addf %599, %600 : vector<8x32xf32>
    %c2_240 = arith.constant 2 : index
    %c0_241 = arith.constant 0 : index
    %c0_242 = arith.constant 0 : index
    %602 = vector.load %arg6[%c2_240, %c0_241, %c0_242] : memref<3x32x32xf32, #tpu.memory_space<vmem>>, vector<1x32x32xf32>
    %603 = vector.shape_cast %602 : vector<1x32x32xf32> to vector<32x32xf32>
    %cst_243 = arith.constant dense<0.000000e+00> : vector<8x32xf32>
    %604 = tpu.matmul %591, %603, %cst_243 {dimension_numbers = #tpu.dot_dimension_numbers<[1], [0], [0], [1], [0, 0, 1, 1], [], []>} : vector<8x32xf32>, vector<32x32xf32>, vector<8x32xf32> -> vector<8x32xf32>
    %605 = vector.broadcast %8 : vector<1x32xf32> to vector<8x32xf32>
    %606 = arith.addf %604, %605 : vector<8x32xf32>
    %607 = arith.index_cast %c5_i32 : i32 to index
    %c0_244 = arith.constant 0 : index
    %c0_245 = arith.constant 0 : index
    %608 = vector.load %arg2[%607, %c0_244, %c0_245] : memref<8x8x32xf32, #tpu.memory_space<vmem>>, vector<1x8x32xf32>
    %609 = vector.shape_cast %608 : vector<1x8x32xf32> to vector<8x32xf32>
    %610 = arith.addf %609, %596 : vector<8x32xf32>
    %611 = arith.index_cast %c5_i32 : i32 to index
    %c0_246 = arith.constant 0 : index
    %c0_247 = arith.constant 0 : index
    %612 = vector.load %arg3[%611, %c0_246, %c0_247] : memref<8x8x32xf32, #tpu.memory_space<vmem>>, vector<1x8x32xf32>
    %613 = vector.shape_cast %612 : vector<1x8x32xf32> to vector<8x32xf32>
    %614 = arith.addf %613, %601 : vector<8x32xf32>
    %cst_248 = arith.constant dense<0.000000e+00> : vector<8xf32>
    %615 = vector.multi_reduction <add>, %610, %cst_248 [1] : vector<8x32xf32> to vector<8xf32>
    %616 = vector.shape_cast %615 : vector<8xf32> to vector<8x1xf32>
    %cst_249 = arith.constant 3.125000e-02 : f32
    %617 = vector.broadcast %cst_249 : f32 to vector<8x1xf32>
    %618 = arith.mulf %616, %617 : vector<8x1xf32>
    %619 = arith.mulf %610, %610 : vector<8x32xf32>
    %cst_250 = arith.constant dense<0.000000e+00> : vector<8xf32>
    %620 = vector.multi_reduction <add>, %619, %cst_250 [1] : vector<8x32xf32> to vector<8xf32>
    %621 = vector.shape_cast %620 : vector<8xf32> to vector<8x1xf32>
    %cst_251 = arith.constant 3.125000e-02 : f32
    %622 = vector.broadcast %cst_251 : f32 to vector<8x1xf32>
    %623 = arith.mulf %621, %622 : vector<8x1xf32>
    %624 = arith.mulf %618, %618 : vector<8x1xf32>
    %625 = arith.subf %623, %624 : vector<8x1xf32>
    %626 = vector.broadcast %618 : vector<8x1xf32> to vector<8x32xf32>
    %627 = arith.subf %610, %626 : vector<8x32xf32>
    %cst_252 = arith.constant 9.99999974E-6 : f32
    %628 = vector.broadcast %cst_252 : f32 to vector<8x1xf32>
    %629 = arith.addf %625, %628 : vector<8x1xf32>
    %630 = math.rsqrt %629 : vector<8x1xf32>
    %631 = vector.broadcast %630 : vector<8x1xf32> to vector<8x32xf32>
    %632 = arith.mulf %627, %631 : vector<8x32xf32>
    %633 = vector.broadcast %10 : vector<1x32xf32> to vector<8x32xf32>
    %634 = arith.mulf %632, %633 : vector<8x32xf32>
    %635 = vector.broadcast %16 : vector<1x32xf32> to vector<8x32xf32>
    %636 = arith.addf %634, %635 : vector<8x32xf32>
    %cst_253 = arith.constant dense<0.000000e+00> : vector<8xf32>
    %637 = vector.multi_reduction <add>, %614, %cst_253 [1] : vector<8x32xf32> to vector<8xf32>
    %638 = vector.shape_cast %637 : vector<8xf32> to vector<8x1xf32>
    %cst_254 = arith.constant 3.125000e-02 : f32
    %639 = vector.broadcast %cst_254 : f32 to vector<8x1xf32>
    %640 = arith.mulf %638, %639 : vector<8x1xf32>
    %641 = arith.mulf %614, %614 : vector<8x32xf32>
    %cst_255 = arith.constant dense<0.000000e+00> : vector<8xf32>
    %642 = vector.multi_reduction <add>, %641, %cst_255 [1] : vector<8x32xf32> to vector<8xf32>
    %643 = vector.shape_cast %642 : vector<8xf32> to vector<8x1xf32>
    %cst_256 = arith.constant 3.125000e-02 : f32
    %644 = vector.broadcast %cst_256 : f32 to vector<8x1xf32>
    %645 = arith.mulf %643, %644 : vector<8x1xf32>
    %646 = arith.mulf %640, %640 : vector<8x1xf32>
    %647 = arith.subf %645, %646 : vector<8x1xf32>
    %648 = vector.broadcast %640 : vector<8x1xf32> to vector<8x32xf32>
    %649 = arith.subf %614, %648 : vector<8x32xf32>
    %cst_257 = arith.constant 9.99999974E-6 : f32
    %650 = vector.broadcast %cst_257 : f32 to vector<8x1xf32>
    %651 = arith.addf %647, %650 : vector<8x1xf32>
    %652 = math.rsqrt %651 : vector<8x1xf32>
    %653 = vector.broadcast %652 : vector<8x1xf32> to vector<8x32xf32>
    %654 = arith.mulf %649, %653 : vector<8x32xf32>
    %655 = vector.broadcast %12 : vector<1x32xf32> to vector<8x32xf32>
    %656 = arith.mulf %654, %655 : vector<8x32xf32>
    %657 = vector.broadcast %18 : vector<1x32xf32> to vector<8x32xf32>
    %658 = arith.addf %656, %657 : vector<8x32xf32>
    %659 = arith.negf %636 : vector<8x32xf32>
    %660 = math.exp %659 : vector<8x32xf32>
    %cst_258 = arith.constant 1.000000e+00 : f32
    %661 = vector.broadcast %cst_258 : f32 to vector<8x32xf32>
    %662 = arith.addf %661, %660 : vector<8x32xf32>
    %663 = arith.divf %661, %662 : vector<8x32xf32>
    %664 = arith.negf %658 : vector<8x32xf32>
    %665 = math.exp %664 : vector<8x32xf32>
    %cst_259 = arith.constant 1.000000e+00 : f32
    %666 = vector.broadcast %cst_259 : f32 to vector<8x32xf32>
    %667 = arith.addf %666, %665 : vector<8x32xf32>
    %668 = arith.divf %666, %667 : vector<8x32xf32>
    %669 = arith.index_cast %c5_i32 : i32 to index
    %c0_260 = arith.constant 0 : index
    %c0_261 = arith.constant 0 : index
    %670 = vector.load %arg4[%669, %c0_260, %c0_261] : memref<8x8x32xf32, #tpu.memory_space<vmem>>, vector<1x8x32xf32>
    %671 = vector.shape_cast %670 : vector<1x8x32xf32> to vector<8x32xf32>
    %672 = arith.mulf %663, %606 : vector<8x32xf32>
    %673 = arith.addf %671, %672 : vector<8x32xf32>
    %cst_262 = arith.constant dense<0.000000e+00> : vector<8xf32>
    %674 = vector.multi_reduction <add>, %673, %cst_262 [1] : vector<8x32xf32> to vector<8xf32>
    %675 = vector.shape_cast %674 : vector<8xf32> to vector<8x1xf32>
    %cst_263 = arith.constant 3.125000e-02 : f32
    %676 = vector.broadcast %cst_263 : f32 to vector<8x1xf32>
    %677 = arith.mulf %675, %676 : vector<8x1xf32>
    %678 = arith.mulf %673, %673 : vector<8x32xf32>
    %cst_264 = arith.constant dense<0.000000e+00> : vector<8xf32>
    %679 = vector.multi_reduction <add>, %678, %cst_264 [1] : vector<8x32xf32> to vector<8xf32>
    %680 = vector.shape_cast %679 : vector<8xf32> to vector<8x1xf32>
    %cst_265 = arith.constant 3.125000e-02 : f32
    %681 = vector.broadcast %cst_265 : f32 to vector<8x1xf32>
    %682 = arith.mulf %680, %681 : vector<8x1xf32>
    %683 = arith.mulf %677, %677 : vector<8x1xf32>
    %684 = arith.subf %682, %683 : vector<8x1xf32>
    %685 = vector.broadcast %677 : vector<8x1xf32> to vector<8x32xf32>
    %686 = arith.subf %673, %685 : vector<8x32xf32>
    %cst_266 = arith.constant 9.99999974E-6 : f32
    %687 = vector.broadcast %cst_266 : f32 to vector<8x1xf32>
    %688 = arith.addf %684, %687 : vector<8x1xf32>
    %689 = math.rsqrt %688 : vector<8x1xf32>
    %690 = vector.broadcast %689 : vector<8x1xf32> to vector<8x32xf32>
    %691 = arith.mulf %686, %690 : vector<8x32xf32>
    %692 = vector.broadcast %14 : vector<1x32xf32> to vector<8x32xf32>
    %693 = arith.mulf %691, %692 : vector<8x32xf32>
    %694 = vector.broadcast %20 : vector<1x32xf32> to vector<8x32xf32>
    %695 = arith.addf %693, %694 : vector<8x32xf32>
    %696 = math.tanh %695 : vector<8x32xf32>
    %697 = arith.subf %591, %696 : vector<8x32xf32>
    %698 = arith.mulf %668, %697 : vector<8x32xf32>
    %699 = arith.addf %696, %698 : vector<8x32xf32>
    %c0_267 = arith.constant 0 : index
    %c0_268 = arith.constant 0 : index
    %700 = vector.load %arg11[%c0_267, %c0_268] : memref<8x32xf32, #tpu.memory_space<vmem>>, vector<8x32xf32>
    tpu.vector_store %arg11[%c0_267, %c0_268], %699 {strides = array<i32>} : memref<8x32xf32, #tpu.memory_space<vmem>>, vector<8x32xf32>,
    %701 = arith.index_cast %c5_i32 : i32 to index
    %c0_269 = arith.constant 0 : index
    %c0_270 = arith.constant 0 : index
    %702 = vector.load %arg10[%701, %c0_269, %c0_270] : memref<8x8x32xf32, #tpu.memory_space<vmem>>, vector<1x8x32xf32>
    %703 = vector.shape_cast %702 : vector<1x8x32xf32> to vector<8x32xf32>
    %704 = vector.shape_cast %699 : vector<8x32xf32> to vector<1x8x32xf32>
    tpu.vector_store %arg10[%701, %c0_269, %c0_270], %704 {strides = array<i32>} : memref<8x8x32xf32, #tpu.memory_space<vmem>>, vector<1x8x32xf32>,
    %c6_i32 = arith.constant 6 : i32
    %c0_271 = arith.constant 0 : index
    %c0_272 = arith.constant 0 : index
    %705 = vector.load %arg11[%c0_271, %c0_272] : memref<8x32xf32, #tpu.memory_space<vmem>>, vector<8x32xf32>
    %c0_273 = arith.constant 0 : index
    %c0_274 = arith.constant 0 : index
    %c0_275 = arith.constant 0 : index
    %706 = vector.load %arg6[%c0_273, %c0_274, %c0_275] : memref<3x32x32xf32, #tpu.memory_space<vmem>>, vector<1x32x32xf32>
    %707 = vector.shape_cast %706 : vector<1x32x32xf32> to vector<32x32xf32>
    %cst_276 = arith.constant dense<0.000000e+00> : vector<8x32xf32>
    %708 = tpu.matmul %705, %707, %cst_276 {dimension_numbers = #tpu.dot_dimension_numbers<[1], [0], [0], [1], [0, 0, 1, 1], [], []>} : vector<8x32xf32>, vector<32x32xf32>, vector<8x32xf32> -> vector<8x32xf32>
    %709 = vector.broadcast %4 : vector<1x32xf32> to vector<8x32xf32>
    %710 = arith.addf %708, %709 : vector<8x32xf32>
    %c1_277 = arith.constant 1 : index
    %c0_278 = arith.constant 0 : index
    %c0_279 = arith.constant 0 : index
    %711 = vector.load %arg6[%c1_277, %c0_278, %c0_279] : memref<3x32x32xf32, #tpu.memory_space<vmem>>, vector<1x32x32xf32>
    %712 = vector.shape_cast %711 : vector<1x32x32xf32> to vector<32x32xf32>
    %cst_280 = arith.constant dense<0.000000e+00> : vector<8x32xf32>
    %713 = tpu.matmul %705, %712, %cst_280 {dimension_numbers = #tpu.dot_dimension_numbers<[1], [0], [0], [1], [0, 0, 1, 1], [], []>} : vector<8x32xf32>, vector<32x32xf32>, vector<8x32xf32> -> vector<8x32xf32>
    %714 = vector.broadcast %6 : vector<1x32xf32> to vector<8x32xf32>
    %715 = arith.addf %713, %714 : vector<8x32xf32>
    %c2_281 = arith.constant 2 : index
    %c0_282 = arith.constant 0 : index
    %c0_283 = arith.constant 0 : index
    %716 = vector.load %arg6[%c2_281, %c0_282, %c0_283] : memref<3x32x32xf32, #tpu.memory_space<vmem>>, vector<1x32x32xf32>
    %717 = vector.shape_cast %716 : vector<1x32x32xf32> to vector<32x32xf32>
    %cst_284 = arith.constant dense<0.000000e+00> : vector<8x32xf32>
    %718 = tpu.matmul %705, %717, %cst_284 {dimension_numbers = #tpu.dot_dimension_numbers<[1], [0], [0], [1], [0, 0, 1, 1], [], []>} : vector<8x32xf32>, vector<32x32xf32>, vector<8x32xf32> -> vector<8x32xf32>
    %719 = vector.broadcast %8 : vector<1x32xf32> to vector<8x32xf32>
    %720 = arith.addf %718, %719 : vector<8x32xf32>
    %721 = arith.index_cast %c6_i32 : i32 to index
    %c0_285 = arith.constant 0 : index
    %c0_286 = arith.constant 0 : index
    %722 = vector.load %arg2[%721, %c0_285, %c0_286] : memref<8x8x32xf32, #tpu.memory_space<vmem>>, vector<1x8x32xf32>
    %723 = vector.shape_cast %722 : vector<1x8x32xf32> to vector<8x32xf32>
    %724 = arith.addf %723, %710 : vector<8x32xf32>
    %725 = arith.index_cast %c6_i32 : i32 to index
    %c0_287 = arith.constant 0 : index
    %c0_288 = arith.constant 0 : index
    %726 = vector.load %arg3[%725, %c0_287, %c0_288] : memref<8x8x32xf32, #tpu.memory_space<vmem>>, vector<1x8x32xf32>
    %727 = vector.shape_cast %726 : vector<1x8x32xf32> to vector<8x32xf32>
    %728 = arith.addf %727, %715 : vector<8x32xf32>
    %cst_289 = arith.constant dense<0.000000e+00> : vector<8xf32>
    %729 = vector.multi_reduction <add>, %724, %cst_289 [1] : vector<8x32xf32> to vector<8xf32>
    %730 = vector.shape_cast %729 : vector<8xf32> to vector<8x1xf32>
    %cst_290 = arith.constant 3.125000e-02 : f32
    %731 = vector.broadcast %cst_290 : f32 to vector<8x1xf32>
    %732 = arith.mulf %730, %731 : vector<8x1xf32>
    %733 = arith.mulf %724, %724 : vector<8x32xf32>
    %cst_291 = arith.constant dense<0.000000e+00> : vector<8xf32>
    %734 = vector.multi_reduction <add>, %733, %cst_291 [1] : vector<8x32xf32> to vector<8xf32>
    %735 = vector.shape_cast %734 : vector<8xf32> to vector<8x1xf32>
    %cst_292 = arith.constant 3.125000e-02 : f32
    %736 = vector.broadcast %cst_292 : f32 to vector<8x1xf32>
    %737 = arith.mulf %735, %736 : vector<8x1xf32>
    %738 = arith.mulf %732, %732 : vector<8x1xf32>
    %739 = arith.subf %737, %738 : vector<8x1xf32>
    %740 = vector.broadcast %732 : vector<8x1xf32> to vector<8x32xf32>
    %741 = arith.subf %724, %740 : vector<8x32xf32>
    %cst_293 = arith.constant 9.99999974E-6 : f32
    %742 = vector.broadcast %cst_293 : f32 to vector<8x1xf32>
    %743 = arith.addf %739, %742 : vector<8x1xf32>
    %744 = math.rsqrt %743 : vector<8x1xf32>
    %745 = vector.broadcast %744 : vector<8x1xf32> to vector<8x32xf32>
    %746 = arith.mulf %741, %745 : vector<8x32xf32>
    %747 = vector.broadcast %10 : vector<1x32xf32> to vector<8x32xf32>
    %748 = arith.mulf %746, %747 : vector<8x32xf32>
    %749 = vector.broadcast %16 : vector<1x32xf32> to vector<8x32xf32>
    %750 = arith.addf %748, %749 : vector<8x32xf32>
    %cst_294 = arith.constant dense<0.000000e+00> : vector<8xf32>
    %751 = vector.multi_reduction <add>, %728, %cst_294 [1] : vector<8x32xf32> to vector<8xf32>
    %752 = vector.shape_cast %751 : vector<8xf32> to vector<8x1xf32>
    %cst_295 = arith.constant 3.125000e-02 : f32
    %753 = vector.broadcast %cst_295 : f32 to vector<8x1xf32>
    %754 = arith.mulf %752, %753 : vector<8x1xf32>
    %755 = arith.mulf %728, %728 : vector<8x32xf32>
    %cst_296 = arith.constant dense<0.000000e+00> : vector<8xf32>
    %756 = vector.multi_reduction <add>, %755, %cst_296 [1] : vector<8x32xf32> to vector<8xf32>
    %757 = vector.shape_cast %756 : vector<8xf32> to vector<8x1xf32>
    %cst_297 = arith.constant 3.125000e-02 : f32
    %758 = vector.broadcast %cst_297 : f32 to vector<8x1xf32>
    %759 = arith.mulf %757, %758 : vector<8x1xf32>
    %760 = arith.mulf %754, %754 : vector<8x1xf32>
    %761 = arith.subf %759, %760 : vector<8x1xf32>
    %762 = vector.broadcast %754 : vector<8x1xf32> to vector<8x32xf32>
    %763 = arith.subf %728, %762 : vector<8x32xf32>
    %cst_298 = arith.constant 9.99999974E-6 : f32
    %764 = vector.broadcast %cst_298 : f32 to vector<8x1xf32>
    %765 = arith.addf %761, %764 : vector<8x1xf32>
    %766 = math.rsqrt %765 : vector<8x1xf32>
    %767 = vector.broadcast %766 : vector<8x1xf32> to vector<8x32xf32>
    %768 = arith.mulf %763, %767 : vector<8x32xf32>
    %769 = vector.broadcast %12 : vector<1x32xf32> to vector<8x32xf32>
    %770 = arith.mulf %768, %769 : vector<8x32xf32>
    %771 = vector.broadcast %18 : vector<1x32xf32> to vector<8x32xf32>
    %772 = arith.addf %770, %771 : vector<8x32xf32>
    %773 = arith.negf %750 : vector<8x32xf32>
    %774 = math.exp %773 : vector<8x32xf32>
    %cst_299 = arith.constant 1.000000e+00 : f32
    %775 = vector.broadcast %cst_299 : f32 to vector<8x32xf32>
    %776 = arith.addf %775, %774 : vector<8x32xf32>
    %777 = arith.divf %775, %776 : vector<8x32xf32>
    %778 = arith.negf %772 : vector<8x32xf32>
    %779 = math.exp %778 : vector<8x32xf32>
    %cst_300 = arith.constant 1.000000e+00 : f32
    %780 = vector.broadcast %cst_300 : f32 to vector<8x32xf32>
    %781 = arith.addf %780, %779 : vector<8x32xf32>
    %782 = arith.divf %780, %781 : vector<8x32xf32>
    %783 = arith.index_cast %c6_i32 : i32 to index
    %c0_301 = arith.constant 0 : index
    %c0_302 = arith.constant 0 : index
    %784 = vector.load %arg4[%783, %c0_301, %c0_302] : memref<8x8x32xf32, #tpu.memory_space<vmem>>, vector<1x8x32xf32>
    %785 = vector.shape_cast %784 : vector<1x8x32xf32> to vector<8x32xf32>
    %786 = arith.mulf %777, %720 : vector<8x32xf32>
    %787 = arith.addf %785, %786 : vector<8x32xf32>
    %cst_303 = arith.constant dense<0.000000e+00> : vector<8xf32>
    %788 = vector.multi_reduction <add>, %787, %cst_303 [1] : vector<8x32xf32> to vector<8xf32>
    %789 = vector.shape_cast %788 : vector<8xf32> to vector<8x1xf32>
    %cst_304 = arith.constant 3.125000e-02 : f32
    %790 = vector.broadcast %cst_304 : f32 to vector<8x1xf32>
    %791 = arith.mulf %789, %790 : vector<8x1xf32>
    %792 = arith.mulf %787, %787 : vector<8x32xf32>
    %cst_305 = arith.constant dense<0.000000e+00> : vector<8xf32>
    %793 = vector.multi_reduction <add>, %792, %cst_305 [1] : vector<8x32xf32> to vector<8xf32>
    %794 = vector.shape_cast %793 : vector<8xf32> to vector<8x1xf32>
    %cst_306 = arith.constant 3.125000e-02 : f32
    %795 = vector.broadcast %cst_306 : f32 to vector<8x1xf32>
    %796 = arith.mulf %794, %795 : vector<8x1xf32>
    %797 = arith.mulf %791, %791 : vector<8x1xf32>
    %798 = arith.subf %796, %797 : vector<8x1xf32>
    %799 = vector.broadcast %791 : vector<8x1xf32> to vector<8x32xf32>
    %800 = arith.subf %787, %799 : vector<8x32xf32>
    %cst_307 = arith.constant 9.99999974E-6 : f32
    %801 = vector.broadcast %cst_307 : f32 to vector<8x1xf32>
    %802 = arith.addf %798, %801 : vector<8x1xf32>
    %803 = math.rsqrt %802 : vector<8x1xf32>
    %804 = vector.broadcast %803 : vector<8x1xf32> to vector<8x32xf32>
    %805 = arith.mulf %800, %804 : vector<8x32xf32>
    %806 = vector.broadcast %14 : vector<1x32xf32> to vector<8x32xf32>
    %807 = arith.mulf %805, %806 : vector<8x32xf32>
    %808 = vector.broadcast %20 : vector<1x32xf32> to vector<8x32xf32>
    %809 = arith.addf %807, %808 : vector<8x32xf32>
    %810 = math.tanh %809 : vector<8x32xf32>
    %811 = arith.subf %705, %810 : vector<8x32xf32>
    %812 = arith.mulf %782, %811 : vector<8x32xf32>
    %813 = arith.addf %810, %812 : vector<8x32xf32>
    %c0_308 = arith.constant 0 : index
    %c0_309 = arith.constant 0 : index
    %814 = vector.load %arg11[%c0_308, %c0_309] : memref<8x32xf32, #tpu.memory_space<vmem>>, vector<8x32xf32>
    tpu.vector_store %arg11[%c0_308, %c0_309], %813 {strides = array<i32>} : memref<8x32xf32, #tpu.memory_space<vmem>>, vector<8x32xf32>,
    %815 = arith.index_cast %c6_i32 : i32 to index
    %c0_310 = arith.constant 0 : index
    %c0_311 = arith.constant 0 : index
    %816 = vector.load %arg10[%815, %c0_310, %c0_311] : memref<8x8x32xf32, #tpu.memory_space<vmem>>, vector<1x8x32xf32>
    %817 = vector.shape_cast %816 : vector<1x8x32xf32> to vector<8x32xf32>
    %818 = vector.shape_cast %813 : vector<8x32xf32> to vector<1x8x32xf32>
    tpu.vector_store %arg10[%815, %c0_310, %c0_311], %818 {strides = array<i32>} : memref<8x8x32xf32, #tpu.memory_space<vmem>>, vector<1x8x32xf32>,
    %c7_i32 = arith.constant 7 : i32
    %c0_312 = arith.constant 0 : index
    %c0_313 = arith.constant 0 : index
    %819 = vector.load %arg11[%c0_312, %c0_313] : memref<8x32xf32, #tpu.memory_space<vmem>>, vector<8x32xf32>
    %c0_314 = arith.constant 0 : index
    %c0_315 = arith.constant 0 : index
    %c0_316 = arith.constant 0 : index
    %820 = vector.load %arg6[%c0_314, %c0_315, %c0_316] : memref<3x32x32xf32, #tpu.memory_space<vmem>>, vector<1x32x32xf32>
    %821 = vector.shape_cast %820 : vector<1x32x32xf32> to vector<32x32xf32>
    %cst_317 = arith.constant dense<0.000000e+00> : vector<8x32xf32>
    %822 = tpu.matmul %819, %821, %cst_317 {dimension_numbers = #tpu.dot_dimension_numbers<[1], [0], [0], [1], [0, 0, 1, 1], [], []>} : vector<8x32xf32>, vector<32x32xf32>, vector<8x32xf32> -> vector<8x32xf32>
    %823 = vector.broadcast %4 : vector<1x32xf32> to vector<8x32xf32>
    %824 = arith.addf %822, %823 : vector<8x32xf32>
    %c1_318 = arith.constant 1 : index
    %c0_319 = arith.constant 0 : index
    %c0_320 = arith.constant 0 : index
    %825 = vector.load %arg6[%c1_318, %c0_319, %c0_320] : memref<3x32x32xf32, #tpu.memory_space<vmem>>, vector<1x32x32xf32>
    %826 = vector.shape_cast %825 : vector<1x32x32xf32> to vector<32x32xf32>
    %cst_321 = arith.constant dense<0.000000e+00> : vector<8x32xf32>
    %827 = tpu.matmul %819, %826, %cst_321 {dimension_numbers = #tpu.dot_dimension_numbers<[1], [0], [0], [1], [0, 0, 1, 1], [], []>} : vector<8x32xf32>, vector<32x32xf32>, vector<8x32xf32> -> vector<8x32xf32>
    %828 = vector.broadcast %6 : vector<1x32xf32> to vector<8x32xf32>
    %829 = arith.addf %827, %828 : vector<8x32xf32>
    %c2_322 = arith.constant 2 : index
    %c0_323 = arith.constant 0 : index
    %c0_324 = arith.constant 0 : index
    %830 = vector.load %arg6[%c2_322, %c0_323, %c0_324] : memref<3x32x32xf32, #tpu.memory_space<vmem>>, vector<1x32x32xf32>
    %831 = vector.shape_cast %830 : vector<1x32x32xf32> to vector<32x32xf32>
    %cst_325 = arith.constant dense<0.000000e+00> : vector<8x32xf32>
    %832 = tpu.matmul %819, %831, %cst_325 {dimension_numbers = #tpu.dot_dimension_numbers<[1], [0], [0], [1], [0, 0, 1, 1], [], []>} : vector<8x32xf32>, vector<32x32xf32>, vector<8x32xf32> -> vector<8x32xf32>
    %833 = vector.broadcast %8 : vector<1x32xf32> to vector<8x32xf32>
    %834 = arith.addf %832, %833 : vector<8x32xf32>
    %835 = arith.index_cast %c7_i32 : i32 to index
    %c0_326 = arith.constant 0 : index
    %c0_327 = arith.constant 0 : index
    %836 = vector.load %arg2[%835, %c0_326, %c0_327] : memref<8x8x32xf32, #tpu.memory_space<vmem>>, vector<1x8x32xf32>
    %837 = vector.shape_cast %836 : vector<1x8x32xf32> to vector<8x32xf32>
    %838 = arith.addf %837, %824 : vector<8x32xf32>
    %839 = arith.index_cast %c7_i32 : i32 to index
    %c0_328 = arith.constant 0 : index
    %c0_329 = arith.constant 0 : index
    %840 = vector.load %arg3[%839, %c0_328, %c0_329] : memref<8x8x32xf32, #tpu.memory_space<vmem>>, vector<1x8x32xf32>
    %841 = vector.shape_cast %840 : vector<1x8x32xf32> to vector<8x32xf32>
    %842 = arith.addf %841, %829 : vector<8x32xf32>
    %cst_330 = arith.constant dense<0.000000e+00> : vector<8xf32>
    %843 = vector.multi_reduction <add>, %838, %cst_330 [1] : vector<8x32xf32> to vector<8xf32>
    %844 = vector.shape_cast %843 : vector<8xf32> to vector<8x1xf32>
    %cst_331 = arith.constant 3.125000e-02 : f32
    %845 = vector.broadcast %cst_331 : f32 to vector<8x1xf32>
    %846 = arith.mulf %844, %845 : vector<8x1xf32>
    %847 = arith.mulf %838, %838 : vector<8x32xf32>
    %cst_332 = arith.constant dense<0.000000e+00> : vector<8xf32>
    %848 = vector.multi_reduction <add>, %847, %cst_332 [1] : vector<8x32xf32> to vector<8xf32>
    %849 = vector.shape_cast %848 : vector<8xf32> to vector<8x1xf32>
    %cst_333 = arith.constant 3.125000e-02 : f32
    %850 = vector.broadcast %cst_333 : f32 to vector<8x1xf32>
    %851 = arith.mulf %849, %850 : vector<8x1xf32>
    %852 = arith.mulf %846, %846 : vector<8x1xf32>
    %853 = arith.subf %851, %852 : vector<8x1xf32>
    %854 = vector.broadcast %846 : vector<8x1xf32> to vector<8x32xf32>
    %855 = arith.subf %838, %854 : vector<8x32xf32>
    %cst_334 = arith.constant 9.99999974E-6 : f32
    %856 = vector.broadcast %cst_334 : f32 to vector<8x1xf32>
    %857 = arith.addf %853, %856 : vector<8x1xf32>
    %858 = math.rsqrt %857 : vector<8x1xf32>
    %859 = vector.broadcast %858 : vector<8x1xf32> to vector<8x32xf32>
    %860 = arith.mulf %855, %859 : vector<8x32xf32>
    %861 = vector.broadcast %10 : vector<1x32xf32> to vector<8x32xf32>
    %862 = arith.mulf %860, %861 : vector<8x32xf32>
    %863 = vector.broadcast %16 : vector<1x32xf32> to vector<8x32xf32>
    %864 = arith.addf %862, %863 : vector<8x32xf32>
    %cst_335 = arith.constant dense<0.000000e+00> : vector<8xf32>
    %865 = vector.multi_reduction <add>, %842, %cst_335 [1] : vector<8x32xf32> to vector<8xf32>
    %866 = vector.shape_cast %865 : vector<8xf32> to vector<8x1xf32>
    %cst_336 = arith.constant 3.125000e-02 : f32
    %867 = vector.broadcast %cst_336 : f32 to vector<8x1xf32>
    %868 = arith.mulf %866, %867 : vector<8x1xf32>
    %869 = arith.mulf %842, %842 : vector<8x32xf32>
    %cst_337 = arith.constant dense<0.000000e+00> : vector<8xf32>
    %870 = vector.multi_reduction <add>, %869, %cst_337 [1] : vector<8x32xf32> to vector<8xf32>
    %871 = vector.shape_cast %870 : vector<8xf32> to vector<8x1xf32>
    %cst_338 = arith.constant 3.125000e-02 : f32
    %872 = vector.broadcast %cst_338 : f32 to vector<8x1xf32>
    %873 = arith.mulf %871, %872 : vector<8x1xf32>
    %874 = arith.mulf %868, %868 : vector<8x1xf32>
    %875 = arith.subf %873, %874 : vector<8x1xf32>
    %876 = vector.broadcast %868 : vector<8x1xf32> to vector<8x32xf32>
    %877 = arith.subf %842, %876 : vector<8x32xf32>
    %cst_339 = arith.constant 9.99999974E-6 : f32
    %878 = vector.broadcast %cst_339 : f32 to vector<8x1xf32>
    %879 = arith.addf %875, %878 : vector<8x1xf32>
    %880 = math.rsqrt %879 : vector<8x1xf32>
    %881 = vector.broadcast %880 : vector<8x1xf32> to vector<8x32xf32>
    %882 = arith.mulf %877, %881 : vector<8x32xf32>
    %883 = vector.broadcast %12 : vector<1x32xf32> to vector<8x32xf32>
    %884 = arith.mulf %882, %883 : vector<8x32xf32>
    %885 = vector.broadcast %18 : vector<1x32xf32> to vector<8x32xf32>
    %886 = arith.addf %884, %885 : vector<8x32xf32>
    %887 = arith.negf %864 : vector<8x32xf32>
    %888 = math.exp %887 : vector<8x32xf32>
    %cst_340 = arith.constant 1.000000e+00 : f32
    %889 = vector.broadcast %cst_340 : f32 to vector<8x32xf32>
    %890 = arith.addf %889, %888 : vector<8x32xf32>
    %891 = arith.divf %889, %890 : vector<8x32xf32>
    %892 = arith.negf %886 : vector<8x32xf32>
    %893 = math.exp %892 : vector<8x32xf32>
    %cst_341 = arith.constant 1.000000e+00 : f32
    %894 = vector.broadcast %cst_341 : f32 to vector<8x32xf32>
    %895 = arith.addf %894, %893 : vector<8x32xf32>
    %896 = arith.divf %894, %895 : vector<8x32xf32>
    %897 = arith.index_cast %c7_i32 : i32 to index
    %c0_342 = arith.constant 0 : index
    %c0_343 = arith.constant 0 : index
    %898 = vector.load %arg4[%897, %c0_342, %c0_343] : memref<8x8x32xf32, #tpu.memory_space<vmem>>, vector<1x8x32xf32>
    %899 = vector.shape_cast %898 : vector<1x8x32xf32> to vector<8x32xf32>
    %900 = arith.mulf %891, %834 : vector<8x32xf32>
    %901 = arith.addf %899, %900 : vector<8x32xf32>
    %cst_344 = arith.constant dense<0.000000e+00> : vector<8xf32>
    %902 = vector.multi_reduction <add>, %901, %cst_344 [1] : vector<8x32xf32> to vector<8xf32>
    %903 = vector.shape_cast %902 : vector<8xf32> to vector<8x1xf32>
    %cst_345 = arith.constant 3.125000e-02 : f32
    %904 = vector.broadcast %cst_345 : f32 to vector<8x1xf32>
    %905 = arith.mulf %903, %904 : vector<8x1xf32>
    %906 = arith.mulf %901, %901 : vector<8x32xf32>
    %cst_346 = arith.constant dense<0.000000e+00> : vector<8xf32>
    %907 = vector.multi_reduction <add>, %906, %cst_346 [1] : vector<8x32xf32> to vector<8xf32>
    %908 = vector.shape_cast %907 : vector<8xf32> to vector<8x1xf32>
    %cst_347 = arith.constant 3.125000e-02 : f32
    %909 = vector.broadcast %cst_347 : f32 to vector<8x1xf32>
    %910 = arith.mulf %908, %909 : vector<8x1xf32>
    %911 = arith.mulf %905, %905 : vector<8x1xf32>
    %912 = arith.subf %910, %911 : vector<8x1xf32>
    %913 = vector.broadcast %905 : vector<8x1xf32> to vector<8x32xf32>
    %914 = arith.subf %901, %913 : vector<8x32xf32>
    %cst_348 = arith.constant 9.99999974E-6 : f32
    %915 = vector.broadcast %cst_348 : f32 to vector<8x1xf32>
    %916 = arith.addf %912, %915 : vector<8x1xf32>
    %917 = math.rsqrt %916 : vector<8x1xf32>
    %918 = vector.broadcast %917 : vector<8x1xf32> to vector<8x32xf32>
    %919 = arith.mulf %914, %918 : vector<8x32xf32>
    %920 = vector.broadcast %14 : vector<1x32xf32> to vector<8x32xf32>
    %921 = arith.mulf %919, %920 : vector<8x32xf32>
    %922 = vector.broadcast %20 : vector<1x32xf32> to vector<8x32xf32>
    %923 = arith.addf %921, %922 : vector<8x32xf32>
    %924 = math.tanh %923 : vector<8x32xf32>
    %925 = arith.subf %819, %924 : vector<8x32xf32>
    %926 = arith.mulf %896, %925 : vector<8x32xf32>
    %927 = arith.addf %924, %926 : vector<8x32xf32>
    %c0_349 = arith.constant 0 : index
    %c0_350 = arith.constant 0 : index
    %928 = vector.load %arg11[%c0_349, %c0_350] : memref<8x32xf32, #tpu.memory_space<vmem>>, vector<8x32xf32>
    tpu.vector_store %arg11[%c0_349, %c0_350], %927 {strides = array<i32>} : memref<8x32xf32, #tpu.memory_space<vmem>>, vector<8x32xf32>,
    %929 = arith.index_cast %c7_i32 : i32 to index
    %c0_351 = arith.constant 0 : index
    %c0_352 = arith.constant 0 : index
    %930 = vector.load %arg10[%929, %c0_351, %c0_352] : memref<8x8x32xf32, #tpu.memory_space<vmem>>, vector<1x8x32xf32>
    %931 = vector.shape_cast %930 : vector<1x8x32xf32> to vector<8x32xf32>
    %932 = vector.shape_cast %927 : vector<8x32xf32> to vector<1x8x32xf32>
    tpu.vector_store %arg10[%929, %c0_351, %c0_352], %932 {strides = array<i32>} : memref<8x8x32xf32, #tpu.memory_space<vmem>>, vector<1x8x32xf32>,
    %c8_i32 = arith.constant 8 : i32
    return
  }
  func.func @transform_0(%arg0: i32, %arg1: i32) -> (i32, i32, i32) {
    %c0_i32 = arith.constant 0 : i32
    %c0_i32_0 = arith.constant 0 : i32
    return %arg1, %arg0, %c0_i32 : i32, i32, i32
  }
  func.func @transform_1(%arg0: i32, %arg1: i32) -> (i32, i32, i32) {
    %c0_i32 = arith.constant 0 : i32
    %c0_i32_0 = arith.constant 0 : i32
    return %arg1, %arg0, %c0_i32 : i32, i32, i32
  }
  func.func @transform_2(%arg0: i32, %arg1: i32) -> (i32, i32, i32) {
    %c0_i32 = arith.constant 0 : i32
    %c0_i32_0 = arith.constant 0 : i32
    return %arg1, %arg0, %c0_i32 : i32, i32, i32
  }
  func.func @transform_3(%arg0: i32, %arg1: i32) -> (i32, i32) {
    %c0_i32 = arith.constant 0 : i32
    %c0_i32_0 = arith.constant 0 : i32
    return %arg0, %c0_i32 : i32, i32
  }
  func.func @transform_4(%arg0: i32, %arg1: i32) -> (i32, i32, i32) {
    %c0_i32 = arith.constant 0 : i32
    %c0_i32_0 = arith.constant 0 : i32
    %c0_i32_1 = arith.constant 0 : i32
    %c0_i32_2 = arith.constant 0 : i32
    return %c0_i32, %c0_i32_0, %c0_i32_1 : i32, i32, i32
  }
  func.func @transform_5(%arg0: i32, %arg1: i32) -> (i32, i32, i32) {
    %c0_i32 = arith.constant 0 : i32
    %c0_i32_0 = arith.constant 0 : i32
    %c0_i32_1 = arith.constant 0 : i32
    %c0_i32_2 = arith.constant 0 : i32
    return %c0_i32, %c0_i32_0, %c0_i32_1 : i32, i32, i32
  }
  func.func @transform_6(%arg0: i32, %arg1: i32) -> (i32, i32, i32) {
    %c0_i32 = arith.constant 0 : i32
    %c0_i32_0 = arith.constant 0 : i32
    %c0_i32_1 = arith.constant 0 : i32
    %c0_i32_2 = arith.constant 0 : i32
    return %c0_i32, %c0_i32_0, %c0_i32_1 : i32, i32, i32
  }
  func.func @transform_7(%arg0: i32, %arg1: i32) -> (i32, i32, i32) {
    %c0_i32 = arith.constant 0 : i32
    %c0_i32_0 = arith.constant 0 : i32
    %c0_i32_1 = arith.constant 0 : i32
    %c0_i32_2 = arith.constant 0 : i32
    return %c0_i32, %c0_i32_0, %c0_i32_1 : i32, i32, i32
  }
  func.func @transform_8(%arg0: i32, %arg1: i32) -> (i32, i32, i32) {
    %c0_i32 = arith.constant 0 : i32
    %c0_i32_0 = arith.constant 0 : i32
    return %arg1, %arg0, %c0_i32 : i32, i32, i32
  }
}

</mosaic_0001>

<bundles_post_ra>
// kernel: layernorm_gru_forward.2
= control target key start
LH: loop header
LB: loop body
LE: loop exit
PB: predicated region body
PF: predicated region fallthrough
CT: control target
= control target key end

     0   :  { %vm34_vm0 = vcmask 261120   ;;  %v3226_v0 = vmov 0.0   ;;  %vm3227_vm1 = vmmov 0   ;;  %s4043_s4 = inlined_call_operand.vmem [shape: f32[3,32,32], index: 4, kind: input, shape index: {}]   ;;  %s4044_s3 = inlined_call_operand.vmem [shape: f32[8,32], index: 3, kind: input, shape index: {}]   ;;  %s4045_s5 = inlined_call_operand.vmem [shape: f32[3,1,32], index: 5, kind: input, shape index: {}]   ;;  %s4046_s0 = inlined_call_operand.vmem [shape: f32[8,8,32], index: 0, kind: input, shape index: {}]   ;;  %s4047_s1 = inlined_call_operand.vmem [shape: f32[8,8,32], index: 1, kind: input, shape index: {}]   ;;  %s4048_s6 = inlined_call_operand.vmem [shape: f32[3,1,32], index: 6, kind: input, shape index: {}]   ;;  %s4049_s7 = inlined_call_operand.vmem [shape: f32[3,1,32], index: 7, kind: input, shape index: {}]   ;;  %s4050_s2 = inlined_call_operand.vmem [shape: f32[8,8,32], index: 2, kind: input, shape index: {}]   ;;  %s4051_s8 = inlined_call_operand.vmem [shape: f32[8,8,32], index: 8, kind: output, shape index: {}]  }
   0x1   :  { %2823 = vmatprep.subr.mxu0 %v3226_v0  ;;  %v3277_v1 = vld [vmem:[%s4043_s4 + $0x18] sm:$0xff]  ;;  %v3282_v2 = vld [vmem:[%s4043_s4 + $0x10] sm:$0xff]  ;;  %2831 = vmatprep.mubr.msk.f32.mxu0 %vm3227_vm1, %v3226_v0  ;;  %v33_v3 = vld [vmem:[%s4044_s3] sm:$0xff] }
   0x2   :  { %2824 = vmatpush3.msra.mxu0 %v3277_v1  ;;  %2834 = vmatprep.subr.mxu1 %v3226_v0  ;;  %v3294_v4 = vld [vmem:[%s4043_s4 + $0x38] sm:$0xff]  ;;  %v3300_v5 = vld [vmem:[%s4043_s4 + $0x8] sm:$0xff]  ;;  %35 = vst.msk [vmem:[#allocation2] sm:$0xff] %vm34_vm0, %v33_v3  ;;  %v3307_v6 = vld [vmem:[%s4043_s4 + $0x30] sm:$0xff] }
   0x3   :  { %2825 = vmatprep.subr.mxu0 %v3226_v0  ;;  %2835 = vmatpush3.msra.mxu1 %v3294_v4  ;;  %v3314_v7 = vld [vmem:[%s4043_s4 + $0x28] sm:$0xff]  ;;  %v3320_v8 = vld [vmem:[%s4043_s4] sm:$0xff]  ;;  %v3360_v11 = vld [vmem:[%s4043_s4 + $0x58] sm:$0xff] }
   0x4   :  { %2826 = vmatpush3.msra.mxu0 %v3282_v2  ;;  %2836 = vmatprep.subr.mxu1 %v3226_v0  ;;  %v3328_v9 = vld [vmem:[%s4043_s4 + $0x20] sm:$0xff]  ;;  %v3367_v12 = vld [vmem:[%s4043_s4 + $0x50] sm:$0xff]  ;;  %v3372_v13 = vld [vmem:[%s4043_s4 + $0x48] sm:$0xff] }
   0x5   :  { %2827 = vmatprep.subr.mxu0 %v3226_v0  ;;  %2837 = vmatpush3.msra.mxu1 %v3307_v6  ;;  %v3380_v14 = vld [vmem:[%s4043_s4 + $0x40] sm:$0xff] }
   0x6   :  { %2828 = vmatpush3.msra.mxu0 %v3300_v5  ;;  %2838 = vmatprep.subr.mxu1 %v3226_v0  ;;  %v3400_v15 = vld [vmem:[%s4045_s5] ss:$0 sm:$0xff]  ;;  %v3405_v16 = vld [vmem:[%s4045_s5 + $0x1] ss:$0 sm:$0xff]  ;;  %v3434_v52 = vld [vmem:[%s4045_s5 + $0x2] ss:$0 sm:$0xff] }
   0x7   :  { %2829 = vmatprep.subr.mxu0 %v3226_v0  ;;  %2839 = vmatpush3.msra.mxu1 %v3314_v7  ;;  %v298_v18 = vld [vmem:[%s4046_s0] sm:$0xff] }
   0x8   :  { %2830 = vmatpush3.msra.mxu0 %v3320_v8  ;;  %2840 = vmatprep.subr.mxu1 %v3226_v0  ;;  %v300_v20 = vld [vmem:[%s4047_s1] sm:$0xff] }
   0x9   :  { %2841 = vmatpush3.msra.mxu1 %v3328_v9  ;;  %2842 = vmatprep.mubr.msk.f32.mxu1 %vm3227_vm1, %v3226_v0  ;;  %v3337_v10 = vld [vmem:[#allocation2] sm:$0xff] }
   0xa   :  { %2845 = vmatprep.subr.mxu0 %v3226_v0  ;;  %2856 = vmatprep.subr.mxu1 %v3226_v0  ;;  %v3422_v44 = vld [vmem:[%s4048_s6] ss:$0 sm:$0xff] }
   0xb   :  { %2832 = vmatmul.mubr.msk.f32.vlgmr.msra.gmra.mxu0 %vm34_vm0, %v3337_v10  ;;  %2843 = vmatmul.mubr.msk.f32.vlgmr.msra.gmra.mxu1 %vm34_vm0, %v3337_v10  ;;  %v3427_v46 = vld [vmem:[%s4049_s7] ss:$0 sm:$0xff] }
   0xc   :  { %2853 = vmatprep.mubr.msk.f32.mxu0 %vm3227_vm1, %v3226_v0  ;;  %2857 = vmatpush3.msra.mxu1 %v3277_v1  ;;  %v372_v55 = vld [vmem:[%s4050_s2] sm:$0xff] }
   0xd   :  { %2858 = vmatprep.subr.mxu1 %v3226_v0  ;;  %2864 = vmatprep.mubr.msk.f32.mxu1 %vm3227_vm1, %v3226_v0 }
   0xe   :  { %2859 = vmatpush3.msra.mxu1 %v3282_v2  ;;  %2846 = vmatpush3.msra.mxu0 %v3360_v11 }
   0xf   :  { %2860 = vmatprep.subr.mxu1 %v3226_v0  ;;  %2847 = vmatprep.subr.mxu0 %v3226_v0 }
  0x10   :  { %2861 = vmatpush3.msra.mxu1 %v3300_v5  ;;  %2848 = vmatpush3.msra.mxu0 %v3367_v12 }
  0x11   :  { %2862 = vmatprep.subr.mxu1 %v3226_v0  ;;  %2849 = vmatprep.subr.mxu0 %v3226_v0 }
  0x12   :  { %2863 = vmatpush3.msra.mxu1 %v3320_v8  ;;  %2850 = vmatpush3.msra.mxu0 %v3372_v13 }
  0x13   :  { %2878 = vmatprep.subr.mxu1 %v3226_v0  ;;  %2851 = vmatprep.subr.mxu0 %v3226_v0 }
  0x14   :  { %2852 = vmatpush3.msra.mxu0 %v3380_v14 }
  0x15   :  { %2854 = vmatmul.mubr.msk.f32.vlgmr.msra.gmra.mxu0 %vm34_vm0, %v3337_v10  ;;  %2867 = vmatprep.subr.mxu0 %v3226_v0 }
  0x16   :  { %2868 = vmatpush3.msra.mxu0 %v3294_v4  ;;  %2875 = vmatprep.mubr.msk.f32.mxu0 %vm3227_vm1, %v3226_v0 }
  0x17   :  { %2869 = vmatprep.subr.mxu0 %v3226_v0 }
  0x18   :  { %2870 = vmatpush3.msra.mxu0 %v3307_v6 }
  0x19   :  { %2871 = vmatprep.subr.mxu0 %v3226_v0 }
  0x1a   :  { %2872 = vmatpush3.msra.mxu0 %v3314_v7 }
  0x1b   :  { %2873 = vmatprep.subr.mxu0 %v3226_v0 }
  0x1c   :  { %2874 = vmatpush3.msra.mxu0 %v3328_v9 }
  0x1d   :  { %2889 = vmatprep.subr.mxu0 %v3226_v0 }
  0xcb   :  { %v132_v17 = vpop.f32.mrf.mxu0  ;;  %v213_v19 = vpop.f32.mrf.mxu1 }
  0xcc   :  { %v133_v21 = vadd.f32 %v3400_v15, %v132_v17  ;;  %v214_v22 = vadd.f32 %v3405_v16, %v213_v19 }
  0xcd   :  { %v2833_v23 = vpop.f32.mrf.mxu0  ;;  %v2844_v24 = vpop.f32.mrf.mxu1 }
  0xce   :  { %v299_v25 = vadd.f32 %v298_v18, %v133_v21  ;;  %v301_v26 = vadd.f32 %v300_v20, %v214_v22  ;;  %v3445_v23 = vld [vmem:[%s4048_s6 + $0x1] ss:$0 sm:$0xff] }
  0xd0   :  { %v302_v27 = vsel %vm34_vm0, %v299_v25, 0.0  ;;  %v306_v28 = vmul.f32 %v299_v25, %v299_v25  ;;  %v331_v29 = vsel %vm34_vm0, %v301_v26, 0.0  ;;  %v335_v30 = vmul.f32 %v301_v26, %v301_v26 }
  0xd1   :  { %303 = vadd.xlane.f32.xlu0 %v302_v27  ;;  %332 = vadd.xlane.f32.xlu1 %v331_v29 }
  0xd2   :  { %v336_v31 = vsel %vm34_vm0, %v335_v30, 0.0  ;;  %v307_v32 = vsel %vm34_vm0, %v306_v28, 0.0 }
  0xd5   :  { %308 = vadd.xlane.f32.xlu0 %v307_v32  ;;  %337 = vadd.xlane.f32.xlu1 %v336_v31  ;;  %v294_v33 = vpop.f32.mrf.mxu0 }
  0xd6   :  { %v295_v53 = vadd.f32 %v3434_v52, %v294_v33 }
  0xd7   :  { %v2855_v34 = vpop.f32.mrf.mxu0 }
 0x15a   :  { %v304_v35 = vpop.xlane.xlu0 %303  ;;  %v333_v61 = vpop.xlane.xlu1 %332 }
 0x15b   :  { %v305_v36 = vmul.f32 0.03125, %v304_v35  ;;  %v334_v62 = vmul.f32 0.03125, %v333_v61 }
 0x15d   :  { %v311_v38 = vmul.f32 %v305_v36, %v305_v36  ;;  %v313_v42 = vsub.f32 %v299_v25, %v305_v36  ;;  %v340_v3 = vmul.f32 %v334_v62, %v334_v62  ;;  %v342_v20 = vsub.f32 %v301_v26, %v334_v62  ;;  %v3451_v25 = vld [vmem:[%s4049_s7 + $0x1] ss:$0 sm:$0xff] }
 0x15e   :  { %v309_v37 = vpop.xlane.xlu0 %308  ;;  %v338_v63 = vpop.xlane.xlu1 %337 }
 0x15f   :  { %v310_v39 = vmul.f32 0.03125, %v309_v37  ;;  %v339_v17 = vmul.f32 0.03125, %v338_v63  ;;  %v3457_v37 = vld [vmem:[%s4048_s6 + $0x2] ss:$0 sm:$0xff] }
 0x161   :  { %v312_v40 = vsub.f32 %v310_v39, %v311_v38  ;;  %v341_v18 = vsub.f32 %v339_v17, %v340_v3 }
 0x163   :  { %v314_v41 = vadd.f32 1e-05, %v312_v40  ;;  %v343_v19 = vadd.f32 1e-05, %v341_v18  ;;  %v3462_v40 = vld [vmem:[%s4049_s7 + $0x2] ss:$0 sm:$0xff] }
 0x165   :  { %3089 = vrsqrt.f32 %v314_v41 }
 0x172   :  { %v3090_v43 = vpop.eup %3089 }
 0x173   :  { %v316_v45 = vmul.f32 %v3090_v43, %v313_v42 }
 0x175   :  { %v323_v47 = vmul.f32 %v3422_v44, %v316_v45 }
 0x177   :  { %v330_v48 = vadd.f32 %v3427_v46, %v323_v47 }
 0x179   :  { %v2580_v49 = vmul.f32 -1.442695, %v330_v48 }
 0x17b   :  { %3091 = vpow2.f32 %v2580_v49 }
 0x188   :  { %v3092_v50 = vpop.eup %3091 }
 0x189   :  { %v363_v51 = vadd.f32 1.0, %v3092_v50 }
 0x18b   :  { %3093 = vrcp.f32 %v363_v51 }
 0x18c   :  { %3095 = vrsqrt.f32 %v343_v19 }
 0x198   :  { %v3094_v54 = vpop.eup %3093 }
 0x199   :  { %v373_v56 = vmul.f32 %v3094_v54, %v295_v53  ;;  %v3096_v21 = vpop.eup %3095  ;;  %v2595_v53 = vld [vmem:[%s4046_s0 + $0x8] sm:$0xff] }
 0x19a   :  { %v345_v22 = vmul.f32 %v3096_v21, %v342_v20 }
 0x19b   :  { %v374_v57 = vadd.f32 %v373_v56, %v372_v55  ;;  %v2596_v55 = vld [vmem:[%s4047_s1 + $0x8] sm:$0xff] }
 0x19c   :  { %v352_v24 = vmul.f32 %v3445_v23, %v345_v22 }
 0x19d   :  { %v375_v58 = vsel %vm34_vm0, %v374_v57, 0.0  ;;  %v379_v59 = vmul.f32 %v374_v57, %v374_v57 }
 0x19e   :  { %376 = vadd.xlane.f32.xlu0 %v375_v58  ;;  %v359_v30 = vadd.f32 %v3451_v25, %v352_v24 }
 0x19f   :  { %v380_v60 = vsel %vm34_vm0, %v379_v59, 0.0 }
 0x1a0   :  { %381 = vadd.xlane.f32.xlu1 %v380_v60  ;;  %v2581_v33 = vmul.f32 -1.442695, %v359_v30 }
 0x227   :  { %v377_v27 = vpop.xlane.xlu0 %376 }
 0x228   :  { %v378_v28 = vmul.f32 0.03125, %v377_v27 }
 0x229   :  { %v382_v29 = vpop.xlane.xlu1 %381 }
 0x22a   :  { %v384_v26 = vmul.f32 %v378_v28, %v378_v28  ;;  %v383_v31 = vmul.f32 0.03125, %v382_v29  ;;  %v386_v35 = vsub.f32 %v374_v57, %v378_v28 }
 0x22c   :  { %v385_v32 = vsub.f32 %v383_v31, %v384_v26 }
 0x22e   :  { %v387_v34 = vadd.f32 1e-05, %v385_v32 }
 0x230   :  { %3097 = vrsqrt.f32 %v387_v34 }
 0x231   :  { %3099 = vpow2.f32 %v2581_v33 }
 0x23d   :  { %v3098_v36 = vpop.eup %3097 }
 0x23e   :  { %v389_v38 = vmul.f32 %v3098_v36, %v386_v35  ;;  %v3100_v39 = vpop.eup %3099 }
 0x23f   :  { %v369_v42 = vadd.f32 1.0, %v3100_v39 }
 0x240   :  { %v396_v41 = vmul.f32 %v3457_v37, %v389_v38 }
 0x242   :  { %v403_v43 = vadd.f32 %v3462_v40, %v396_v41 }
 0x244   :  { %3101 = vtanh.f32 %v403_v43  ;;  %v2599_v43 = vld [vmem:[%s4050_s2 + $0x8] sm:$0xff] }
 0x245   :  { %3103 = vrcp.f32 %v369_v42 }
 0x251   :  { %v3102_v45 = vpop.eup %3101 }
 0x252   :  { %v405_v47 = vsub.f32 %v3337_v10, %v3102_v45  ;;  %v3104_v48 = vpop.eup %3103 }
 0x254   :  { %v406_v49 = vmul.f32 %v3104_v48, %v405_v47 }
 0x256   :  { %v407_v50 = vadd.f32 %v3102_v45, %v406_v49 }
 0x258   :  { %409 = vst.msk [vmem:[%s4051_s8] sm:$0xff] %vm34_vm0, %v407_v50  ;;  %408 = vst.msk [vmem:[#allocation2] sm:$0xff] %vm34_vm0, %v407_v50 }
 0x25f   :  { %v3472_v51 = vld [vmem:[#allocation2] sm:$0xff] }
 0x260   :  { %2865 = vmatmul.mubr.msk.f32.vlgmr.msra.gmra.mxu1 %vm34_vm0, %v3472_v51  ;;  %2876 = vmatmul.mubr.msk.f32.vlgmr.msra.gmra.mxu0 %vm34_vm0, %v3472_v51 }
 0x261   :  { %2879 = vmatpush3.msra.mxu1 %v3360_v11  ;;  %2886 = vmatprep.mubr.msk.f32.mxu1 %vm3227_vm1, %v3226_v0 }
 0x262   :  { %2880 = vmatprep.subr.mxu1 %v3226_v0  ;;  %2890 = vmatpush3.msra.mxu0 %v3277_v1 }
 0x263   :  { %2881 = vmatpush3.msra.mxu1 %v3367_v12  ;;  %2891 = vmatprep.subr.mxu0 %v3226_v0 }
 0x264   :  { %2882 = vmatprep.subr.mxu1 %v3226_v0  ;;  %2892 = vmatpush3.msra.mxu0 %v3282_v2 }
 0x265   :  { %2883 = vmatpush3.msra.mxu1 %v3372_v13  ;;  %2893 = vmatprep.subr.mxu0 %v3226_v0 }
 0x266   :  { %2884 = vmatprep.subr.mxu1 %v3226_v0  ;;  %2894 = vmatpush3.msra.mxu0 %v3300_v5 }
 0x267   :  { %2885 = vmatpush3.msra.mxu1 %v3380_v14  ;;  %2895 = vmatprep.subr.mxu0 %v3226_v0 }
 0x268   :  { %2887 = vmatmul.mubr.msk.f32.vlgmr.msra.gmra.mxu1 %vm34_vm0, %v3472_v51  ;;  %2900 = vmatprep.subr.mxu1 %v3226_v0 }
 0x269   :  { %2901 = vmatpush3.msra.mxu1 %v3294_v4  ;;  %2896 = vmatpush3.msra.mxu0 %v3320_v8 }
 0x26a   :  { %2902 = vmatprep.subr.mxu1 %v3226_v0  ;;  %2897 = vmatprep.mubr.msk.f32.mxu0 %vm3227_vm1, %v3226_v0 }
 0x26b   :  { %2903 = vmatpush3.msra.mxu1 %v3307_v6  ;;  %2908 = vmatprep.mubr.msk.f32.mxu1 %vm3227_vm1, %v3226_v0 }
 0x26c   :  { %2904 = vmatprep.subr.mxu1 %v3226_v0  ;;  %2911 = vmatprep.subr.mxu0 %v3226_v0 }
 0x26d   :  { %2905 = vmatpush3.msra.mxu1 %v3314_v7 }
 0x26e   :  { %2906 = vmatprep.subr.mxu1 %v3226_v0 }
 0x26f   :  { %2907 = vmatpush3.msra.mxu1 %v3328_v9 }
 0x270   :  { %2922 = vmatprep.subr.mxu1 %v3226_v0 }
 0x320   :  { %v484_v10 = vpop.f32.mrf.mxu1  ;;  %v558_v54 = vpop.f32.mrf.mxu0 }
 0x321   :  { %v485_v56 = vadd.f32 %v3400_v15, %v484_v10  ;;  %v559_v57 = vadd.f32 %v3405_v16, %v558_v54 }
 0x322   :  { %v2866_v58 = vpop.f32.mrf.mxu1  ;;  %v2877_v59 = vpop.f32.mrf.mxu0 }
 0x323   :  { %v638_v60 = vadd.f32 %v2595_v53, %v485_v56  ;;  %v641_v61 = vadd.f32 %v2596_v55, %v559_v57 }
 0x325   :  { %v642_v62 = vsel %vm34_vm0, %v638_v60, 0.0  ;;  %v646_v63 = vmul.f32 %v638_v60, %v638_v60  ;;  %v663_v17 = vmul.f32 %v641_v61, %v641_v61  ;;  %v659_v19 = vsel %vm34_vm0, %v641_v61, 0.0 }
 0x326   :  { %643 = vadd.xlane.f32.xlu0 %v642_v62 }
 0x327   :  { %v647_v3 = vsel %vm34_vm0, %v646_v63, 0.0  ;;  %v664_v21 = vsel %vm34_vm0, %v663_v17, 0.0 }
 0x328   :  { %v632_v18 = vpop.f32.mrf.mxu1  ;;  %648 = vadd.xlane.f32.xlu1 %v647_v3 }
 0x329   :  { %v633_v41 = vadd.f32 %v3434_v52, %v632_v18 }
 0x32a   :  { %v2888_v20 = vpop.f32.mrf.mxu1  ;;  %660 = vadd.xlane.f32.xlu0 %v659_v19 }
 0x32c   :  { %665 = vadd.xlane.f32.xlu1 %v664_v21 }
 0x3af   :  { %v644_v22 = vpop.xlane.xlu0 %643 }
 0x3b0   :  { %v645_v24 = vmul.f32 0.03125, %v644_v22 }
 0x3b1   :  { %v649_v27 = vpop.xlane.xlu1 %648 }
 0x3b2   :  { %v651_v28 = vmul.f32 %v645_v24, %v645_v24  ;;  %v650_v29 = vmul.f32 0.03125, %v649_v27  ;;  %v653_v31 = vsub.f32 %v638_v60, %v645_v24 }
 0x3b3   :  { %v661_v10 = vpop.xlane.xlu0 %660 }
 0x3b4   :  { %v652_v30 = vsub.f32 %v650_v29, %v651_v28  ;;  %v662_v53 = vmul.f32 0.03125, %v661_v10 }
 0x3b5   :  { %v666_v54 = vpop.xlane.xlu1 %665 }
 0x3b6   :  { %v654_v26 = vadd.f32 1e-05, %v652_v30  ;;  %v668_v55 = vmul.f32 %v662_v53, %v662_v53  ;;  %v667_v56 = vmul.f32 0.03125, %v666_v54  ;;  %v670_v60 = vsub.f32 %v641_v61, %v662_v53 }
 0x3b8   :  { %3105 = vrsqrt.f32 %v654_v26  ;;  %v669_v57 = vsub.f32 %v667_v56, %v668_v55 }
 0x3ba   :  { %v671_v58 = vadd.f32 1e-05, %v669_v57 }
 0x3c5   :  { %v3106_v32 = vpop.eup %3105 }
 0x3c6   :  { %v656_v33 = vmul.f32 %v3106_v32, %v653_v31 }
 0x3c8   :  { %v657_v34 = vmul.f32 %v3422_v44, %v656_v33 }
 0x3ca   :  { %v658_v35 = vadd.f32 %v3427_v46, %v657_v34 }
 0x3cc   :  { %v2597_v36 = vmul.f32 -1.442695, %v658_v35 }
 0x3ce   :  { %3107 = vpow2.f32 %v2597_v36 }
 0x3db   :  { %v3108_v38 = vpop.eup %3107 }
 0x3dc   :  { %v679_v39 = vadd.f32 1.0, %v3108_v38 }
 0x3de   :  { %3109 = vrcp.f32 %v679_v39 }
 0x3df   :  { %3111 = vrsqrt.f32 %v671_v58 }
 0x3eb   :  { %v3110_v42 = vpop.eup %3109 }
 0x3ec   :  { %v690_v45 = vmul.f32 %v3110_v42, %v633_v41  ;;  %v3112_v59 = vpop.eup %3111 }
 0x3ed   :  { %v673_v62 = vmul.f32 %v3112_v59, %v670_v60 }
 0x3ee   :  { %v691_v47 = vadd.f32 %v2599_v43, %v690_v45 }
 0x3ef   :  { %v674_v63 = vmul.f32 %v3445_v23, %v673_v62 }
 0x3f0   :  { %v692_v48 = vsel %vm34_vm0, %v691_v47, 0.0  ;;  %v696_v49 = vmul.f32 %v691_v47, %v691_v47 }
 0x3f1   :  { %693 = vadd.xlane.f32.xlu0 %v692_v48  ;;  %v675_v19 = vadd.f32 %v3451_v25, %v674_v63 }
 0x3f2   :  { %v697_v50 = vsel %vm34_vm0, %v696_v49, 0.0 }
 0x3f3   :  { %698 = vadd.xlane.f32.xlu1 %v697_v50  ;;  %v2598_v24 = vmul.f32 -1.442695, %v675_v19 }
 0x47a   :  { %v694_v3 = vpop.xlane.xlu0 %693 }
 0x47b   :  { %v695_v17 = vmul.f32 0.03125, %v694_v3 }
 0x47c   :  { %v699_v18 = vpop.xlane.xlu1 %698 }
 0x47d   :  { %v701_v20 = vmul.f32 %v695_v17, %v695_v17  ;;  %v700_v21 = vmul.f32 0.03125, %v699_v18  ;;  %v703_v28 = vsub.f32 %v691_v47, %v695_v17 }
 0x47f   :  { %v702_v22 = vsub.f32 %v700_v21, %v701_v20 }
 0x481   :  { %v704_v27 = vadd.f32 1e-05, %v702_v22 }
 0x483   :  { %3113 = vrsqrt.f32 %v704_v27 }
 0x484   :  { %3115 = vpow2.f32 %v2598_v24 }
 0x490   :  { %v3114_v29 = vpop.eup %3113 }
 0x491   :  { %v706_v30 = vmul.f32 %v3114_v29, %v703_v28  ;;  %v3116_v26 = vpop.eup %3115 }
 0x492   :  { %v685_v31 = vadd.f32 1.0, %v3116_v26 }
 0x493   :  { %v707_v61 = vmul.f32 %v3457_v37, %v706_v30  ;;  %v2616_v30 = vld [vmem:[%s4050_s2 + $0x10] sm:$0xff] }
 0x495   :  { %v708_v32 = vadd.f32 %v3462_v40, %v707_v61 }
 0x497   :  { %3117 = vtanh.f32 %v708_v32 }
 0x498   :  { %3119 = vrcp.f32 %v685_v31 }
 0x4a4   :  { %v3118_v33 = vpop.eup %3117 }
 0x4a5   :  { %v710_v34 = vsub.f32 %v3472_v51, %v3118_v33  ;;  %v3120_v35 = vpop.eup %3119 }
 0x4a7   :  { %v711_v36 = vmul.f32 %v3120_v35, %v710_v34 }
 0x4a9   :  { %v712_v38 = vadd.f32 %v3118_v33, %v711_v36 }
 0x4ab   :  { %2600 = vst.msk [vmem:[%s4051_s8 + $0x8] sm:$0xff] %vm34_vm0, %v712_v38  ;;  %713 = vst.msk [vmem:[#allocation2] sm:$0xff] %vm34_vm0, %v712_v38 }
 0x4b2   :  { %v3540_v39 = vld [vmem:[#allocation2] sm:$0xff] }
 0x4b3   :  { %2898 = vmatmul.mubr.msk.f32.vlgmr.msra.gmra.mxu0 %vm34_vm0, %v3540_v39  ;;  %2909 = vmatmul.mubr.msk.f32.vlgmr.msra.gmra.mxu1 %vm34_vm0, %v3540_v39 }
 0x4b4   :  { %2912 = vmatpush3.msra.mxu0 %v3360_v11  ;;  %2919 = vmatprep.mubr.msk.f32.mxu0 %vm3227_vm1, %v3226_v0 }
 0x4b5   :  { %2913 = vmatprep.subr.mxu0 %v3226_v0  ;;  %2923 = vmatpush3.msra.mxu1 %v3277_v1 }
 0x4b6   :  { %2914 = vmatpush3.msra.mxu0 %v3367_v12  ;;  %2924 = vmatprep.subr.mxu1 %v3226_v0 }
 0x4b7   :  { %2915 = vmatprep.subr.mxu0 %v3226_v0  ;;  %2925 = vmatpush3.msra.mxu1 %v3282_v2  ;;  %v2612_v2 = vld [vmem:[%s4046_s0 + $0x10] sm:$0xff] }
 0x4b8   :  { %2916 = vmatpush3.msra.mxu0 %v3372_v13  ;;  %2926 = vmatprep.subr.mxu1 %v3226_v0 }
 0x4b9   :  { %2917 = vmatprep.subr.mxu0 %v3226_v0  ;;  %2927 = vmatpush3.msra.mxu1 %v3300_v5 }
 0x4ba   :  { %2918 = vmatpush3.msra.mxu0 %v3380_v14  ;;  %2928 = vmatprep.subr.mxu1 %v3226_v0 }
 0x4bb   :  { %2920 = vmatmul.mubr.msk.f32.vlgmr.msra.gmra.mxu0 %vm34_vm0, %v3540_v39  ;;  %2933 = vmatprep.subr.mxu0 %v3226_v0 }
 0x4bc   :  { %2934 = vmatpush3.msra.mxu0 %v3294_v4  ;;  %2929 = vmatpush3.msra.mxu1 %v3320_v8  ;;  %v2613_v8 = vld [vmem:[%s4047_s1 + $0x10] sm:$0xff] }
 0x4bd   :  { %2935 = vmatprep.subr.mxu0 %v3226_v0  ;;  %2930 = vmatprep.mubr.msk.f32.mxu1 %vm3227_vm1, %v3226_v0 }
 0x4be   :  { %2936 = vmatpush3.msra.mxu0 %v3307_v6  ;;  %2941 = vmatprep.mubr.msk.f32.mxu0 %vm3227_vm1, %v3226_v0 }
 0x4bf   :  { %2937 = vmatprep.subr.mxu0 %v3226_v0  ;;  %2944 = vmatprep.subr.mxu1 %v3226_v0 }
 0x4c0   :  { %2938 = vmatpush3.msra.mxu0 %v3314_v7 }
 0x4c1   :  { %2939 = vmatprep.subr.mxu0 %v3226_v0 }
 0x4c2   :  { %2940 = vmatpush3.msra.mxu0 %v3328_v9 }
 0x4c3   :  { %2955 = vmatprep.subr.mxu0 %v3226_v0 }
 0x573   :  { %v790_v1 = vpop.f32.mrf.mxu0  ;;  %v864_v5 = vpop.f32.mrf.mxu1 }
 0x574   :  { %v791_v51 = vadd.f32 %v3400_v15, %v790_v1  ;;  %v865_v41 = vadd.f32 %v3405_v16, %v864_v5 }
 0x575   :  { %v2899_v42 = vpop.f32.mrf.mxu0  ;;  %v2910_v43 = vpop.f32.mrf.mxu1 }
 0x576   :  { %v944_v45 = vadd.f32 %v2612_v2, %v791_v51  ;;  %v947_v47 = vadd.f32 %v2613_v8, %v865_v41 }
 0x578   :  { %v948_v48 = vsel %vm34_vm0, %v944_v45, 0.0  ;;  %v952_v49 = vmul.f32 %v944_v45, %v944_v45  ;;  %v969_v10 = vmul.f32 %v947_v47, %v947_v47  ;;  %v965_v54 = vsel %vm34_vm0, %v947_v47, 0.0 }
 0x579   :  { %949 = vadd.xlane.f32.xlu0 %v948_v48 }
 0x57a   :  { %v953_v50 = vsel %vm34_vm0, %v952_v49, 0.0  ;;  %v970_v56 = vsel %vm34_vm0, %v969_v10, 0.0 }
 0x57b   :  { %v938_v53 = vpop.f32.mrf.mxu0  ;;  %954 = vadd.xlane.f32.xlu1 %v953_v50 }
 0x57c   :  { %v939_v28 = vadd.f32 %v3434_v52, %v938_v53 }
 0x57d   :  { %v2921_v55 = vpop.f32.mrf.mxu0  ;;  %966 = vadd.xlane.f32.xlu0 %v965_v54 }
 0x57f   :  { %971 = vadd.xlane.f32.xlu1 %v970_v56 }
 0x602   :  { %v950_v57 = vpop.xlane.xlu0 %949 }
 0x603   :  { %v951_v58 = vmul.f32 0.03125, %v950_v57 }
 0x604   :  { %v955_v59 = vpop.xlane.xlu1 %954 }
 0x605   :  { %v957_v60 = vmul.f32 %v951_v58, %v951_v58  ;;  %v956_v62 = vmul.f32 0.03125, %v955_v59  ;;  %v959_v17 = vsub.f32 %v944_v45, %v951_v58 }
 0x606   :  { %v967_v34 = vpop.xlane.xlu0 %966 }
 0x607   :  { %v958_v63 = vsub.f32 %v956_v62, %v957_v60  ;;  %v968_v35 = vmul.f32 0.03125, %v967_v34 }
 0x608   :  { %v972_v36 = vpop.xlane.xlu1 %971 }
 0x609   :  { %v960_v3 = vadd.f32 1e-05, %v958_v63  ;;  %v974_v38 = vmul.f32 %v968_v35, %v968_v35  ;;  %v973_v1 = vmul.f32 0.03125, %v972_v36  ;;  %v976_v51 = vsub.f32 %v947_v47, %v968_v35 }
 0x60b   :  { %3121 = vrsqrt.f32 %v960_v3  ;;  %v975_v2 = vsub.f32 %v973_v1, %v974_v38 }
 0x60d   :  { %v977_v5 = vadd.f32 1e-05, %v975_v2 }
 0x618   :  { %v3122_v18 = vpop.eup %3121 }
 0x619   :  { %v962_v19 = vmul.f32 %v3122_v18, %v959_v17 }
 0x61b   :  { %v963_v20 = vmul.f32 %v3422_v44, %v962_v19 }
 0x61d   :  { %v964_v21 = vadd.f32 %v3427_v46, %v963_v20 }
 0x61f   :  { %v2614_v22 = vmul.f32 -1.442695, %v964_v21 }
 0x621   :  { %3123 = vpow2.f32 %v2614_v22 }
 0x62e   :  { %v3124_v24 = vpop.eup %3123 }
 0x62f   :  { %v985_v27 = vadd.f32 1.0, %v3124_v24 }
 0x631   :  { %3125 = vrcp.f32 %v985_v27 }
 0x632   :  { %3127 = vrsqrt.f32 %v977_v5 }
 0x63e   :  { %v3126_v29 = vpop.eup %3125 }
 0x63f   :  { %v996_v26 = vmul.f32 %v3126_v29, %v939_v28  ;;  %v3128_v8 = vpop.eup %3127 }
 0x640   :  { %v979_v41 = vmul.f32 %v3128_v8, %v976_v51 }
 0x641   :  { %v997_v61 = vadd.f32 %v2616_v30, %v996_v26 }
 0x642   :  { %v980_v42 = vmul.f32 %v3445_v23, %v979_v41 }
 0x643   :  { %v998_v31 = vsel %vm34_vm0, %v997_v61, 0.0  ;;  %v1002_v32 = vmul.f32 %v997_v61, %v997_v61 }
 0x644   :  { %999 = vadd.xlane.f32.xlu0 %v998_v31  ;;  %v981_v49 = vadd.f32 %v3451_v25, %v980_v42 }
 0x645   :  { %v1003_v33 = vsel %vm34_vm0, %v1002_v32, 0.0 }
 0x646   :  { %1004 = vadd.xlane.f32.xlu1 %v1003_v33  ;;  %v2615_v54 = vmul.f32 -1.442695, %v981_v49 }
 0x6cd   :  { %v1000_v43 = vpop.xlane.xlu0 %999 }
 0x6ce   :  { %v1001_v45 = vmul.f32 0.03125, %v1000_v43 }
 0x6cf   :  { %v1005_v48 = vpop.xlane.xlu1 %1004 }
 0x6d0   :  { %v1007_v50 = vmul.f32 %v1001_v45, %v1001_v45  ;;  %v1006_v10 = vmul.f32 0.03125, %v1005_v48  ;;  %v1009_v56 = vsub.f32 %v997_v61, %v1001_v45 }
 0x6d2   :  { %v1008_v53 = vsub.f32 %v1006_v10, %v1007_v50 }
 0x6d4   :  { %v1010_v55 = vadd.f32 1e-05, %v1008_v53 }
 0x6d6   :  { %3129 = vrsqrt.f32 %v1010_v55 }
 0x6d7   :  { %3131 = vpow2.f32 %v2615_v54  ;;  %v2633_v54 = vld [vmem:[%s4050_s2 + $0x18] sm:$0xff] }
 0x6e3   :  { %v3130_v57 = vpop.eup %3129 }
 0x6e4   :  { %v1012_v58 = vmul.f32 %v3130_v57, %v1009_v56  ;;  %v3132_v59 = vpop.eup %3131 }
 0x6e5   :  { %v991_v60 = vadd.f32 1.0, %v3132_v59 }
 0x6e6   :  { %v1013_v47 = vmul.f32 %v3457_v37, %v1012_v58 }
 0x6e8   :  { %v1014_v62 = vadd.f32 %v3462_v40, %v1013_v47  ;;  %v3666_v47 = vld [vmem:[%s4043_s4 + $0x18] sm:$0xff] }
 0x6ea   :  { %3133 = vtanh.f32 %v1014_v62  ;;  %v3678_v62 = vld [vmem:[%s4043_s4 + $0x8] sm:$0xff] }
 0x6eb   :  { %3135 = vrcp.f32 %v991_v60  ;;  %v3671_v60 = vld [vmem:[%s4043_s4 + $0x10] sm:$0xff] }
 0x6f7   :  { %v3134_v63 = vpop.eup %3133 }
 0x6f8   :  { %v1016_v3 = vsub.f32 %v3540_v39, %v3134_v63  ;;  %v3136_v17 = vpop.eup %3135 }
 0x6fa   :  { %v1017_v18 = vmul.f32 %v3136_v17, %v1016_v3 }
 0x6fc   :  { %v1018_v19 = vadd.f32 %v3134_v63, %v1017_v18  ;;  %v3685_v63 = vld [vmem:[%s4043_s4] sm:$0xff] }
 0x6fe   :  { %2617 = vst.msk [vmem:[%s4051_s8 + $0x10] sm:$0xff] %vm34_vm0, %v1018_v19  ;;  %1019 = vst.msk [vmem:[#allocation2] sm:$0xff] %vm34_vm0, %v1018_v19 }
 0x705   :  { %v3608_v20 = vld [vmem:[#allocation2] sm:$0xff] }
 0x706   :  { %2931 = vmatmul.mubr.msk.f32.vlgmr.msra.gmra.mxu1 %vm34_vm0, %v3608_v20  ;;  %2942 = vmatmul.mubr.msk.f32.vlgmr.msra.gmra.mxu0 %vm34_vm0, %v3608_v20 }
 0x707   :  { %2945 = vmatpush3.msra.mxu1 %v3360_v11  ;;  %2952 = vmatprep.mubr.msk.f32.mxu1 %vm3227_vm1, %v3226_v0 }
 0x708   :  { %2946 = vmatprep.subr.mxu1 %v3226_v0  ;;  %2963 = vmatprep.mubr.msk.f32.mxu0 %vm3227_vm1, %v3226_v0 }
 0x709   :  { %2947 = vmatpush3.msra.mxu1 %v3367_v12  ;;  %2956 = vmatpush3.msra.mxu0 %v3666_v47 }
 0x70a   :  { %2948 = vmatprep.subr.mxu1 %v3226_v0  ;;  %2957 = vmatprep.subr.mxu0 %v3226_v0 }
 0x70b   :  { %2949 = vmatpush3.msra.mxu1 %v3372_v13  ;;  %2958 = vmatpush3.msra.mxu0 %v3671_v60 }
 0x70c   :  { %2950 = vmatprep.subr.mxu1 %v3226_v0  ;;  %2959 = vmatprep.subr.mxu0 %v3226_v0 }
 0x70d   :  { %2951 = vmatpush3.msra.mxu1 %v3380_v14  ;;  %2960 = vmatpush3.msra.mxu0 %v3678_v62 }
 0x70e   :  { %2953 = vmatmul.mubr.msk.f32.vlgmr.msra.gmra.mxu1 %vm34_vm0, %v3608_v20  ;;  %2966 = vmatprep.subr.mxu1 %v3226_v0 }
 0x70f   :  { %2967 = vmatpush3.msra.mxu1 %v3294_v4  ;;  %2974 = vmatprep.mubr.msk.f32.mxu1 %vm3227_vm1, %v3226_v0  ;;  %v2629_v4 = vld [vmem:[%s4046_s0 + $0x18] sm:$0xff] }
 0x710   :  { %2968 = vmatprep.subr.mxu1 %v3226_v0  ;;  %2961 = vmatprep.subr.mxu0 %v3226_v0 }
 0x711   :  { %2969 = vmatpush3.msra.mxu1 %v3307_v6  ;;  %v2630_v6 = vld [vmem:[%s4047_s1 + $0x18] sm:$0xff]  ;;  %2962 = vmatpush3.msra.mxu0 %v3685_v63 }
 0x712   :  { %2970 = vmatprep.subr.mxu1 %v3226_v0  ;;  %2977 = vmatprep.subr.mxu0 %v3226_v0 }
 0x713   :  { %2971 = vmatpush3.msra.mxu1 %v3314_v7 }
 0x714   :  { %2972 = vmatprep.subr.mxu1 %v3226_v0 }
 0x715   :  { %2973 = vmatpush3.msra.mxu1 %v3328_v9 }
 0x716   :  { %2988 = vmatprep.subr.mxu1 %v3226_v0 }
 0x7c6   :  { %v1096_v39 = vpop.f32.mrf.mxu1  ;;  %v1170_v21 = vpop.f32.mrf.mxu0 }
 0x7c7   :  { %v1097_v22 = vadd.f32 %v3400_v15, %v1096_v39  ;;  %v1171_v7 = vadd.f32 %v3405_v16, %v1170_v21 }
 0x7c8   :  { %v2932_v24 = vpop.f32.mrf.mxu1  ;;  %v2943_v27 = vpop.f32.mrf.mxu0 }
 0x7c9   :  { %v1250_v28 = vadd.f32 %v2629_v4, %v1097_v22  ;;  %v3646_v9 = vadd.f32 %v2630_v6, %v1171_v7 }
 0x7cb   :  { %v1254_v29 = vsel %vm34_vm0, %v1250_v28, 0.0  ;;  %v1258_v30 = vmul.f32 %v1250_v28, %v1250_v28  ;;  %v1275_v61 = vmul.f32 %v3646_v9, %v3646_v9  ;;  %v1271_v32 = vsel %vm34_vm0, %v3646_v9, 0.0 }
 0x7cc   :  { %1255 = vadd.xlane.f32.xlu0 %v1254_v29 }
 0x7cd   :  { %v1259_v26 = vsel %vm34_vm0, %v1258_v30, 0.0  ;;  %v1276_v34 = vsel %vm34_vm0, %v1275_v61, 0.0 }
 0x7ce   :  { %v1244_v31 = vpop.f32.mrf.mxu1  ;;  %1260 = vadd.xlane.f32.xlu1 %v1259_v26 }
 0x7cf   :  { %v1245_v10 = vadd.f32 %v3434_v52, %v1244_v31 }
 0x7d0   :  { %v2954_v33 = vpop.f32.mrf.mxu1  ;;  %1272 = vadd.xlane.f32.xlu0 %v1271_v32 }
 0x7d2   :  { %1277 = vadd.xlane.f32.xlu1 %v1276_v34 }
 0x855   :  { %v1256_v35 = vpop.xlane.xlu0 %1255 }
 0x856   :  { %v1257_v36 = vmul.f32 0.03125, %v1256_v35 }
 0x857   :  { %v1261_v38 = vpop.xlane.xlu1 %1260 }
 0x858   :  { %v1263_v1 = vmul.f32 %v1257_v36, %v1257_v36  ;;  %v1262_v2 = vmul.f32 0.03125, %v1261_v38  ;;  %v1265_v51 = vsub.f32 %v1250_v28, %v1257_v36 }
 0x859   :  { %v1273_v3 = vpop.xlane.xlu0 %1272 }
 0x85a   :  { %v1264_v5 = vsub.f32 %v1262_v2, %v1263_v1  ;;  %v1274_v17 = vmul.f32 0.03125, %v1273_v3 }
 0x85b   :  { %v1278_v18 = vpop.xlane.xlu1 %1277 }
 0x85c   :  { %v1266_v8 = vadd.f32 1e-05, %v1264_v5  ;;  %v1280_v19 = vmul.f32 %v1274_v17, %v1274_v17  ;;  %v1279_v39 = vmul.f32 0.03125, %v1278_v18  ;;  %v1282_v22 = vsub.f32 %v3646_v9, %v1274_v17 }
 0x85e   :  { %3137 = vrsqrt.f32 %v1266_v8  ;;  %v1281_v4 = vsub.f32 %v1279_v39, %v1280_v19 }
 0x860   :  { %v1283_v21 = vadd.f32 1e-05, %v1281_v4 }
 0x86b   :  { %v3138_v41 = vpop.eup %3137 }
 0x86c   :  { %v1268_v42 = vmul.f32 %v3138_v41, %v1265_v51 }
 0x86e   :  { %v1269_v43 = vmul.f32 %v3422_v44, %v1268_v42 }
 0x870   :  { %v1270_v45 = vadd.f32 %v3427_v46, %v1269_v43 }
 0x872   :  { %v2631_v48 = vmul.f32 -1.442695, %v1270_v45 }
 0x874   :  { %3139 = vpow2.f32 %v2631_v48 }
 0x881   :  { %v3140_v49 = vpop.eup %3139 }
 0x882   :  { %v1291_v50 = vadd.f32 1.0, %v3140_v49 }
 0x884   :  { %3141 = vrcp.f32 %v1291_v50 }
 0x885   :  { %3143 = vrsqrt.f32 %v1283_v21 }
 0x891   :  { %v3142_v53 = vpop.eup %3141 }
 0x892   :  { %v1302_v55 = vmul.f32 %v3142_v53, %v1245_v10  ;;  %v3144_v6 = vpop.eup %3143 }
 0x893   :  { %v1285_v7 = vmul.f32 %v3144_v6, %v1282_v22 }
 0x894   :  { %v1303_v56 = vadd.f32 %v2633_v54, %v1302_v55 }
 0x895   :  { %v1286_v24 = vmul.f32 %v3445_v23, %v1285_v7 }
 0x896   :  { %v1304_v57 = vsel %vm34_vm0, %v1303_v56, 0.0  ;;  %v1308_v58 = vmul.f32 %v1303_v56, %v1303_v56 }
 0x897   :  { %1305 = vadd.xlane.f32.xlu0 %v1304_v57  ;;  %v1287_v30 = vadd.f32 %v3451_v25, %v1286_v24 }
 0x898   :  { %v1309_v59 = vsel %vm34_vm0, %v1308_v58, 0.0 }
 0x899   :  { %1310 = vadd.xlane.f32.xlu1 %v1309_v59  ;;  %v2632_v32 = vmul.f32 -1.442695, %v1287_v30 }
 0x920   :  { %v1306_v27 = vpop.xlane.xlu0 %1305 }
 0x921   :  { %v1307_v28 = vmul.f32 0.03125, %v1306_v27 }
 0x922   :  { %v1311_v29 = vpop.xlane.xlu1 %1310 }
 0x923   :  { %v1313_v26 = vmul.f32 %v1307_v28, %v1307_v28  ;;  %v1312_v61 = vmul.f32 0.03125, %v1311_v29  ;;  %v1315_v34 = vsub.f32 %v1303_v56, %v1307_v28 }
 0x925   :  { %v1314_v31 = vsub.f32 %v1312_v61, %v1313_v26  ;;  %v2650_v61 = vld [vmem:[%s4050_s2 + $0x20] sm:$0xff] }
 0x927   :  { %v1316_v33 = vadd.f32 1e-05, %v1314_v31 }
 0x929   :  { %3145 = vrsqrt.f32 %v1316_v33 }
 0x92a   :  { %3147 = vpow2.f32 %v2632_v32 }
 0x936   :  { %v3146_v35 = vpop.eup %3145 }
 0x937   :  { %v1318_v36 = vmul.f32 %v3146_v35, %v1315_v34  ;;  %v3148_v38 = vpop.eup %3147  ;;  %v3772_v35 = vld [vmem:[%s4043_s4 + $0x28] sm:$0xff] }
 0x938   :  { %v1297_v1 = vadd.f32 1.0, %v3148_v38 }
 0x939   :  { %v1319_v9 = vmul.f32 %v3457_v37, %v1318_v36  ;;  %v3779_v36 = vld [vmem:[%s4043_s4 + $0x20] sm:$0xff] }
 0x93b   :  { %v1320_v2 = vadd.f32 %v3462_v40, %v1319_v9 }
 0x93d   :  { %3149 = vtanh.f32 %v1320_v2 }
 0x93e   :  { %3151 = vrcp.f32 %v1297_v1 }
 0x94a   :  { %v3150_v5 = vpop.eup %3149 }
 0x94b   :  { %v1322_v8 = vsub.f32 %v3608_v20, %v3150_v5  ;;  %v3152_v51 = vpop.eup %3151 }
 0x94d   :  { %v1323_v41 = vmul.f32 %v3152_v51, %v1322_v8 }
 0x94f   :  { %v1324_v42 = vadd.f32 %v3150_v5, %v1323_v41 }
 0x951   :  { %2634 = vst.msk [vmem:[%s4051_s8 + $0x18] sm:$0xff] %vm34_vm0, %v1324_v42  ;;  %1325 = vst.msk [vmem:[#allocation2] sm:$0xff] %vm34_vm0, %v1324_v42 }
 0x958   :  { %v3702_v43 = vld [vmem:[#allocation2] sm:$0xff] }
 0x959   :  { %2964 = vmatmul.mubr.msk.f32.vlgmr.msra.gmra.mxu0 %vm34_vm0, %v3702_v43  ;;  %2975 = vmatmul.mubr.msk.f32.vlgmr.msra.gmra.mxu1 %vm34_vm0, %v3702_v43 }
 0x95a   :  { %2978 = vmatpush3.msra.mxu0 %v3360_v11  ;;  %2985 = vmatprep.mubr.msk.f32.mxu0 %vm3227_vm1, %v3226_v0 }
 0x95b   :  { %2979 = vmatprep.subr.mxu0 %v3226_v0  ;;  %2989 = vmatpush3.msra.mxu1 %v3666_v47 }
 0x95c   :  { %2980 = vmatpush3.msra.mxu0 %v3367_v12  ;;  %2990 = vmatprep.subr.mxu1 %v3226_v0  ;;  %v2646_v12 = vld [vmem:[%s4046_s0 + $0x20] sm:$0xff] }
 0x95d   :  { %2981 = vmatprep.subr.mxu0 %v3226_v0  ;;  %2991 = vmatpush3.msra.mxu1 %v3671_v60 }
 0x95e   :  { %2982 = vmatpush3.msra.mxu0 %v3372_v13  ;;  %2992 = vmatprep.subr.mxu1 %v3226_v0 }
 0x95f   :  { %2983 = vmatprep.subr.mxu0 %v3226_v0  ;;  %2993 = vmatpush3.msra.mxu1 %v3678_v62 }
 0x960   :  { %2984 = vmatpush3.msra.mxu0 %v3380_v14  ;;  %2994 = vmatprep.subr.mxu1 %v3226_v0  ;;  %v2647_v14 = vld [vmem:[%s4047_s1 + $0x20] sm:$0xff] }
 0x961   :  { %2986 = vmatmul.mubr.msk.f32.vlgmr.msra.gmra.mxu0 %vm34_vm0, %v3702_v43  ;;  %2999 = vmatprep.subr.mxu0 %v3226_v0 }
 0x962   :  { %2995 = vmatpush3.msra.mxu1 %v3685_v63  ;;  %2996 = vmatprep.mubr.msk.f32.mxu1 %vm3227_vm1, %v3226_v0 }
 0x963   :  { %3007 = vmatprep.mubr.msk.f32.mxu0 %vm3227_vm1, %v3226_v0  ;;  %3010 = vmatprep.subr.mxu1 %v3226_v0 }
 0xa19   :  { %v1402_v11 = vpop.f32.mrf.mxu0  ;;  %v1476_v13 = vpop.f32.mrf.mxu1 }
 0xa1a   :  { %v1403_v20 = vadd.f32 %v3400_v15, %v1402_v11  ;;  %v1477_v45 = vadd.f32 %v3405_v16, %v1476_v13 }
 0xa1b   :  { %v2965_v48 = vpop.f32.mrf.mxu0  ;;  %v2976_v49 = vpop.f32.mrf.mxu1 }
 0xa1c   :  { %v1556_v50 = vadd.f32 %v2646_v12, %v1403_v20  ;;  %v3740_v10 = vadd.f32 %v2647_v14, %v1477_v45 }
 0xa1e   :  { %v1560_v53 = vsel %vm34_vm0, %v1556_v50, 0.0  ;;  %v1564_v54 = vmul.f32 %v1556_v50, %v1556_v50  ;;  %v1581_v56 = vmul.f32 %v3740_v10, %v3740_v10  ;;  %v1577_v15 = vsel %vm34_vm0, %v3740_v10, 0.0 }
 0xa1f   :  { %1561 = vadd.xlane.f32.xlu0 %v1560_v53 }
 0xa20   :  { %v1565_v55 = vsel %vm34_vm0, %v1564_v54, 0.0  ;;  %v1582_v58 = vsel %vm34_vm0, %v1581_v56, 0.0 }
 0xa21   :  { %v1550_v57 = vpop.f32.mrf.mxu0  ;;  %1566 = vadd.xlane.f32.xlu1 %v1565_v55 }
 0xa22   :  { %v1551_v30 = vadd.f32 %v3434_v52, %v1550_v57  ;;  %v3765_v52 = vld [vmem:[%s4043_s4 + $0x30] sm:$0xff] }
 0xa23   :  { %v2987_v16 = vpop.f32.mrf.mxu0  ;;  %1578 = vadd.xlane.f32.xlu0 %v1577_v15 }
 0xa25   :  { %1583 = vadd.xlane.f32.xlu1 %v1582_v58 }
 0xaa8   :  { %v1562_v59 = vpop.xlane.xlu0 %1561 }
 0xaa9   :  { %v1563_v3 = vmul.f32 0.03125, %v1562_v59 }
 0xaaa   :  { %v1567_v17 = vpop.xlane.xlu1 %1566 }
 0xaab   :  { %v1569_v18 = vmul.f32 %v1563_v3, %v1563_v3  ;;  %v1568_v19 = vmul.f32 0.03125, %v1567_v17  ;;  %v1571_v21 = vsub.f32 %v1556_v50, %v1563_v3 }
 0xaac   :  { %v1579_v38 = vpop.xlane.xlu0 %1578 }
 0xaad   :  { %v1570_v39 = vsub.f32 %v1568_v19, %v1569_v18  ;;  %v1580_v9 = vmul.f32 0.03125, %v1579_v38  ;;  %v3819_v18 = vld [vmem:[%s4043_s4 + $0x48] sm:$0xff]  ;;  %v3828_v19 = vld [vmem:[%s4043_s4 + $0x40] sm:$0xff] }
 0xaae   :  { %v1584_v1 = vpop.xlane.xlu1 %1583 }
 0xaaf   :  { %v1572_v4 = vadd.f32 1e-05, %v1570_v39  ;;  %v1586_v2 = vmul.f32 %v1580_v9, %v1580_v9  ;;  %v1585_v5 = vmul.f32 0.03125, %v1584_v1  ;;  %v1588_v42 = vsub.f32 %v3740_v10, %v1580_v9 }
 0xab1   :  { %3153 = vrsqrt.f32 %v1572_v4  ;;  %v1587_v8 = vsub.f32 %v1585_v5, %v1586_v2  ;;  %v2663_v4 = vld [vmem:[%s4046_s0 + $0x28] sm:$0xff] }
 0xab3   :  { %v1589_v51 = vadd.f32 1e-05, %v1587_v8 }
 0xabe   :  { %v3154_v6 = vpop.eup %3153 }
 0xabf   :  { %v1574_v22 = vmul.f32 %v3154_v6, %v1571_v21  ;;  %v2664_v6 = vld [vmem:[%s4047_s1 + $0x28] sm:$0xff] }
 0xac1   :  { %v1575_v7 = vmul.f32 %v3422_v44, %v1574_v22  ;;  %v3863_v22 = vld [vmem:[%s4045_s5] ss:$0 sm:$0xff] }
 0xac3   :  { %v1576_v24 = vadd.f32 %v3427_v46, %v1575_v7  ;;  %v3760_v46 = vld [vmem:[%s4043_s4 + $0x38] sm:$0xff] }
 0xac4   :  { %3000 = vmatpush3.msra.mxu0 %v3760_v46 }
 0xac5   :  { %v2648_v27 = vmul.f32 -1.442695, %v1576_v24  ;;  %3001 = vmatprep.subr.mxu0 %v3226_v0  ;;  %v3869_v24 = vld [vmem:[%s4045_s5 + $0x1] ss:$0 sm:$0xff] }
 0xac6   :  { %3002 = vmatpush3.msra.mxu0 %v3765_v52 }
 0xac7   :  { %3155 = vpow2.f32 %v2648_v27  ;;  %3003 = vmatprep.subr.mxu0 %v3226_v0 }
 0xac8   :  { %3004 = vmatpush3.msra.mxu0 %v3772_v35 }
 0xac9   :  { %3005 = vmatprep.subr.mxu0 %v3226_v0 }
 0xaca   :  { %3006 = vmatpush3.msra.mxu0 %v3779_v36 }
 0xacb   :  { %3021 = vmatprep.subr.mxu0 %v3226_v0 }
 0xad4   :  { %v3156_v28 = vpop.eup %3155 }
 0xad5   :  { %v1597_v29 = vadd.f32 1.0, %v3156_v28 }
 0xad7   :  { %3157 = vrcp.f32 %v1597_v29 }
 0xad8   :  { %3159 = vrsqrt.f32 %v1589_v51 }
 0xae4   :  { %v3158_v26 = vpop.eup %3157 }
 0xae5   :  { %v1608_v31 = vmul.f32 %v3158_v26, %v1551_v30  ;;  %v3160_v41 = vpop.eup %3159 }
 0xae6   :  { %v1591_v11 = vmul.f32 %v3160_v41, %v1588_v42 }
 0xae7   :  { %v1609_v32 = vadd.f32 %v2650_v61, %v1608_v31 }
 0xae8   :  { %v1592_v12 = vmul.f32 %v3445_v23, %v1591_v11 }
 0xae9   :  { %v1610_v33 = vsel %vm34_vm0, %v1609_v32, 0.0  ;;  %v1614_v34 = vmul.f32 %v1609_v32, %v1609_v32 }
 0xaea   :  { %1611 = vadd.xlane.f32.xlu0 %v1610_v33  ;;  %v1593_v45 = vadd.f32 %v3451_v25, %v1592_v12 }
 0xaeb   :  { %v1615_v44 = vsel %vm34_vm0, %v1614_v34, 0.0 }
 0xaec   :  { %1616 = vadd.xlane.f32.xlu1 %v1615_v44  ;;  %v2649_v53 = vmul.f32 -1.442695, %v1593_v45  ;;  %v3885_v45 = vld [vmem:[%s4049_s7] ss:$0 sm:$0xff] }
 0xb73   :  { %v1612_v13 = vpop.xlane.xlu0 %1611 }
 0xb74   :  { %v1613_v14 = vmul.f32 0.03125, %v1612_v13 }
 0xb75   :  { %v1617_v20 = vpop.xlane.xlu1 %1616 }
 0xb76   :  { %v1619_v48 = vmul.f32 %v1613_v14, %v1613_v14  ;;  %v1618_v49 = vmul.f32 0.03125, %v1617_v20  ;;  %v1621_v55 = vsub.f32 %v1609_v32, %v1613_v14  ;;  %v3879_v14 = vld [vmem:[%s4048_s6] ss:$0 sm:$0xff] }
 0xb78   :  { %v1620_v50 = vsub.f32 %v1618_v49, %v1619_v48 }
 0xb7a   :  { %v1622_v54 = vadd.f32 1e-05, %v1620_v50 }
 0xb7c   :  { %3161 = vrsqrt.f32 %v1622_v54  ;;  %v3891_v54 = vld [vmem:[%s4045_s5 + $0x2] ss:$0 sm:$0xff] }
 0xb7d   :  { %3163 = vpow2.f32 %v2649_v53 }
 0xb89   :  { %v3162_v56 = vpop.eup %3161 }
 0xb8a   :  { %v1624_v57 = vmul.f32 %v3162_v56, %v1621_v55  ;;  %v3164_v15 = vpop.eup %3163 }
 0xb8b   :  { %v1603_v16 = vadd.f32 1.0, %v3164_v15 }
 0xb8c   :  { %v1625_v10 = vmul.f32 %v3457_v37, %v1624_v57  ;;  %v3799_v37 = vld [vmem:[%s4043_s4 + $0x58] sm:$0xff]  ;;  %v2667_v57 = vld [vmem:[%s4050_s2 + $0x28] sm:$0xff] }
 0xb8e   :  { %v1626_v23 = vadd.f32 %v3462_v40, %v1625_v10 }
 0xb90   :  { %3165 = vtanh.f32 %v1626_v23 }
 0xb91   :  { %3167 = vrcp.f32 %v1603_v16 }
 0xb9d   :  { %v3166_v58 = vpop.eup %3165 }
 0xb9e   :  { %v1628_v25 = vsub.f32 %v3702_v43, %v3166_v58  ;;  %v3168_v59 = vpop.eup %3167  ;;  %v3810_v43 = vld [vmem:[%s4043_s4 + $0x50] sm:$0xff] }
 0xba0   :  { %v1629_v3 = vmul.f32 %v3168_v59, %v1628_v25 }
 0xba2   :  { %v1630_v17 = vadd.f32 %v3166_v58, %v1629_v3 }
 0xba4   :  { %2651 = vst.msk [vmem:[%s4051_s8 + $0x20] sm:$0xff] %vm34_vm0, %v1630_v17  ;;  %1631 = vst.msk [vmem:[#allocation2] sm:$0xff] %vm34_vm0, %v1630_v17 }
 0xbab   :  { %v3801_v40 = vld [vmem:[#allocation2] sm:$0xff] }
 0xbac   :  { %2997 = vmatmul.mubr.msk.f32.vlgmr.msra.gmra.mxu1 %vm34_vm0, %v3801_v40  ;;  %3008 = vmatmul.mubr.msk.f32.vlgmr.msra.gmra.mxu0 %vm34_vm0, %v3801_v40 }
 0xbad   :  { %3011 = vmatpush3.msra.mxu1 %v3799_v37  ;;  %3018 = vmatprep.mubr.msk.f32.mxu1 %vm3227_vm1, %v3226_v0 }
 0xbae   :  { %3012 = vmatprep.subr.mxu1 %v3226_v0  ;;  %3022 = vmatpush3.msra.mxu0 %v3666_v47 }
 0xbaf   :  { %3013 = vmatpush3.msra.mxu1 %v3810_v43  ;;  %3023 = vmatprep.subr.mxu0 %v3226_v0 }
 0xbb0   :  { %3014 = vmatprep.subr.mxu1 %v3226_v0  ;;  %3024 = vmatpush3.msra.mxu0 %v3671_v60 }
 0xbb1   :  { %3015 = vmatpush3.msra.mxu1 %v3819_v18  ;;  %3025 = vmatprep.subr.mxu0 %v3226_v0 }
 0xbb2   :  { %3016 = vmatprep.subr.mxu1 %v3226_v0  ;;  %3026 = vmatpush3.msra.mxu0 %v3678_v62 }
 0xbb3   :  { %3017 = vmatpush3.msra.mxu1 %v3828_v19  ;;  %3027 = vmatprep.subr.mxu0 %v3226_v0 }
 0xbb4   :  { %3019 = vmatmul.mubr.msk.f32.vlgmr.msra.gmra.mxu1 %vm34_vm0, %v3801_v40  ;;  %3032 = vmatprep.subr.mxu1 %v3226_v0 }
 0xbb5   :  { %3033 = vmatpush3.msra.mxu1 %v3760_v46  ;;  %3028 = vmatpush3.msra.mxu0 %v3685_v63 }
 0xbb6   :  { %3034 = vmatprep.subr.mxu1 %v3226_v0  ;;  %3029 = vmatprep.mubr.msk.f32.mxu0 %vm3227_vm1, %v3226_v0 }
 0xbb7   :  { %3035 = vmatpush3.msra.mxu1 %v3765_v52  ;;  %3040 = vmatprep.mubr.msk.f32.mxu1 %vm3227_vm1, %v3226_v0 }
 0xbb8   :  { %3036 = vmatprep.subr.mxu1 %v3226_v0  ;;  %3043 = vmatprep.subr.mxu0 %v3226_v0 }
 0xbb9   :  { %3037 = vmatpush3.msra.mxu1 %v3772_v35 }
 0xbba   :  { %3038 = vmatprep.subr.mxu1 %v3226_v0 }
 0xbbb   :  { %3039 = vmatpush3.msra.mxu1 %v3779_v36 }
 0xbbc   :  { %3054 = vmatprep.subr.mxu1 %v3226_v0 }
 0xc6c   :  { %v1708_v39 = vpop.f32.mrf.mxu1  ;;  %v1782_v21 = vpop.f32.mrf.mxu0 }
 0xc6d   :  { %v1709_v7 = vadd.f32 %v3863_v22, %v1708_v39  ;;  %v1783_v27 = vadd.f32 %v3869_v24, %v1782_v21 }
 0xc6e   :  { %v2998_v28 = vpop.f32.mrf.mxu1  ;;  %v3009_v29 = vpop.f32.mrf.mxu0 }
 0xc6f   :  { %v1862_v30 = vadd.f32 %v2663_v4, %v1709_v7  ;;  %v1865_v26 = vadd.f32 %v2664_v6, %v1783_v27  ;;  %v3902_v28 = vld [vmem:[%s4048_s6 + $0x1] ss:$0 sm:$0xff] }
 0xc71   :  { %v1866_v61 = vsel %vm34_vm0, %v1862_v30, 0.0  ;;  %v1870_v31 = vmul.f32 %v1862_v30, %v1862_v30  ;;  %v1887_v33 = vmul.f32 %v1865_v26, %v1865_v26  ;;  %v1883_v44 = vsel %vm34_vm0, %v1865_v26, 0.0 }
 0xc72   :  { %1867 = vadd.xlane.f32.xlu0 %v1866_v61 }
 0xc73   :  { %v1871_v32 = vsel %vm34_vm0, %v1870_v31, 0.0  ;;  %v1888_v9 = vsel %vm34_vm0, %v1887_v33, 0.0 }
 0xc74   :  { %v1856_v34 = vpop.f32.mrf.mxu1  ;;  %1872 = vadd.xlane.f32.xlu1 %v1871_v32  ;;  %v3908_v32 = vld [vmem:[%s4049_s7 + $0x1] ss:$0 sm:$0xff] }
 0xc75   :  { %v1857_v55 = vadd.f32 %v3891_v54, %v1856_v34 }
 0xc76   :  { %v3020_v38 = vpop.f32.mrf.mxu1  ;;  %1884 = vadd.xlane.f32.xlu0 %v1883_v44 }
 0xc78   :  { %1889 = vadd.xlane.f32.xlu1 %v1888_v9 }
 0xcfb   :  { %v1868_v1 = vpop.xlane.xlu0 %1867 }
 0xcfc   :  { %v1869_v2 = vmul.f32 0.03125, %v1868_v1 }
 0xcfd   :  { %v1873_v5 = vpop.xlane.xlu1 %1872 }
 0xcfe   :  { %v1875_v8 = vmul.f32 %v1869_v2, %v1869_v2  ;;  %v1874_v51 = vmul.f32 0.03125, %v1873_v5  ;;  %v1877_v11 = vsub.f32 %v1862_v30, %v1869_v2 }
 0xcff   :  { %v1885_v25 = vpop.xlane.xlu0 %1884 }
 0xd00   :  { %v1876_v41 = vsub.f32 %v1874_v51, %v1875_v8  ;;  %v1886_v59 = vmul.f32 0.03125, %v1885_v25  ;;  %v3914_v51 = vld [vmem:[%s4048_s6 + $0x2] ss:$0 sm:$0xff] }
 0xd01   :  { %v1890_v3 = vpop.xlane.xlu1 %1889 }
 0xd02   :  { %v1878_v42 = vadd.f32 1e-05, %v1876_v41  ;;  %v1892_v17 = vmul.f32 %v1886_v59, %v1886_v59  ;;  %v1891_v39 = vmul.f32 0.03125, %v1890_v3  ;;  %v1894_v7 = vsub.f32 %v1865_v26, %v1886_v59 }
 0xd04   :  { %3169 = vrsqrt.f32 %v1878_v42  ;;  %v1893_v4 = vsub.f32 %v1891_v39, %v1892_v17 }
 0xd06   :  { %v1895_v21 = vadd.f32 1e-05, %v1893_v4 }
 0xd11   :  { %v3170_v12 = vpop.eup %3169 }
 0xd12   :  { %v1880_v13 = vmul.f32 %v3170_v12, %v1877_v11  ;;  %v3920_v11 = vld [vmem:[%s4049_s7 + $0x2] ss:$0 sm:$0xff] }
 0xd14   :  { %v1881_v20 = vmul.f32 %v3879_v14, %v1880_v13 }
 0xd16   :  { %v1882_v48 = vadd.f32 %v3885_v45, %v1881_v20 }
 0xd18   :  { %v2665_v49 = vmul.f32 -1.442695, %v1882_v48 }
 0xd1a   :  { %3171 = vpow2.f32 %v2665_v49 }
 0xd27   :  { %v3172_v50 = vpop.eup %3171 }
 0xd28   :  { %v1903_v53 = vadd.f32 1.0, %v3172_v50 }
 0xd2a   :  { %3173 = vrcp.f32 %v1903_v53 }
 0xd2b   :  { %3175 = vrsqrt.f32 %v1895_v21 }
 0xd37   :  { %v3174_v56 = vpop.eup %3173 }
 0xd38   :  { %v1914_v15 = vmul.f32 %v3174_v56, %v1857_v55  ;;  %v3176_v6 = vpop.eup %3175 }
 0xd39   :  { %v1897_v27 = vmul.f32 %v3176_v6, %v1894_v7 }
 0xd3a   :  { %v1915_v10 = vadd.f32 %v2667_v57, %v1914_v15 }
 0xd3b   :  { %v1898_v29 = vmul.f32 %v3902_v28, %v1897_v27 }
 0xd3c   :  { %v1916_v16 = vsel %vm34_vm0, %v1915_v10, 0.0  ;;  %v1920_v23 = vmul.f32 %v1915_v10, %v1915_v10 }
 0xd3d   :  { %1917 = vadd.xlane.f32.xlu0 %v1916_v16  ;;  %v1899_v33 = vadd.f32 %v3908_v32, %v1898_v29 }
 0xd3e   :  { %v1921_v58 = vsel %vm34_vm0, %v1920_v23, 0.0 }
 0xd3f   :  { %1922 = vadd.xlane.f32.xlu1 %v1921_v58  ;;  %v2666_v38 = vmul.f32 -1.442695, %v1899_v33 }
 0xdc6   :  { %v1918_v30 = vpop.xlane.xlu0 %1917 }
 0xdc7   :  { %v1919_v61 = vmul.f32 0.03125, %v1918_v30 }
 0xdc8   :  { %v1923_v31 = vpop.xlane.xlu1 %1922 }
 0xdc9   :  { %v1925_v34 = vmul.f32 %v1919_v61, %v1919_v61  ;;  %v1924_v26 = vmul.f32 0.03125, %v1923_v31  ;;  %v1927_v1 = vsub.f32 %v1915_v10, %v1919_v61 }
 0xdcb   :  { %v1926_v44 = vsub.f32 %v1924_v26, %v1925_v34 }
 0xdcd   :  { %v1928_v9 = vadd.f32 1e-05, %v1926_v44 }
 0xdcf   :  { %3177 = vrsqrt.f32 %v1928_v9 }
 0xdd0   :  { %3179 = vpow2.f32 %v2666_v38  ;;  %v2684_v38 = vld [vmem:[%s4050_s2 + $0x30] sm:$0xff] }
 0xddc   :  { %v3178_v2 = vpop.eup %3177 }
 0xddd   :  { %v1930_v5 = vmul.f32 %v3178_v2, %v1927_v1  ;;  %v3180_v8 = vpop.eup %3179 }
 0xdde   :  { %v1909_v42 = vadd.f32 1.0, %v3180_v8 }
 0xddf   :  { %v1931_v41 = vmul.f32 %v3914_v51, %v1930_v5 }
 0xde1   :  { %v1932_v12 = vadd.f32 %v3920_v11, %v1931_v41 }
 0xde3   :  { %3181 = vtanh.f32 %v1932_v12 }
 0xde4   :  { %3183 = vrcp.f32 %v1909_v42 }
 0xdf0   :  { %v3182_v13 = vpop.eup %3181 }
 0xdf1   :  { %v1934_v20 = vsub.f32 %v3801_v40, %v3182_v13  ;;  %v3184_v48 = vpop.eup %3183 }
 0xdf3   :  { %v1935_v49 = vmul.f32 %v3184_v48, %v1934_v20 }
 0xdf5   :  { %v1936_v50 = vadd.f32 %v3182_v13, %v1935_v49 }
 0xdf7   :  { %2668 = vst.msk [vmem:[%s4051_s8 + $0x28] sm:$0xff] %vm34_vm0, %v1936_v50  ;;  %1937 = vst.msk [vmem:[#allocation2] sm:$0xff] %vm34_vm0, %v1936_v50 }
 0xdfe   :  { %v3929_v53 = vld [vmem:[#allocation2] sm:$0xff] }
 0xdff   :  { %3030 = vmatmul.mubr.msk.f32.vlgmr.msra.gmra.mxu0 %vm34_vm0, %v3929_v53  ;;  %3041 = vmatmul.mubr.msk.f32.vlgmr.msra.gmra.mxu1 %vm34_vm0, %v3929_v53 }
 0xe00   :  { %3044 = vmatpush3.msra.mxu0 %v3799_v37  ;;  %3051 = vmatprep.mubr.msk.f32.mxu0 %vm3227_vm1, %v3226_v0 }
 0xe01   :  { %3045 = vmatprep.subr.mxu0 %v3226_v0  ;;  %3055 = vmatpush3.msra.mxu1 %v3666_v47 }
 0xe02   :  { %3046 = vmatpush3.msra.mxu0 %v3810_v43  ;;  %3056 = vmatprep.subr.mxu1 %v3226_v0 }
 0xe03   :  { %3047 = vmatprep.subr.mxu0 %v3226_v0  ;;  %3057 = vmatpush3.msra.mxu1 %v3671_v60  ;;  %v2680_v60 = vld [vmem:[%s4046_s0 + $0x30] sm:$0xff] }
 0xe04   :  { %3048 = vmatpush3.msra.mxu0 %v3819_v18  ;;  %3058 = vmatprep.subr.mxu1 %v3226_v0 }
 0xe05   :  { %3049 = vmatprep.subr.mxu0 %v3226_v0  ;;  %3059 = vmatpush3.msra.mxu1 %v3678_v62 }
 0xe06   :  { %3050 = vmatpush3.msra.mxu0 %v3828_v19  ;;  %3060 = vmatprep.subr.mxu1 %v3226_v0 }
 0xe07   :  { %3052 = vmatmul.mubr.msk.f32.vlgmr.msra.gmra.mxu0 %vm34_vm0, %v3929_v53  ;;  %3065 = vmatprep.subr.mxu0 %v3226_v0 }
 0xe08   :  { %3066 = vmatpush3.msra.mxu0 %v3760_v46  ;;  %3061 = vmatpush3.msra.mxu1 %v3685_v63  ;;  %v2681_v63 = vld [vmem:[%s4047_s1 + $0x30] sm:$0xff] }
 0xe09   :  { %3067 = vmatprep.subr.mxu0 %v3226_v0  ;;  %3062 = vmatprep.mubr.msk.f32.mxu1 %vm3227_vm1, %v3226_v0 }
 0xe0a   :  { %3068 = vmatpush3.msra.mxu0 %v3765_v52  ;;  %3073 = vmatprep.mubr.msk.f32.mxu0 %vm3227_vm1, %v3226_v0 }
 0xe0b   :  { %3069 = vmatprep.subr.mxu0 %v3226_v0  ;;  %3076 = vmatprep.subr.mxu1 %v3226_v0 }
 0xe0c   :  { %3070 = vmatpush3.msra.mxu0 %v3772_v35 }
 0xe0d   :  { %3071 = vmatprep.subr.mxu0 %v3226_v0 }
 0xe0e   :  { %3072 = vmatpush3.msra.mxu0 %v3779_v36 }
 0xebf   :  { %v2014_v47 = vpop.f32.mrf.mxu0  ;;  %v2088_v62 = vpop.f32.mrf.mxu1 }
 0xec0   :  { %v2015_v46 = vadd.f32 %v3863_v22, %v2014_v47  ;;  %v2089_v52 = vadd.f32 %v3869_v24, %v2088_v62 }
 0xec1   :  { %v3031_v40 = vpop.f32.mrf.mxu0  ;;  %v3042_v35 = vpop.f32.mrf.mxu1 }
 0xec2   :  { %v2168_v55 = vadd.f32 %v2680_v60, %v2015_v46  ;;  %v2171_v56 = vadd.f32 %v2681_v63, %v2089_v52 }
 0xec4   :  { %v2172_v36 = vsel %vm34_vm0, %v2168_v55, 0.0  ;;  %v2176_v57 = vmul.f32 %v2168_v55, %v2168_v55  ;;  %v2193_v10 = vmul.f32 %v2171_v56, %v2171_v56  ;;  %v2189_v23 = vsel %vm34_vm0, %v2171_v56, 0.0 }
 0xec5   :  { %2173 = vadd.xlane.f32.xlu0 %v2172_v36 }
 0xec6   :  { %v2177_v15 = vsel %vm34_vm0, %v2176_v57, 0.0  ;;  %v2194_v25 = vsel %vm34_vm0, %v2193_v10, 0.0 }
 0xec7   :  { %v2162_v16 = vpop.f32.mrf.mxu0  ;;  %2178 = vadd.xlane.f32.xlu1 %v2177_v15 }
 0xec8   :  { %v2163_v26 = vadd.f32 %v3891_v54, %v2162_v16 }
 0xec9   :  { %v3053_v58 = vpop.f32.mrf.mxu0  ;;  %2190 = vadd.xlane.f32.xlu0 %v2189_v23 }
 0xecb   :  { %2195 = vadd.xlane.f32.xlu1 %v2194_v25 }
 0xf4e   :  { %v2174_v59 = vpop.xlane.xlu0 %2173 }
 0xf4f   :  { %v2175_v3 = vmul.f32 0.03125, %v2174_v59 }
 0xf50   :  { %v2179_v17 = vpop.xlane.xlu1 %2178 }
 0xf51   :  { %v2181_v39 = vmul.f32 %v2175_v3, %v2175_v3  ;;  %v2180_v4 = vmul.f32 0.03125, %v2179_v17  ;;  %v2183_v7 = vsub.f32 %v2168_v55, %v2175_v3 }
 0xf52   :  { %v2191_v41 = vpop.xlane.xlu0 %2190 }
 0xf53   :  { %v2182_v21 = vsub.f32 %v2180_v4, %v2181_v39  ;;  %v2192_v42 = vmul.f32 0.03125, %v2191_v41 }
 0xf54   :  { %v2196_v12 = vpop.xlane.xlu1 %2195 }
 0xf55   :  { %v2184_v6 = vadd.f32 1e-05, %v2182_v21  ;;  %v2198_v13 = vmul.f32 %v2192_v42, %v2192_v42  ;;  %v2197_v20 = vmul.f32 0.03125, %v2196_v12  ;;  %v2200_v47 = vsub.f32 %v2171_v56, %v2192_v42 }
 0xf57   :  { %3185 = vrsqrt.f32 %v2184_v6  ;;  %v2199_v48 = vsub.f32 %v2197_v20, %v2198_v13 }
 0xf59   :  { %v2201_v49 = vadd.f32 1e-05, %v2199_v48 }
 0xf64   :  { %v3186_v27 = vpop.eup %3185 }
 0xf65   :  { %v2186_v29 = vmul.f32 %v3186_v27, %v2183_v7 }
 0xf67   :  { %v2187_v30 = vmul.f32 %v3879_v14, %v2186_v29 }
 0xf69   :  { %v2188_v61 = vadd.f32 %v3885_v45, %v2187_v30 }
 0xf6b   :  { %v2682_v31 = vmul.f32 -1.442695, %v2188_v61 }
 0xf6d   :  { %3187 = vpow2.f32 %v2682_v31 }
 0xf7a   :  { %v3188_v33 = vpop.eup %3187 }
 0xf7b   :  { %v2209_v34 = vadd.f32 1.0, %v3188_v33 }
 0xf7d   :  { %3189 = vrcp.f32 %v2209_v34 }
 0xf7e   :  { %3191 = vrsqrt.f32 %v2201_v49 }
 0xf8a   :  { %v3190_v44 = vpop.eup %3189 }
 0xf8b   :  { %v2220_v9 = vmul.f32 %v3190_v44, %v2163_v26  ;;  %v3192_v50 = vpop.eup %3191 }
 0xf8c   :  { %v2203_v60 = vmul.f32 %v3192_v50, %v2200_v47 }
 0xf8d   :  { %v2221_v1 = vadd.f32 %v2684_v38, %v2220_v9 }
 0xf8e   :  { %v2204_v62 = vmul.f32 %v3902_v28, %v2203_v60 }
 0xf8f   :  { %v2222_v2 = vsel %vm34_vm0, %v2221_v1, 0.0  ;;  %v2226_v5 = vmul.f32 %v2221_v1, %v2221_v1 }
 0xf90   :  { %2223 = vadd.xlane.f32.xlu0 %v2222_v2  ;;  %v2205_v40 = vadd.f32 %v3908_v32, %v2204_v62 }
 0xf91   :  { %v2227_v8 = vsel %vm34_vm0, %v2226_v5, 0.0 }
 0xf92   :  { %2228 = vadd.xlane.f32.xlu1 %v2227_v8  ;;  %v2683_v57 = vmul.f32 -1.442695, %v2205_v40 }
0x1019   :  { %v2224_v63 = vpop.xlane.xlu0 %2223 }
0x101a   :  { %v2225_v46 = vmul.f32 0.03125, %v2224_v63  ;;  %v2701_v63 = vld [vmem:[%s4050_s2 + $0x38] sm:$0xff] }
0x101b   :  { %v2229_v52 = vpop.xlane.xlu1 %2228 }
0x101c   :  { %v2231_v35 = vmul.f32 %v2225_v46, %v2225_v46  ;;  %v2230_v55 = vmul.f32 0.03125, %v2229_v52  ;;  %v2233_v10 = vsub.f32 %v2221_v1, %v2225_v46 }
0x101e   :  { %v2232_v36 = vsub.f32 %v2230_v55, %v2231_v35 }
0x1020   :  { %v2234_v15 = vadd.f32 1e-05, %v2232_v36 }
0x1022   :  { %3193 = vrsqrt.f32 %v2234_v15 }
0x1023   :  { %3195 = vpow2.f32 %v2683_v57 }
0x102f   :  { %v3194_v16 = vpop.eup %3193 }
0x1030   :  { %v2236_v23 = vmul.f32 %v3194_v16, %v2233_v10  ;;  %v3196_v58 = vpop.eup %3195 }
0x1031   :  { %v2215_v25 = vadd.f32 1.0, %v3196_v58 }
0x1032   :  { %v2237_v56 = vmul.f32 %v3914_v51, %v2236_v23 }
0x1034   :  { %v2238_v59 = vadd.f32 %v3920_v11, %v2237_v56 }
0x1036   :  { %3197 = vtanh.f32 %v2238_v59 }
0x1037   :  { %3199 = vrcp.f32 %v2215_v25 }
0x1043   :  { %v3198_v3 = vpop.eup %3197 }
0x1044   :  { %v2240_v17 = vsub.f32 %v3929_v53, %v3198_v3  ;;  %v3200_v39 = vpop.eup %3199 }
0x1046   :  { %v2241_v4 = vmul.f32 %v3200_v39, %v2240_v17 }
0x1048   :  { %v2242_v21 = vadd.f32 %v3198_v3, %v2241_v4 }
0x104a   :  { %2685 = vst.msk [vmem:[%s4051_s8 + $0x30] sm:$0xff] %vm34_vm0, %v2242_v21  ;;  %2243 = vst.msk [vmem:[#allocation2] sm:$0xff] %vm34_vm0, %v2242_v21 }
0x1051   :  { %v3996_v6 = vld [vmem:[#allocation2] sm:$0xff] }
0x1052   :  { %3063 = vmatmul.mubr.msk.f32.vlgmr.msra.gmra.mxu1 %vm34_vm0, %v3996_v6  ;;  %3074 = vmatmul.mubr.msk.f32.vlgmr.msra.gmra.mxu0 %vm34_vm0, %v3996_v6 }
0x1053   :  { %3077 = vmatpush3.msra.mxu1 %v3799_v37  ;;  %3084 = vmatprep.mubr.msk.f32.mxu1 %vm3227_vm1, %v3226_v0  ;;  %v2697_v37 = vld [vmem:[%s4046_s0 + $0x38] sm:$0xff] }
0x1054   :  { %3078 = vmatprep.subr.mxu1 %v3226_v0 }
0x1055   :  { %3079 = vmatpush3.msra.mxu1 %v3810_v43  ;;  %v2698_v43 = vld [vmem:[%s4047_s1 + $0x38] sm:$0xff] }
0x1056   :  { %3080 = vmatprep.subr.mxu1 %v3226_v0 }
0x1057   :  { %3081 = vmatpush3.msra.mxu1 %v3819_v18 }
0x1058   :  { %3082 = vmatprep.subr.mxu1 %v3226_v0 }
0x1059   :  { %3083 = vmatpush3.msra.mxu1 %v3828_v19 }
0x105a   :  { %3085 = vmatmul.mubr.msk.f32.vlgmr.msra.gmra.mxu1 %vm34_vm0, %v3996_v6 }
0x1112   :  { %v2320_v53 = vpop.f32.mrf.mxu1  ;;  %v2394_v7 = vpop.f32.mrf.mxu0 }
0x1113   :  { %v2321_v27 = vadd.f32 %v3863_v22, %v2320_v53  ;;  %v2395_v18 = vadd.f32 %v3869_v24, %v2394_v7 }
0x1114   :  { %v3064_v0 = vpop.f32.mrf.mxu1  ;;  %v3075_v29 = vpop.f32.mrf.mxu0 }
0x1115   :  { %v2474_v19 = vadd.f32 %v2697_v37, %v2321_v27  ;;  %v2477_v30 = vadd.f32 %v2698_v43, %v2395_v18 }
0x1117   :  { %v2478_v61 = vsel %vm34_vm0, %v2474_v19, 0.0  ;;  %v2482_v31 = vmul.f32 %v2474_v19, %v2474_v19  ;;  %v2499_v34 = vmul.f32 %v2477_v30, %v2477_v30  ;;  %v2495_v44 = vsel %vm34_vm0, %v2477_v30, 0.0 }
0x1118   :  { %2479 = vadd.xlane.f32.xlu0 %v2478_v61 }
0x1119   :  { %v2483_v33 = vsel %vm34_vm0, %v2482_v31, 0.0  ;;  %v2500_v22 = vsel %vm34_vm0, %v2499_v34, 0.0 }
0x111a   :  { %v2468_v26 = vpop.f32.mrf.mxu1  ;;  %2484 = vadd.xlane.f32.xlu1 %v2483_v33 }
0x111b   :  { %v2469_v60 = vadd.f32 %v3891_v54, %v2468_v26 }
0x111c   :  { %v3086_v38 = vpop.f32.mrf.mxu1  ;;  %2496 = vadd.xlane.f32.xlu0 %v2495_v44 }
0x111e   :  { %2501 = vadd.xlane.f32.xlu1 %v2500_v22 }
0x11a1   :  { %v2480_v24 = vpop.xlane.xlu0 %2479 }
0x11a2   :  { %v2481_v9 = vmul.f32 0.03125, %v2480_v24 }
0x11a3   :  { %v2485_v1 = vpop.xlane.xlu1 %2484 }
0x11a4   :  { %v2487_v2 = vmul.f32 %v2481_v9, %v2481_v9  ;;  %v2486_v5 = vmul.f32 0.03125, %v2485_v1  ;;  %v2489_v42 = vsub.f32 %v2474_v19, %v2481_v9 }
0x11a6   :  { %v2488_v8 = vsub.f32 %v2486_v5, %v2487_v2 }
0x11a7   :  { %v2502_v36 = vpop.xlane.xlu1 %2501 }
0x11a8   :  { %v2490_v41 = vadd.f32 1e-05, %v2488_v8  ;;  %v2503_v15 = vmul.f32 0.03125, %v2502_v36 }
0x11aa   :  { %3201 = vrsqrt.f32 %v2490_v41 }
0x11b7   :  { %v3202_v12 = vpop.eup %3201 }
0x11b8   :  { %v2492_v13 = vmul.f32 %v3202_v12, %v2489_v42 }
0x11ba   :  { %v2493_v20 = vmul.f32 %v3879_v14, %v2492_v13 }
0x11bc   :  { %v2494_v48 = vadd.f32 %v3885_v45, %v2493_v20  ;;  %v2497_v45 = vpop.xlane.xlu0 %2496 }
0x11bd   :  { %v2498_v55 = vmul.f32 0.03125, %v2497_v45 }
0x11be   :  { %v2699_v49 = vmul.f32 -1.442695, %v2494_v48 }
0x11bf   :  { %v2504_v57 = vmul.f32 %v2498_v55, %v2498_v55  ;;  %v2506_v23 = vsub.f32 %v2477_v30, %v2498_v55 }
0x11c0   :  { %3203 = vpow2.f32 %v2699_v49 }
0x11c1   :  { %v2505_v54 = vsub.f32 %v2503_v15, %v2504_v57 }
0x11c3   :  { %v2507_v10 = vadd.f32 1e-05, %v2505_v54 }
0x11cd   :  { %v3204_v50 = vpop.eup %3203 }
0x11ce   :  { %v2515_v47 = vadd.f32 1.0, %v3204_v50 }
0x11d0   :  { %3205 = vrcp.f32 %v2515_v47 }
0x11d1   :  { %3207 = vrsqrt.f32 %v2507_v10 }
0x11dd   :  { %v3206_v62 = vpop.eup %3205 }
0x11de   :  { %v2526_v46 = vmul.f32 %v3206_v62, %v2469_v60  ;;  %v3208_v16 = vpop.eup %3207 }
0x11df   :  { %v2509_v58 = vmul.f32 %v3208_v16, %v2506_v23 }
0x11e0   :  { %v2527_v52 = vadd.f32 %v2701_v63, %v2526_v46 }
0x11e1   :  { %v2510_v56 = vmul.f32 %v3902_v28, %v2509_v58 }
0x11e2   :  { %v2528_v40 = vsel %vm34_vm0, %v2527_v52, 0.0  ;;  %v2532_v35 = vmul.f32 %v2527_v52, %v2527_v52 }
0x11e3   :  { %2529 = vadd.xlane.f32.xlu0 %v2528_v40  ;;  %v2511_v17 = vadd.f32 %v3908_v32, %v2510_v56 }
0x11e4   :  { %v2533_v14 = vsel %vm34_vm0, %v2532_v35, 0.0 }
0x11e5   :  { %2534 = vadd.xlane.f32.xlu1 %v2533_v14  ;;  %v2700_v53 = vmul.f32 -1.442695, %v2511_v17 }
0x126c   :  { %v2530_v25 = vpop.xlane.xlu0 %2529 }
0x126d   :  { %v2531_v59 = vmul.f32 0.03125, %v2530_v25 }
0x126e   :  { %v2535_v3 = vpop.xlane.xlu1 %2534 }
0x126f   :  { %v2537_v39 = vmul.f32 %v2531_v59, %v2531_v59  ;;  %v2536_v4 = vmul.f32 0.03125, %v2535_v3  ;;  %v2539_v7 = vsub.f32 %v2527_v52, %v2531_v59 }
0x1271   :  { %v2538_v21 = vsub.f32 %v2536_v4, %v2537_v39 }
0x1273   :  { %v2540_v37 = vadd.f32 1e-05, %v2538_v21 }
0x1275   :  { %3209 = vrsqrt.f32 %v2540_v37 }
0x1276   :  { %3211 = vpow2.f32 %v2700_v53 }
0x1282   :  { %v3210_v43 = vpop.eup %3209 }
0x1283   :  { %v2542_v27 = vmul.f32 %v3210_v43, %v2539_v7  ;;  %v3212_v18 = vpop.eup %3211 }
0x1284   :  { %v2521_v29 = vadd.f32 1.0, %v3212_v18 }
0x1285   :  { %v2543_v0 = vmul.f32 %v3914_v51, %v2542_v27 }
0x1287   :  { %v2544_v28 = vadd.f32 %v3920_v11, %v2543_v0 }
0x1289   :  { %3213 = vtanh.f32 %v2544_v28 }
0x128a   :  { %3215 = vrcp.f32 %v2521_v29 }
0x1296   :  { %v3214_v19 = vpop.eup %3213 }
0x1297   :  { %v2546_v32 = vsub.f32 %v3996_v6, %v3214_v19  ;;  %v3216_v30 = vpop.eup %3215 }
0x1299   :  { %v2547_v61 = vmul.f32 %v3216_v30, %v2546_v32 }
0x129b   :  { %v2548_v31 = vadd.f32 %v3214_v19, %v2547_v61 }
0x129d   :  { %2549 = vst.msk [vmem:[#allocation2] sm:$0xff] %vm34_vm0, %v2548_v31  ;;  %2702 = vst.msk [vmem:[%s4051_s8 + $0x38] sm:$0xff] %vm34_vm0, %v2548_v31 }

</bundles_post_ra>
